<compile_context>
chip_gen: v6e
topology: v6e:2x2x1
jax: 0.10.0
libtpu: 0.0.40
codegen_flags: <defaults>
</compile_context>

<pallas_src>
import functools

import jax
import jax.numpy as jnp
from jax import lax
from jax.experimental import pallas as pl
from jax.experimental.pallas import tpu as pltpu

_EPS = 1e-5
# Above the default scoped VMEM (16 MiB v5e / 32 MiB v6e+v7x), below v7x's
# 64 MiB physical VMEM per TensorCore.
_VMEM_LIMIT = 48 * 1024 * 1024


def _auto_block_n(N, H, W, Cin, Cout, stride, budget_bytes=8 * 1024 * 1024):
    """Largest batch-tile (divisor of N, capped at 8) whose per-step VMEM
    footprint (double-buffered I/O + im2col patches + f32 accumulators) fits
    a conservative budget that is safe on all of v5e / v6e / v7x."""
    Ho = (H - 1) // stride + 1
    Wo = (W - 1) // stride + 1
    best = 1
    for bn in range(1, min(N, 8) + 1):
        if N % bn:
            continue
        m = bn * Ho * Wo
        est = (2 * bn * (H + 2) * (W + 2) * Cin * 2          # bf16 input, 2x buf
               + 2 * 2 * m * Cout * 4 * 2                    # y1+ys f32 out, 2x buf
               + m * 9 * max(Cin, Cout) * 2                  # im2col patches bf16
               + 2 * m * Cout * 4)                           # f32 matmul results
        if est <= budget_bytes:
            best = bn
    return best


def _bn_fold(s, q, count, gamma, beta, eps):
    """Fold global batch statistics into per-channel scale/shift (f32)."""
    mean = s / count
    var = jnp.maximum(q / count - mean * mean, 0.0)   # biased variance, f32
    scale = gamma.reshape(1, -1) * lax.rsqrt(var + eps)
    shift = beta.reshape(1, -1) - mean * scale
    return scale, shift


def _const_spec(shape):
    nd = len(shape)
    return pl.BlockSpec(shape, lambda i: (0,) * nd)


def _batch_spec(block_n, trailing):
    nt = len(trailing)
    return pl.BlockSpec((block_n,) + tuple(trailing),
                        lambda i: (i,) + (0,) * nt)


# --------------------------- stage A: conv1 + shortcut ------------------------
def _make_stage_a(bN, H, W, Cin, Cout, Ho, Wo, stride, identity_shortcut):
    M = bN * Ho * Wo

    def tap(xp, dh, dw):
        # (bN, Ho, Wo, Cin) window at offset (dh, dw) with spatial stride.
        if stride == 1:
            return xp[:, dh:dh + Ho, dw:dw + Wo, :]
        # TODO(synk): for stride>1 blocks, pre-split the input into stride
        # phases in the wrapper so the stride happens at the DMA level instead
        # of as an in-kernel strided slice (relayout).
        return lax.slice(
            xp, (0, dh, dw, 0),
            (bN, dh + stride * (Ho - 1) + 1, dw + stride * (Wo - 1) + 1, Cin),
            (1, stride, stride, 1))

    def kernel(*refs):
        if identity_shortcut:
            (xp_ref, w1_ref,
             y1_ref, ys_ref, s1_ref, q1_ref, ss_ref, qs_ref) = refs
            ws = None
        else:
            (xp_ref, w1_ref, ws_ref,
             y1_ref, ys_ref, s1_ref, q1_ref, ss_ref, qs_ref) = refs
            ws = ws_ref[...]

        xp = xp_ref[...]                             # (bN, H+2, W+2, Cin) bf16

        # conv1 as one im2col matmul: (M, 9*Cin) @ (9*Cin, Cout), f32 acc.
        cols = [tap(xp, dh, dw) for dh in range(3) for dw in range(3)]
        patches = jnp.concatenate(cols, axis=-1).reshape(M, 9 * Cin)
        y1 = jnp.dot(patches, w1_ref[...], preferred_element_type=jnp.float32)

        # shortcut: 1x1 conv, stride s (skipped when the weight is identity).
        xs = tap(xp, 1, 1).reshape(M, Cin)
        if identity_shortcut:
            ys = xs.astype(jnp.float32)
        else:
            ys = jnp.dot(xs, ws, preferred_element_type=jnp.float32)

        y1_ref[...] = y1.reshape(bN, Ho, Wo, Cout)
        ys_ref[...] = ys.reshape(bN, Ho, Wo, Cout)

        # Per-tile partial BN statistics (single pass: sum & sum of squares).
        s1_ref[...] = jnp.sum(y1, axis=0, keepdims=True).reshape(1, 1, Cout)
        q1_ref[...] = jnp.sum(y1 * y1, axis=0, keepdims=True).reshape(1, 1, Cout)
        ss_ref[...] = jnp.sum(ys, axis=0, keepdims=True).reshape(1, 1, Cout)
        qs_ref[...] = jnp.sum(ys * ys, axis=0, keepdims=True).reshape(1, 1, Cout)

    return kernel


# ----------------------- stage B: bn1 + relu fused into conv2 -----------------
def _make_stage_b(bN, Ho, Wo, Cout):
    M = bN * Ho * Wo

    def kernel(y1_ref, sc1_ref, sh1_ref, w2_ref, y2_ref, s2_ref, q2_ref):
        # bn1 folded to per-channel scale/shift, then relu (all f32).
        h1 = jnp.maximum(y1_ref[...] * sc1_ref[...] + sh1_ref[...], 0.0)
        # conv2 (3x3, stride 1, pad 1) as one im2col bf16 matmul.
        h1p = jnp.pad(h1, ((0, 0), (1, 1), (1, 1), (0, 0))).astype(jnp.bfloat16)
        cols = [h1p[:, dh:dh + Ho, dw:dw + Wo, :]
                for dh in range(3) for dw in range(3)]
        patches = jnp.concatenate(cols, axis=-1).reshape(M, 9 * Cout)
        y2 = jnp.dot(patches, w2_ref[...], preferred_element_type=jnp.float32)

        y2_ref[...] = y2.reshape(bN, Ho, Wo, Cout)
        s2_ref[...] = jnp.sum(y2, axis=0, keepdims=True).reshape(1, 1, Cout)
        q2_ref[...] = jnp.sum(y2 * y2, axis=0, keepdims=True).reshape(1, 1, Cout)

    return kernel


# --------------------- stage C: bn2 + bn_s + residual add + relu --------------
def _stage_c_kernel(y2_ref, ys_ref, sc2_ref, sh2_ref, scs_ref, shs_ref, o_ref):
    out = (y2_ref[...] * sc2_ref[...] + sh2_ref[...]
           + ys_ref[...] * scs_ref[...] + shs_ref[...])
    o_ref[...] = jnp.maximum(out, 0.0).astype(o_ref.dtype)


# ------------------------------------ wrapper ---------------------------------
def basic_block_forward(x_nchw, params, *, stride=1, identity_shortcut=False,
                        block_n=None, eps=_EPS):
    """x_nchw: (N, Cin, H, W) float32.  Returns (N, Cout, Ho, Wo) float32."""
    (w1, g1, b1, w2, g2, b2, ws, gs, bs) = params
    N, Cin, H, W = x_nchw.shape
    Cout = w1.shape[0]            # PyTorch conv weight layout (Cout, Cin, KH, KW)
    Ho = (H - 1) // stride + 1
    Wo = (W - 1) // stride + 1
    if identity_shortcut:
        assert stride == 1 and Cin == Cout, \
            "identity shortcut requires stride==1 and Cin==Cout"

    if block_n is None:
        block_n = _auto_block_n(N, H, W, Cin, Cout, stride)
    assert N % block_n == 0, f"batch {N} must be divisible by block_n {block_n}"
    T = N // block_n

    # ---- glue (plain JAX): layout, padding, weight reshape, bf16 casts ----
    x_nhwc = jnp.transpose(x_nchw, (0, 2, 3, 1)).astype(jnp.float32)
    xp = jnp.pad(x_nhwc, ((0, 0), (1, 1), (1, 1), (0, 0))).astype(jnp.bfloat16)
    # Conv weights -> (9*C, Cout) matmul form ordered k = dh*3 + dw (matches
    # the im2col concat order inside the kernels); bf16 MXU operands.
    w1m = jnp.transpose(w1, (2, 3, 1, 0)).reshape(9 * Cin, Cout).astype(jnp.bfloat16)
    w2m = jnp.transpose(w2, (2, 3, 1, 0)).reshape(9 * Cout, Cout).astype(jnp.bfloat16)
    wsm = jnp.transpose(ws, (2, 3, 1, 0)).reshape(Cin, Cout).astype(jnp.bfloat16)

    cparams = pltpu.CompilerParams(
        dimension_semantics=("parallel",),        # batch tiles are independent
        vmem_limit_bytes=_VMEM_LIMIT)

    act_spec_in = _batch_spec(block_n, (H + 2, W + 2, Cin))
    act_spec_out = _batch_spec(block_n, (Ho, Wo, Cout))
    stat_spec = pl.BlockSpec((1, 1, Cout), lambda i: (i, 0, 0))
    stat_shape = jax.ShapeDtypeStruct((T, 1, Cout), jnp.float32)
    act_shape = jax.ShapeDtypeStruct((N, Ho, Wo, Cout), jnp.float32)
    vec_spec = _const_spec((1, Cout))

    # ---------------- stage A: conv1 + shortcut (+ partial BN stats) --------
    kernel_a = _make_stage_a(block_n, H, W, Cin, Cout, Ho, Wo, stride,
                             identity_shortcut)
    a_in = (xp, w1m) if identity_shortcut else (xp, w1m, wsm)
    a_in_specs = [act_spec_in, _const_spec((9 * Cin, Cout))]
    if not identity_shortcut:
        a_in_specs.append(_const_spec((Cin, Cout)))

    y1, ys, s1, q1, ss, qs = pl.pallas_call(
        kernel_a,
        grid=(T,),
        out_shape=(act_shape, act_shape) + (stat_shape,) * 4,
        in_specs=a_in_specs,
        out_specs=(act_spec_out, act_spec_out) + (stat_spec,) * 4,
        compiler_params=cparams,
    )(*a_in)

    count = float(N * Ho * Wo)
    scale1, shift1 = _bn_fold(jnp.sum(s1, axis=0), jnp.sum(q1, axis=0),
                              count, g1, b1, eps)
    scale_s, shift_s = _bn_fold(jnp.sum(ss, axis=0), jnp.sum(qs, axis=0),
                                count, gs, bs, eps)

    # ---------------- stage B: bn1+relu fused into conv2 (+ partial stats) ---
    kernel_b = _make_stage_b(block_n, Ho, Wo, Cout)
    y2, s2, q2 = pl.pallas_call(
        kernel_b,
        grid=(T,),
        out_shape=(act_shape, stat_shape, stat_shape),
        in_specs=[act_spec_out, vec_spec, vec_spec,
                  _const_spec((9 * Cout, Cout))],
        out_specs=(act_spec_out, stat_spec, stat_spec),
        compiler_params=cparams,
    )(y1, scale1, shift1, w2m)

    scale2, shift2 = _bn_fold(jnp.sum(s2, axis=0), jnp.sum(q2, axis=0),
                              count, g2, b2, eps)

    # ---------------- stage C: bn2 + bn_s + residual add + relu --------------
    out_nhwc = pl.pallas_call(
        _stage_c_kernel,
        grid=(T,),
        out_shape=act_shape,
        in_specs=[act_spec_out, act_spec_out,
                  vec_spec, vec_spec, vec_spec, vec_spec],
        out_specs=act_spec_out,
        compiler_params=cparams,
    )(y2, ys, scale2, shift2, scale_s, shift_s)

    return jnp.transpose(out_nhwc, (0, 3, 1, 2))


# ------------------------- pure-JAX (f32) reference ---------------------------
def basic_block_reference(x, params, stride=1, eps=_EPS):
    (w1, g1, b1, w2, g2, b2, ws, gs, bs) = params

    def conv(x, w, s, pad):
        return lax.conv_general_dilated(
            x, w, (s, s), [(pad, pad), (pad, pad)],
            dimension_numbers=("NCHW", "OIHW", "NCHW"),
            precision=lax.Precision.HIGHEST)

    def bn(y, g, b):
        mu = jnp.mean(y, axis=(0, 2, 3), keepdims=True)
        var = jnp.mean((y - mu) ** 2, axis=(0, 2, 3), keepdims=True)
        return ((y - mu) * lax.rsqrt(var + eps) * g.reshape(1, -1, 1, 1)
                + b.reshape(1, -1, 1, 1))

    h = jnp.maximum(bn(conv(x, w1, stride, 1), g1, b1), 0.0)
    out = bn(conv(h, w2, 1, 1), g2, b2)
    sc = bn(conv(x, ws, stride, 0), gs, bs)
    return jnp.maximum(out + sc, 0.0)


def init_basic_block_params(in_planes, planes, stride=1):
    """Deterministic parameter init mirroring BasicBlock.__init__ shapes."""
    key = jax.random.PRNGKey(0)
    k1, k2 = jax.random.split(key)

    w1 = 0.1 * jax.random.normal(k1, (planes, in_planes, 3, 3), jnp.float32)
    w2 = 0.1 * jax.random.normal(k2, (planes, planes, 3, 3), jnp.float32)

    # Shortcut 1x1 conv.  When stride == 1 or in_planes == planes the
    # reference module overwrites this weight with cal_identity -> eye.
    if stride == 1 or in_planes == planes:
        ws = jnp.eye(planes, in_planes, dtype=jnp.float32).reshape(
            planes, in_planes, 1, 1)
    else:
        ws = 0.1 * jax.random.normal(
            jax.random.PRNGKey(2), (planes, in_planes, 1, 1), jnp.float32)

    # BatchNorm2d defaults: weight=1, bias=0.
    g1 = jnp.ones((planes,), jnp.float32)
    b1 = jnp.zeros((planes,), jnp.float32)
    g2 = jnp.ones((planes,), jnp.float32)
    b2 = jnp.zeros((planes,), jnp.float32)
    gs = jnp.ones((planes,), jnp.float32)
    bs = jnp.zeros((planes,), jnp.float32)
    return (w1, g1, b1, w2, g2, b2, ws, gs, bs)


if __name__ == "__main__":
    N, in_planes, planes, H, W, stride = 2, 4, 4, 16, 16, 1

    key = jax.random.PRNGKey(0)
    x = jax.random.normal(key, (N, in_planes, H, W), jnp.float32)
    params = init_basic_block_params(in_planes, planes, stride)

    identity_sc = (stride == 1 and in_planes == planes)
    # block_n=1 -> a 2-step pipelined grid per stage (exercises BlockSpec
    # double-buffering); default auto-picks the largest tile that fits VMEM.
    fwd = jax.jit(functools.partial(
        basic_block_forward, stride=stride,
        identity_shortcut=identity_sc, block_n=1))
    out = fwd(x, params)
    jax.block_until_ready(out)

    assert out.shape == (N, planes, H // stride, W // stride)
    assert bool(jnp.all(out >= 0.0))            # final ReLU
    assert bool(jnp.all(jnp.isfinite(out)))

    # Loose check against the pure-f32 reference (kernel intentionally uses
    # bf16 MXU operands with f32 accumulation, per TPU perf guidance).
    ref = basic_block_reference(x, params, stride=stride)
    max_err = float(jnp.max(jnp.abs(out - ref)))
    mean_err = float(jnp.mean(jnp.abs(out - ref)))
    assert max_err < 0.15 and mean_err < 0.05, (max_err, mean_err)

    print("KERNEL_OK")
</pallas_src>

<mosaic_0001>
module attributes {stable_mosaic.version = 11 : i64} {
  func.func @kernel(%arg0: i32, %arg1: memref<1x18x18x4xbf16, #tpu.memory_space<vmem>>, %arg2: memref<36x4xbf16, #tpu.memory_space<vmem>>, %arg3: memref<1x16x16x4xf32, #tpu.memory_space<vmem>>, %arg4: memref<1x16x16x4xf32, #tpu.memory_space<vmem>>, %arg5: memref<1x1x4xf32, #tpu.memory_space<vmem>>, %arg6: memref<1x1x4xf32, #tpu.memory_space<vmem>>, %arg7: memref<1x1x4xf32, #tpu.memory_space<vmem>>, %arg8: memref<1x1x4xf32, #tpu.memory_space<vmem>>) attributes {dimension_semantics = [#tpu.dimension_semantics<parallel>], iteration_bounds = array<i64: 2>, scalar_prefetch = 0 : i64, scratch_operands = 0 : i64, tpu.core_type = #tpu.core_type<tc>, window_params = [{transform_indices = @transform_0, window_bounds = array<i64: 1, 18, 18, 4>}, {pipeline_mode = #tpu.pipeline_mode<synchronous>, transform_indices = @transform_1, window_bounds = array<i64: 36, 4>}, {transform_indices = @transform_2, window_bounds = array<i64: 1, 16, 16, 4>}, {transform_indices = @transform_3, window_bounds = array<i64: 1, 16, 16, 4>}, {transform_indices = @transform_4, window_bounds = array<i64: 1, 1, 4>}, {transform_indices = @transform_5, window_bounds = array<i64: 1, 1, 4>}, {transform_indices = @transform_6, window_bounds = array<i64: 1, 1, 4>}, {transform_indices = @transform_7, window_bounds = array<i64: 1, 1, 4>}]} {
    %c0 = arith.constant 0 : index
    %c0_0 = arith.constant 0 : index
    %c0_1 = arith.constant 0 : index
    %c0_2 = arith.constant 0 : index
    %0 = vector.load %arg1[%c0, %c0_0, %c0_1, %c0_2] : memref<1x18x18x4xbf16, #tpu.memory_space<vmem>>, vector<1x18x18x4xbf16>
    %1 = vector.extract_strided_slice %0 {offsets = [0, 0, 0, 0], sizes = [1, 16, 16, 4], strides = [1, 1, 1, 1]} : vector<1x18x18x4xbf16> to vector<1x16x16x4xbf16>
    %2 = vector.extract_strided_slice %0 {offsets = [0, 0, 1, 0], sizes = [1, 16, 16, 4], strides = [1, 1, 1, 1]} : vector<1x18x18x4xbf16> to vector<1x16x16x4xbf16>
    %3 = vector.extract_strided_slice %0 {offsets = [0, 0, 2, 0], sizes = [1, 16, 16, 4], strides = [1, 1, 1, 1]} : vector<1x18x18x4xbf16> to vector<1x16x16x4xbf16>
    %4 = vector.extract_strided_slice %0 {offsets = [0, 1, 0, 0], sizes = [1, 16, 16, 4], strides = [1, 1, 1, 1]} : vector<1x18x18x4xbf16> to vector<1x16x16x4xbf16>
    %5 = vector.extract_strided_slice %0 {offsets = [0, 1, 1, 0], sizes = [1, 16, 16, 4], strides = [1, 1, 1, 1]} : vector<1x18x18x4xbf16> to vector<1x16x16x4xbf16>
    %6 = vector.extract_strided_slice %0 {offsets = [0, 1, 2, 0], sizes = [1, 16, 16, 4], strides = [1, 1, 1, 1]} : vector<1x18x18x4xbf16> to vector<1x16x16x4xbf16>
    %7 = vector.extract_strided_slice %0 {offsets = [0, 2, 0, 0], sizes = [1, 16, 16, 4], strides = [1, 1, 1, 1]} : vector<1x18x18x4xbf16> to vector<1x16x16x4xbf16>
    %8 = vector.extract_strided_slice %0 {offsets = [0, 2, 1, 0], sizes = [1, 16, 16, 4], strides = [1, 1, 1, 1]} : vector<1x18x18x4xbf16> to vector<1x16x16x4xbf16>
    %9 = vector.extract_strided_slice %0 {offsets = [0, 2, 2, 0], sizes = [1, 16, 16, 4], strides = [1, 1, 1, 1]} : vector<1x18x18x4xbf16> to vector<1x16x16x4xbf16>
    %10 = tpu.concatenate %1, %2, %3, %4, %5, %6, %7, %8, %9 in 3 : vector<1x16x16x4xbf16>, vector<1x16x16x4xbf16>, vector<1x16x16x4xbf16>, vector<1x16x16x4xbf16>, vector<1x16x16x4xbf16>, vector<1x16x16x4xbf16>, vector<1x16x16x4xbf16>, vector<1x16x16x4xbf16>, vector<1x16x16x4xbf16> -> vector<1x16x16x36xbf16>
    %11 = vector.shape_cast %10 : vector<1x16x16x36xbf16> to vector<256x36xbf16>
    %c0_3 = arith.constant 0 : index
    %c0_4 = arith.constant 0 : index
    %12 = vector.load %arg2[%c0_3, %c0_4] : memref<36x4xbf16, #tpu.memory_space<vmem>>, vector<36x4xbf16>
    %cst = arith.constant dense<0.000000e+00> : vector<256x4xf32>
    %13 = tpu.matmul %11, %12, %cst {dimension_numbers = #tpu.dot_dimension_numbers<[1], [0], [0], [1], [0, 0, 1, 1], [], []>} : vector<256x36xbf16>, vector<36x4xbf16>, vector<256x4xf32> -> vector<256x4xf32>
    %14 = vector.extract_strided_slice %0 {offsets = [0, 1, 1, 0], sizes = [1, 16, 16, 4], strides = [1, 1, 1, 1]} : vector<1x18x18x4xbf16> to vector<1x16x16x4xbf16>
    %15 = vector.shape_cast %14 : vector<1x16x16x4xbf16> to vector<256x4xbf16>
    %16 = arith.extf %15 : vector<256x4xbf16> to vector<256x4xf32>
    %17 = vector.shape_cast %13 : vector<256x4xf32> to vector<1x16x16x4xf32>
    %c0_5 = arith.constant 0 : index
    %c0_6 = arith.constant 0 : index
    %c0_7 = arith.constant 0 : index
    %c0_8 = arith.constant 0 : index
    %18 = vector.load %arg3[%c0_5, %c0_6, %c0_7, %c0_8] : memref<1x16x16x4xf32, #tpu.memory_space<vmem>>, vector<1x16x16x4xf32>
    tpu.vector_store %arg3[%c0_5, %c0_6, %c0_7, %c0_8], %17 {strides = array<i32>} : memref<1x16x16x4xf32, #tpu.memory_space<vmem>>, vector<1x16x16x4xf32>,
    %19 = vector.shape_cast %16 : vector<256x4xf32> to vector<1x16x16x4xf32>
    %c0_9 = arith.constant 0 : index
    %c0_10 = arith.constant 0 : index
    %c0_11 = arith.constant 0 : index
    %c0_12 = arith.constant 0 : index
    %20 = vector.load %arg4[%c0_9, %c0_10, %c0_11, %c0_12] : memref<1x16x16x4xf32, #tpu.memory_space<vmem>>, vector<1x16x16x4xf32>
    tpu.vector_store %arg4[%c0_9, %c0_10, %c0_11, %c0_12], %19 {strides = array<i32>} : memref<1x16x16x4xf32, #tpu.memory_space<vmem>>, vector<1x16x16x4xf32>,
    %cst_13 = arith.constant dense<0.000000e+00> : vector<4xf32>
    %21 = vector.multi_reduction <add>, %13, %cst_13 [0] : vector<256x4xf32> to vector<4xf32>
    %22 = vector.shape_cast %21 : vector<4xf32> to vector<1x4xf32>
    %23 = vector.shape_cast %22 : vector<1x4xf32> to vector<1x1x4xf32>
    %c0_14 = arith.constant 0 : index
    %c0_15 = arith.constant 0 : index
    %c0_16 = arith.constant 0 : index
    %24 = vector.load %arg5[%c0_14, %c0_15, %c0_16] : memref<1x1x4xf32, #tpu.memory_space<vmem>>, vector<1x1x4xf32>
    tpu.vector_store %arg5[%c0_14, %c0_15, %c0_16], %23 {strides = array<i32>} : memref<1x1x4xf32, #tpu.memory_space<vmem>>, vector<1x1x4xf32>,
    %25 = arith.mulf %13, %13 : vector<256x4xf32>
    %cst_17 = arith.constant dense<0.000000e+00> : vector<4xf32>
    %26 = vector.multi_reduction <add>, %25, %cst_17 [0] : vector<256x4xf32> to vector<4xf32>
    %27 = vector.shape_cast %26 : vector<4xf32> to vector<1x4xf32>
    %28 = vector.shape_cast %27 : vector<1x4xf32> to vector<1x1x4xf32>
    %c0_18 = arith.constant 0 : index
    %c0_19 = arith.constant 0 : index
    %c0_20 = arith.constant 0 : index
    %29 = vector.load %arg6[%c0_18, %c0_19, %c0_20] : memref<1x1x4xf32, #tpu.memory_space<vmem>>, vector<1x1x4xf32>
    tpu.vector_store %arg6[%c0_18, %c0_19, %c0_20], %28 {strides = array<i32>} : memref<1x1x4xf32, #tpu.memory_space<vmem>>, vector<1x1x4xf32>,
    %cst_21 = arith.constant dense<0.000000e+00> : vector<4xf32>
    %30 = vector.multi_reduction <add>, %16, %cst_21 [0] : vector<256x4xf32> to vector<4xf32>
    %31 = vector.shape_cast %30 : vector<4xf32> to vector<1x4xf32>
    %32 = vector.shape_cast %31 : vector<1x4xf32> to vector<1x1x4xf32>
    %c0_22 = arith.constant 0 : index
    %c0_23 = arith.constant 0 : index
    %c0_24 = arith.constant 0 : index
    %33 = vector.load %arg7[%c0_22, %c0_23, %c0_24] : memref<1x1x4xf32, #tpu.memory_space<vmem>>, vector<1x1x4xf32>
    tpu.vector_store %arg7[%c0_22, %c0_23, %c0_24], %32 {strides = array<i32>} : memref<1x1x4xf32, #tpu.memory_space<vmem>>, vector<1x1x4xf32>,
    %34 = arith.mulf %16, %16 : vector<256x4xf32>
    %cst_25 = arith.constant dense<0.000000e+00> : vector<4xf32>
    %35 = vector.multi_reduction <add>, %34, %cst_25 [0] : vector<256x4xf32> to vector<4xf32>
    %36 = vector.shape_cast %35 : vector<4xf32> to vector<1x4xf32>
    %37 = vector.shape_cast %36 : vector<1x4xf32> to vector<1x1x4xf32>
    %c0_26 = arith.constant 0 : index
    %c0_27 = arith.constant 0 : index
    %c0_28 = arith.constant 0 : index
    %38 = vector.load %arg8[%c0_26, %c0_27, %c0_28] : memref<1x1x4xf32, #tpu.memory_space<vmem>>, vector<1x1x4xf32>
    tpu.vector_store %arg8[%c0_26, %c0_27, %c0_28], %37 {strides = array<i32>} : memref<1x1x4xf32, #tpu.memory_space<vmem>>, vector<1x1x4xf32>,
    return
  }
  func.func @transform_0(%arg0: i32) -> (i32, i32, i32, i32) {
    %c0_i32 = arith.constant 0 : i32
    %c0_i32_0 = arith.constant 0 : i32
    %c0_i32_1 = arith.constant 0 : i32
    %c0_i32_2 = arith.constant 0 : i32
    return %arg0, %c0_i32, %c0_i32_0, %c0_i32_1 : i32, i32, i32, i32
  }
  func.func @transform_1(%arg0: i32) -> (i32, i32) {
    %c0_i32 = arith.constant 0 : i32
    %c0_i32_0 = arith.constant 0 : i32
    %c0_i32_1 = arith.constant 0 : i32
    return %c0_i32, %c0_i32_0 : i32, i32
  }
  func.func @transform_2(%arg0: i32) -> (i32, i32, i32, i32) {
    %c0_i32 = arith.constant 0 : i32
    %c0_i32_0 = arith.constant 0 : i32
    %c0_i32_1 = arith.constant 0 : i32
    %c0_i32_2 = arith.constant 0 : i32
    return %arg0, %c0_i32, %c0_i32_0, %c0_i32_1 : i32, i32, i32, i32
  }
  func.func @transform_3(%arg0: i32) -> (i32, i32, i32, i32) {
    %c0_i32 = arith.constant 0 : i32
    %c0_i32_0 = arith.constant 0 : i32
    %c0_i32_1 = arith.constant 0 : i32
    %c0_i32_2 = arith.constant 0 : i32
    return %arg0, %c0_i32, %c0_i32_0, %c0_i32_1 : i32, i32, i32, i32
  }
  func.func @transform_4(%arg0: i32) -> (i32, i32, i32) {
    %c0_i32 = arith.constant 0 : i32
    %c0_i32_0 = arith.constant 0 : i32
    %c0_i32_1 = arith.constant 0 : i32
    return %arg0, %c0_i32, %c0_i32_0 : i32, i32, i32
  }
  func.func @transform_5(%arg0: i32) -> (i32, i32, i32) {
    %c0_i32 = arith.constant 0 : i32
    %c0_i32_0 = arith.constant 0 : i32
    %c0_i32_1 = arith.constant 0 : i32
    return %arg0, %c0_i32, %c0_i32_0 : i32, i32, i32
  }
  func.func @transform_6(%arg0: i32) -> (i32, i32, i32) {
    %c0_i32 = arith.constant 0 : i32
    %c0_i32_0 = arith.constant 0 : i32
    %c0_i32_1 = arith.constant 0 : i32
    return %arg0, %c0_i32, %c0_i32_0 : i32, i32, i32
  }
  func.func @transform_7(%arg0: i32) -> (i32, i32, i32) {
    %c0_i32 = arith.constant 0 : i32
    %c0_i32_0 = arith.constant 0 : i32
    %c0_i32_1 = arith.constant 0 : i32
    return %arg0, %c0_i32, %c0_i32_0 : i32, i32, i32
  }
}

module attributes {stable_mosaic.version = 11 : i64} {
  func.func @kernel(%arg0: i32, %arg1: memref<1x16x16x4xf32, #tpu.memory_space<vmem>>, %arg2: memref<1x4xf32, #tpu.memory_space<vmem>>, %arg3: memref<1x4xf32, #tpu.memory_space<vmem>>, %arg4: memref<36x4xbf16, #tpu.memory_space<vmem>>, %arg5: memref<1x16x16x4xf32, #tpu.memory_space<vmem>>, %arg6: memref<1x1x4xf32, #tpu.memory_space<vmem>>, %arg7: memref<1x1x4xf32, #tpu.memory_space<vmem>>) attributes {dimension_semantics = [#tpu.dimension_semantics<parallel>], iteration_bounds = array<i64: 2>, scalar_prefetch = 0 : i64, scratch_operands = 0 : i64, tpu.core_type = #tpu.core_type<tc>, window_params = [{transform_indices = @transform_0, window_bounds = array<i64: 1, 16, 16, 4>}, {pipeline_mode = #tpu.pipeline_mode<synchronous>, transform_indices = @transform_1, window_bounds = array<i64: 1, 4>}, {pipeline_mode = #tpu.pipeline_mode<synchronous>, transform_indices = @transform_2, window_bounds = array<i64: 1, 4>}, {pipeline_mode = #tpu.pipeline_mode<synchronous>, transform_indices = @transform_3, window_bounds = array<i64: 36, 4>}, {transform_indices = @transform_4, window_bounds = array<i64: 1, 16, 16, 4>}, {transform_indices = @transform_5, window_bounds = array<i64: 1, 1, 4>}, {transform_indices = @transform_6, window_bounds = array<i64: 1, 1, 4>}]} {
    %c0 = arith.constant 0 : index
    %c0_0 = arith.constant 0 : index
    %c0_1 = arith.constant 0 : index
    %c0_2 = arith.constant 0 : index
    %0 = vector.load %arg1[%c0, %c0_0, %c0_1, %c0_2] : memref<1x16x16x4xf32, #tpu.memory_space<vmem>>, vector<1x16x16x4xf32>
    %c0_3 = arith.constant 0 : index
    %c0_4 = arith.constant 0 : index
    %1 = vector.load %arg2[%c0_3, %c0_4] : memref<1x4xf32, #tpu.memory_space<vmem>>, vector<1x4xf32>
    %2 = vector.shape_cast %1 : vector<1x4xf32> to vector<1x1x1x4xf32>
    %3 = vector.broadcast %2 : vector<1x1x1x4xf32> to vector<1x16x16x4xf32>
    %4 = arith.mulf %0, %3 : vector<1x16x16x4xf32>
    %c0_5 = arith.constant 0 : index
    %c0_6 = arith.constant 0 : index
    %5 = vector.load %arg3[%c0_5, %c0_6] : memref<1x4xf32, #tpu.memory_space<vmem>>, vector<1x4xf32>
    %6 = vector.shape_cast %5 : vector<1x4xf32> to vector<1x1x1x4xf32>
    %7 = vector.broadcast %6 : vector<1x1x1x4xf32> to vector<1x16x16x4xf32>
    %8 = arith.addf %4, %7 : vector<1x16x16x4xf32>
    %cst = arith.constant 0.000000e+00 : f32
    %9 = vector.broadcast %cst : f32 to vector<1x16x16x4xf32>
    %10 = arith.maximumf %8, %9 : vector<1x16x16x4xf32>
    %c0_i32 = arith.constant 0 : i32
    %11 = arith.sitofp %c0_i32 : i32 to f32
    %12 = vector.broadcast %11 : f32 to vector<1x1x16x4xf32>
    %13 = tpu.concatenate %12, %10 in 1 : vector<1x1x16x4xf32>, vector<1x16x16x4xf32> -> vector<1x17x16x4xf32>
    %14 = vector.broadcast %11 : f32 to vector<1x1x16x4xf32>
    %15 = tpu.concatenate %13, %14 in 1 : vector<1x17x16x4xf32>, vector<1x1x16x4xf32> -> vector<1x18x16x4xf32>
    %16 = vector.broadcast %11 : f32 to vector<1x18x1x4xf32>
    %17 = tpu.concatenate %16, %15 in 2 : vector<1x18x1x4xf32>, vector<1x18x16x4xf32> -> vector<1x18x17x4xf32>
    %18 = vector.broadcast %11 : f32 to vector<1x18x1x4xf32>
    %19 = tpu.concatenate %17, %18 in 2 : vector<1x18x17x4xf32>, vector<1x18x1x4xf32> -> vector<1x18x18x4xf32>
    %20 = arith.truncf %19 : vector<1x18x18x4xf32> to vector<1x18x18x4xbf16>
    %21 = vector.extract_strided_slice %20 {offsets = [0, 0, 0, 0], sizes = [1, 16, 16, 4], strides = [1, 1, 1, 1]} : vector<1x18x18x4xbf16> to vector<1x16x16x4xbf16>
    %22 = vector.extract_strided_slice %20 {offsets = [0, 0, 1, 0], sizes = [1, 16, 16, 4], strides = [1, 1, 1, 1]} : vector<1x18x18x4xbf16> to vector<1x16x16x4xbf16>
    %23 = vector.extract_strided_slice %20 {offsets = [0, 0, 2, 0], sizes = [1, 16, 16, 4], strides = [1, 1, 1, 1]} : vector<1x18x18x4xbf16> to vector<1x16x16x4xbf16>
    %24 = vector.extract_strided_slice %20 {offsets = [0, 1, 0, 0], sizes = [1, 16, 16, 4], strides = [1, 1, 1, 1]} : vector<1x18x18x4xbf16> to vector<1x16x16x4xbf16>
    %25 = vector.extract_strided_slice %20 {offsets = [0, 1, 1, 0], sizes = [1, 16, 16, 4], strides = [1, 1, 1, 1]} : vector<1x18x18x4xbf16> to vector<1x16x16x4xbf16>
    %26 = vector.extract_strided_slice %20 {offsets = [0, 1, 2, 0], sizes = [1, 16, 16, 4], strides = [1, 1, 1, 1]} : vector<1x18x18x4xbf16> to vector<1x16x16x4xbf16>
    %27 = vector.extract_strided_slice %20 {offsets = [0, 2, 0, 0], sizes = [1, 16, 16, 4], strides = [1, 1, 1, 1]} : vector<1x18x18x4xbf16> to vector<1x16x16x4xbf16>
    %28 = vector.extract_strided_slice %20 {offsets = [0, 2, 1, 0], sizes = [1, 16, 16, 4], strides = [1, 1, 1, 1]} : vector<1x18x18x4xbf16> to vector<1x16x16x4xbf16>
    %29 = vector.extract_strided_slice %20 {offsets = [0, 2, 2, 0], sizes = [1, 16, 16, 4], strides = [1, 1, 1, 1]} : vector<1x18x18x4xbf16> to vector<1x16x16x4xbf16>
    %30 = tpu.concatenate %21, %22, %23, %24, %25, %26, %27, %28, %29 in 3 : vector<1x16x16x4xbf16>, vector<1x16x16x4xbf16>, vector<1x16x16x4xbf16>, vector<1x16x16x4xbf16>, vector<1x16x16x4xbf16>, vector<1x16x16x4xbf16>, vector<1x16x16x4xbf16>, vector<1x16x16x4xbf16>, vector<1x16x16x4xbf16> -> vector<1x16x16x36xbf16>
    %31 = vector.shape_cast %30 : vector<1x16x16x36xbf16> to vector<256x36xbf16>
    %c0_7 = arith.constant 0 : index
    %c0_8 = arith.constant 0 : index
    %32 = vector.load %arg4[%c0_7, %c0_8] : memref<36x4xbf16, #tpu.memory_space<vmem>>, vector<36x4xbf16>
    %cst_9 = arith.constant dense<0.000000e+00> : vector<256x4xf32>
    %33 = tpu.matmul %31, %32, %cst_9 {dimension_numbers = #tpu.dot_dimension_numbers<[1], [0], [0], [1], [0, 0, 1, 1], [], []>} : vector<256x36xbf16>, vector<36x4xbf16>, vector<256x4xf32> -> vector<256x4xf32>
    %34 = vector.shape_cast %33 : vector<256x4xf32> to vector<1x16x16x4xf32>
    %c0_10 = arith.constant 0 : index
    %c0_11 = arith.constant 0 : index
    %c0_12 = arith.constant 0 : index
    %c0_13 = arith.constant 0 : index
    %35 = vector.load %arg5[%c0_10, %c0_11, %c0_12, %c0_13] : memref<1x16x16x4xf32, #tpu.memory_space<vmem>>, vector<1x16x16x4xf32>
    tpu.vector_store %arg5[%c0_10, %c0_11, %c0_12, %c0_13], %34 {strides = array<i32>} : memref<1x16x16x4xf32, #tpu.memory_space<vmem>>, vector<1x16x16x4xf32>,
    %cst_14 = arith.constant dense<0.000000e+00> : vector<4xf32>
    %36 = vector.multi_reduction <add>, %33, %cst_14 [0] : vector<256x4xf32> to vector<4xf32>
    %37 = vector.shape_cast %36 : vector<4xf32> to vector<1x4xf32>
    %38 = vector.shape_cast %37 : vector<1x4xf32> to vector<1x1x4xf32>
    %c0_15 = arith.constant 0 : index
    %c0_16 = arith.constant 0 : index
    %c0_17 = arith.constant 0 : index
    %39 = vector.load %arg6[%c0_15, %c0_16, %c0_17] : memref<1x1x4xf32, #tpu.memory_space<vmem>>, vector<1x1x4xf32>
    tpu.vector_store %arg6[%c0_15, %c0_16, %c0_17], %38 {strides = array<i32>} : memref<1x1x4xf32, #tpu.memory_space<vmem>>, vector<1x1x4xf32>,
    %40 = arith.mulf %33, %33 : vector<256x4xf32>
    %cst_18 = arith.constant dense<0.000000e+00> : vector<4xf32>
    %41 = vector.multi_reduction <add>, %40, %cst_18 [0] : vector<256x4xf32> to vector<4xf32>
    %42 = vector.shape_cast %41 : vector<4xf32> to vector<1x4xf32>
    %43 = vector.shape_cast %42 : vector<1x4xf32> to vector<1x1x4xf32>
    %c0_19 = arith.constant 0 : index
    %c0_20 = arith.constant 0 : index
    %c0_21 = arith.constant 0 : index
    %44 = vector.load %arg7[%c0_19, %c0_20, %c0_21] : memref<1x1x4xf32, #tpu.memory_space<vmem>>, vector<1x1x4xf32>
    tpu.vector_store %arg7[%c0_19, %c0_20, %c0_21], %43 {strides = array<i32>} : memref<1x1x4xf32, #tpu.memory_space<vmem>>, vector<1x1x4xf32>,
    return
  }
  func.func @transform_0(%arg0: i32) -> (i32, i32, i32, i32) {
    %c0_i32 = arith.constant 0 : i32
    %c0_i32_0 = arith.constant 0 : i32
    %c0_i32_1 = arith.constant 0 : i32
    %c0_i32_2 = arith.constant 0 : i32
    return %arg0, %c0_i32, %c0_i32_0, %c0_i32_1 : i32, i32, i32, i32
  }
  func.func @transform_1(%arg0: i32) -> (i32, i32) {
    %c0_i32 = arith.constant 0 : i32
    %c0_i32_0 = arith.constant 0 : i32
    %c0_i32_1 = arith.constant 0 : i32
    return %c0_i32, %c0_i32_0 : i32, i32
  }
  func.func @transform_2(%arg0: i32) -> (i32, i32) {
    %c0_i32 = arith.constant 0 : i32
    %c0_i32_0 = arith.constant 0 : i32
    %c0_i32_1 = arith.constant 0 : i32
    return %c0_i32, %c0_i32_0 : i32, i32
  }
  func.func @transform_3(%arg0: i32) -> (i32, i32) {
    %c0_i32 = arith.constant 0 : i32
    %c0_i32_0 = arith.constant 0 : i32
    %c0_i32_1 = arith.constant 0 : i32
    return %c0_i32, %c0_i32_0 : i32, i32
  }
  func.func @transform_4(%arg0: i32) -> (i32, i32, i32, i32) {
    %c0_i32 = arith.constant 0 : i32
    %c0_i32_0 = arith.constant 0 : i32
    %c0_i32_1 = arith.constant 0 : i32
    %c0_i32_2 = arith.constant 0 : i32
    return %arg0, %c0_i32, %c0_i32_0, %c0_i32_1 : i32, i32, i32, i32
  }
  func.func @transform_5(%arg0: i32) -> (i32, i32, i32) {
    %c0_i32 = arith.constant 0 : i32
    %c0_i32_0 = arith.constant 0 : i32
    %c0_i32_1 = arith.constant 0 : i32
    return %arg0, %c0_i32, %c0_i32_0 : i32, i32, i32
  }
  func.func @transform_6(%arg0: i32) -> (i32, i32, i32) {
    %c0_i32 = arith.constant 0 : i32
    %c0_i32_0 = arith.constant 0 : i32
    %c0_i32_1 = arith.constant 0 : i32
    return %arg0, %c0_i32, %c0_i32_0 : i32, i32, i32
  }
}

module attributes {stable_mosaic.version = 11 : i64} {
  func.func @_stage_c_kernel(%arg0: i32, %arg1: memref<1x16x16x4xf32, #tpu.memory_space<vmem>>, %arg2: memref<1x16x16x4xf32, #tpu.memory_space<vmem>>, %arg3: memref<1x4xf32, #tpu.memory_space<vmem>>, %arg4: memref<1x4xf32, #tpu.memory_space<vmem>>, %arg5: memref<1x4xf32, #tpu.memory_space<vmem>>, %arg6: memref<1x4xf32, #tpu.memory_space<vmem>>, %arg7: memref<1x16x16x4xf32, #tpu.memory_space<vmem>>) attributes {dimension_semantics = [#tpu.dimension_semantics<parallel>], iteration_bounds = array<i64: 2>, scalar_prefetch = 0 : i64, scratch_operands = 0 : i64, tpu.core_type = #tpu.core_type<tc>, window_params = [{transform_indices = @transform_0, window_bounds = array<i64: 1, 16, 16, 4>}, {transform_indices = @transform_1, window_bounds = array<i64: 1, 16, 16, 4>}, {pipeline_mode = #tpu.pipeline_mode<synchronous>, transform_indices = @transform_2, window_bounds = array<i64: 1, 4>}, {pipeline_mode = #tpu.pipeline_mode<synchronous>, transform_indices = @transform_3, window_bounds = array<i64: 1, 4>}, {pipeline_mode = #tpu.pipeline_mode<synchronous>, transform_indices = @transform_4, window_bounds = array<i64: 1, 4>}, {pipeline_mode = #tpu.pipeline_mode<synchronous>, transform_indices = @transform_5, window_bounds = array<i64: 1, 4>}, {transform_indices = @transform_6, window_bounds = array<i64: 1, 16, 16, 4>}]} {
    %c0 = arith.constant 0 : index
    %c0_0 = arith.constant 0 : index
    %c0_1 = arith.constant 0 : index
    %c0_2 = arith.constant 0 : index
    %0 = vector.load %arg1[%c0, %c0_0, %c0_1, %c0_2] : memref<1x16x16x4xf32, #tpu.memory_space<vmem>>, vector<1x16x16x4xf32>
    %c0_3 = arith.constant 0 : index
    %c0_4 = arith.constant 0 : index
    %1 = vector.load %arg3[%c0_3, %c0_4] : memref<1x4xf32, #tpu.memory_space<vmem>>, vector<1x4xf32>
    %2 = vector.shape_cast %1 : vector<1x4xf32> to vector<1x1x1x4xf32>
    %3 = vector.broadcast %2 : vector<1x1x1x4xf32> to vector<1x16x16x4xf32>
    %4 = arith.mulf %0, %3 : vector<1x16x16x4xf32>
    %c0_5 = arith.constant 0 : index
    %c0_6 = arith.constant 0 : index
    %5 = vector.load %arg4[%c0_5, %c0_6] : memref<1x4xf32, #tpu.memory_space<vmem>>, vector<1x4xf32>
    %6 = vector.shape_cast %5 : vector<1x4xf32> to vector<1x1x1x4xf32>
    %7 = vector.broadcast %6 : vector<1x1x1x4xf32> to vector<1x16x16x4xf32>
    %8 = arith.addf %4, %7 : vector<1x16x16x4xf32>
    %c0_7 = arith.constant 0 : index
    %c0_8 = arith.constant 0 : index
    %c0_9 = arith.constant 0 : index
    %c0_10 = arith.constant 0 : index
    %9 = vector.load %arg2[%c0_7, %c0_8, %c0_9, %c0_10] : memref<1x16x16x4xf32, #tpu.memory_space<vmem>>, vector<1x16x16x4xf32>
    %c0_11 = arith.constant 0 : index
    %c0_12 = arith.constant 0 : index
    %10 = vector.load %arg5[%c0_11, %c0_12] : memref<1x4xf32, #tpu.memory_space<vmem>>, vector<1x4xf32>
    %11 = vector.shape_cast %10 : vector<1x4xf32> to vector<1x1x1x4xf32>
    %12 = vector.broadcast %11 : vector<1x1x1x4xf32> to vector<1x16x16x4xf32>
    %13 = arith.mulf %9, %12 : vector<1x16x16x4xf32>
    %14 = arith.addf %8, %13 : vector<1x16x16x4xf32>
    %c0_13 = arith.constant 0 : index
    %c0_14 = arith.constant 0 : index
    %15 = vector.load %arg6[%c0_13, %c0_14] : memref<1x4xf32, #tpu.memory_space<vmem>>, vector<1x4xf32>
    %16 = vector.shape_cast %15 : vector<1x4xf32> to vector<1x1x1x4xf32>
    %17 = vector.broadcast %16 : vector<1x1x1x4xf32> to vector<1x16x16x4xf32>
    %18 = arith.addf %14, %17 : vector<1x16x16x4xf32>
    %cst = arith.constant 0.000000e+00 : f32
    %19 = vector.broadcast %cst : f32 to vector<1x16x16x4xf32>
    %20 = arith.maximumf %18, %19 : vector<1x16x16x4xf32>
    %c0_15 = arith.constant 0 : index
    %c0_16 = arith.constant 0 : index
    %c0_17 = arith.constant 0 : index
    %c0_18 = arith.constant 0 : index
    %21 = vector.load %arg7[%c0_15, %c0_16, %c0_17, %c0_18] : memref<1x16x16x4xf32, #tpu.memory_space<vmem>>, vector<1x16x16x4xf32>
    tpu.vector_store %arg7[%c0_15, %c0_16, %c0_17, %c0_18], %20 {strides = array<i32>} : memref<1x16x16x4xf32, #tpu.memory_space<vmem>>, vector<1x16x16x4xf32>,
    return
  }
  func.func @transform_0(%arg0: i32) -> (i32, i32, i32, i32) {
    %c0_i32 = arith.constant 0 : i32
    %c0_i32_0 = arith.constant 0 : i32
    %c0_i32_1 = arith.constant 0 : i32
    %c0_i32_2 = arith.constant 0 : i32
    return %arg0, %c0_i32, %c0_i32_0, %c0_i32_1 : i32, i32, i32, i32
  }
  func.func @transform_1(%arg0: i32) -> (i32, i32, i32, i32) {
    %c0_i32 = arith.constant 0 : i32
    %c0_i32_0 = arith.constant 0 : i32
    %c0_i32_1 = arith.constant 0 : i32
    %c0_i32_2 = arith.constant 0 : i32
    return %arg0, %c0_i32, %c0_i32_0, %c0_i32_1 : i32, i32, i32, i32
  }
  func.func @transform_2(%arg0: i32) -> (i32, i32) {
    %c0_i32 = arith.constant 0 : i32
    %c0_i32_0 = arith.constant 0 : i32
    %c0_i32_1 = arith.constant 0 : i32
    return %c0_i32, %c0_i32_0 : i32, i32
  }
  func.func @transform_3(%arg0: i32) -> (i32, i32) {
    %c0_i32 = arith.constant 0 : i32
    %c0_i32_0 = arith.constant 0 : i32
    %c0_i32_1 = arith.constant 0 : i32
    return %c0_i32, %c0_i32_0 : i32, i32
  }
  func.func @transform_4(%arg0: i32) -> (i32, i32) {
    %c0_i32 = arith.constant 0 : i32
    %c0_i32_0 = arith.constant 0 : i32
    %c0_i32_1 = arith.constant 0 : i32
    return %c0_i32, %c0_i32_0 : i32, i32
  }
  func.func @transform_5(%arg0: i32) -> (i32, i32) {
    %c0_i32 = arith.constant 0 : i32
    %c0_i32_0 = arith.constant 0 : i32
    %c0_i32_1 = arith.constant 0 : i32
    return %c0_i32, %c0_i32_0 : i32, i32
  }
  func.func @transform_6(%arg0: i32) -> (i32, i32, i32, i32) {
    %c0_i32 = arith.constant 0 : i32
    %c0_i32_0 = arith.constant 0 : i32
    %c0_i32_1 = arith.constant 0 : i32
    %c0_i32_2 = arith.constant 0 : i32
    return %arg0, %c0_i32, %c0_i32_0, %c0_i32_1 : i32, i32, i32, i32
  }
}

</mosaic_0001>

<bundles_post_ra>
// kernel: basic_block_forward.5
= control target key start
LH: loop header
LB: loop body
LE: loop exit
PB: predicated region body
PF: predicated region fallthrough
CT: control target
= control target key end

     0   :  { %s727_s21 = smov 0   ;;  %s1034_s0 = inlined_call_operand.vmem [shape: f32[2,16,16,4], index: 0, kind: input, shape index: {}]   ;;  %s1035_s1 = inlined_call_operand.vmem [shape: f32[2,16,16,4], index: 1, kind: input, shape index: {}]   ;;  %s1036_s2 = inlined_call_operand.vmem [shape: f32[1,4], index: 2, kind: input, shape index: {}]   ;;  %s1037_s3 = inlined_call_operand.vmem [shape: f32[1,4], index: 3, kind: input, shape index: {}]   ;;  %s1038_s4 = inlined_call_operand.vmem [shape: f32[1,4], index: 4, kind: input, shape index: {}]   ;;  %s1039_s5 = inlined_call_operand.vmem [shape: f32[1,4], index: 5, kind: input, shape index: {}]   ;;  %s1040_s6 = inlined_call_operand.vmem [shape: f32[2,16,16,4], index: 6, kind: output, shape index: {}]  }
   0x1 LB: > { %s656_s22 = sadd.s32 4294967295, %s690_s21   ;;  %p660_p0 = scmp.ge.s32.totalorder %s690_s21, 1  ;;  %s690_s21 = sphi %s727_s21, %s16_s21  }
   0x2   : > { %p222_p1 = scmp.lt.s32.totalorder %s690_s21, 3 }
   0x4   : > { %p223_p2 = pnand %p660_p0, %p222_p1 }
   0x5   : > { %p257_p3 = scmp.lt.s32.totalorder (!%p223_p2), %s656_s22, 1 }
   0x6   : > { %226 = sbr.rel (%p223_p2) target bundleno = 70 (0x46), region = 44 }
   0xb   : > { %s1042_s22 = smov (!%p257_p3, %s656_s22), 1  ;;  %v740_v0 = vld [vmem:[%s1036_s2] ss:$0 sm:$0xff]  ;;  %vm556_vm0 = vcmask 31744  }
   0xc   : > { %s735_s23 = sshll.u32 %s1042_s22, 8  ;;  %v745_v1 = vld [vmem:[%s1038_s4] ss:$0 sm:$0xff] }
   0xd   : > { %s751_s30 = scalar_lea.vmem %s1034_s0, %s735_s23  ;;  %s757_s9 = scalar_lea.vmem %s1035_s1, %s735_s23  ;;  %v762_v2 = vld [vmem:[%s1037_s3] ss:$0 sm:$0xff] }
   0xe   : > { %v272_v3 = vld [vmem:[%s751_s30] sm:$0xff]  ;;  %v273_v5 = vld [vmem:[%s751_s30 + $0x8] sm:$0xff]  ;;  %v274_v10 = vld [vmem:[%s751_s30 + $0x10] sm:$0xff]  ;;  %s810_s16 = scalar_lea.vmem %s1040_s6, %s735_s23 }
   0xf   : > { %v382_v4 = vld [vmem:[%s757_s9] sm:$0xff]  ;;  %v311_v6 = vmul.f32 %v740_v0, %v272_v3  ;;  %v312_v8 = vmul.f32 %v740_v0, %v273_v5  ;;  %v383_v9 = vld [vmem:[%s757_s9 + $0x8] sm:$0xff]  ;;  %v384_v11 = vld [vmem:[%s757_s9 + $0x10] sm:$0xff]  ;;  %v313_v13 = vmul.f32 %v740_v0, %v274_v10 }
  0x10   : > { %v421_v7 = vmul.f32 %v745_v1, %v382_v4  ;;  %v422_v12 = vmul.f32 %v745_v1, %v383_v9  ;;  %v423_v14 = vmul.f32 %v745_v1, %v384_v11  ;;  %v275_v15 = vld [vmem:[%s751_s30 + $0x18] sm:$0xff]  ;;  %v276_v17 = vld [vmem:[%s751_s30 + $0x20] sm:$0xff]  ;;  %v277_v23 = vld [vmem:[%s751_s30 + $0x28] sm:$0xff] }
  0x11   : > { %v385_v16 = vld [vmem:[%s757_s9 + $0x18] sm:$0xff]  ;;  %v350_v18 = vadd.f32 %v762_v2, %v311_v6  ;;  %v351_v19 = vadd.f32 %v762_v2, %v312_v8  ;;  %v314_v20 = vmul.f32 %v740_v0, %v275_v15  ;;  %v386_v22 = vld [vmem:[%s757_s9 + $0x20] sm:$0xff]  ;;  %v387_v24 = vld [vmem:[%s757_s9 + $0x28] sm:$0xff]  ;;  %v352_v26 = vadd.f32 %v762_v2, %v313_v13 }
  0x12   : > { %v424_v21 = vmul.f32 %v745_v1, %v385_v16  ;;  %v789_v25 = vld [vmem:[%s1039_s5] ss:$0 sm:$0xff]  ;;  %v315_v27 = vmul.f32 %v740_v0, %v276_v17  ;;  %v425_v28 = vmul.f32 %v745_v1, %v386_v22  ;;  %v316_v29 = vmul.f32 %v740_v0, %v277_v23  ;;  %v278_v30 = vld [vmem:[%s751_s30 + $0x30] sm:$0xff]  ;;  %v279_v40 = vld [vmem:[%s751_s30 + $0x38] sm:$0xff] }
  0x13   : > { %v388_v31 = vld [vmem:[%s757_s9 + $0x30] sm:$0xff]  ;;  %v453_v32 = vadd.f32 %v421_v7, %v350_v18  ;;  %v454_v33 = vadd.f32 %v422_v12, %v351_v19  ;;  %v353_v34 = vadd.f32 %v762_v2, %v314_v20  ;;  %v426_v35 = vmul.f32 %v745_v1, %v387_v24  ;;  %v389_v49 = vld [vmem:[%s757_s9 + $0x38] sm:$0xff]  ;;  %v280_v50 = vld [vmem:[%s751_s30 + $0x40] sm:$0xff] }
  0x14   : > { %v455_v36 = vadd.f32 %v423_v14, %v352_v26  ;;  %v354_v37 = vadd.f32 %v762_v2, %v315_v27  ;;  %v355_v38 = vadd.f32 %v762_v2, %v316_v29  ;;  %v317_v39 = vmul.f32 %v740_v0, %v278_v30  ;;  %v390_v55 = vld [vmem:[%s757_s9 + $0x40] sm:$0xff]  ;;  %v281_v60 = vld [vmem:[%s751_s30 + $0x48] sm:$0xff]  ;;  %v282_v5 = vld [vmem:[%s751_s30 + $0x50] sm:$0xff] }
  0x15   : > { %v492_v41 = vadd.f32 %v789_v25, %v453_v32  ;;  %v493_v42 = vadd.f32 %v789_v25, %v454_v33  ;;  %v456_v43 = vadd.f32 %v424_v21, %v353_v34  ;;  %v427_v44 = vmul.f32 %v745_v1, %v388_v31  ;;  %v391_v61 = vld [vmem:[%s757_s9 + $0x48] sm:$0xff]  ;;  %v392_v6 = vld [vmem:[%s757_s9 + $0x50] sm:$0xff]  ;;  %v283_v7 = vld [vmem:[%s751_s30 + $0x58] sm:$0xff] }
  0x16   : > { %v494_v45 = vadd.f32 %v789_v25, %v455_v36  ;;  %v457_v46 = vadd.f32 %v425_v28, %v354_v37  ;;  %v458_v47 = vadd.f32 %v426_v35, %v355_v38  ;;  %v356_v48 = vadd.f32 %v762_v2, %v317_v39  ;;  %v393_v12 = vld [vmem:[%s757_s9 + $0x58] sm:$0xff]  ;;  %v284_v17 = vld [vmem:[%s751_s30 + $0x60] sm:$0xff]  ;;  %v285_v23 = vld [vmem:[%s751_s30 + $0x68] sm:$0xff] }
  0x17   : > { %v524_v51 = vmax.f32 %v492_v41, 0.0  ;;  %v525_v52 = vmax.f32 %v493_v42, 0.0  ;;  %v495_v53 = vadd.f32 %v789_v25, %v456_v43  ;;  %v318_v54 = vmul.f32 %v740_v0, %v279_v40  ;;  %v394_v18 = vld [vmem:[%s757_s9 + $0x60] sm:$0xff]  ;;  %v395_v29 = vld [vmem:[%s757_s9 + $0x68] sm:$0xff]  ;;  %v286_v34 = vld [vmem:[%s751_s30 + $0x70] sm:$0xff] }
  0x18   : > { %v526_v56 = vmax.f32 %v494_v45, 0.0  ;;  %v496_v57 = vadd.f32 %v789_v25, %v457_v46  ;;  %v497_v58 = vadd.f32 %v789_v25, %v458_v47  ;;  %v459_v59 = vadd.f32 %v427_v44, %v356_v48  ;;  %v396_v39 = vld [vmem:[%s757_s9 + $0x70] sm:$0xff]  ;;  %v287_v44 = vld [vmem:[%s751_s30 + $0x78] sm:$0xff] }
  0x19   : > { %557 = vst.msk [vmem:[%s810_s16] sm:$0xff] %vm556_vm0, %v524_v51  ;;  %558 = vst.msk [vmem:[%s810_s16 + $0x8] sm:$0xff] %vm556_vm0, %v525_v52  ;;  %v527_v62 = vmax.f32 %v495_v53, 0.0  ;;  %v357_v63 = vadd.f32 %v762_v2, %v318_v54  ;;  %v428_v3 = vmul.f32 %v745_v1, %v389_v49  ;;  %v319_v4 = vmul.f32 %v740_v0, %v280_v50  ;;  %v397_v49 = vld [vmem:[%s757_s9 + $0x78] sm:$0xff]  ;;  %v288_v54 = vld [vmem:[%s751_s30 + $0x80] sm:$0xff] }
  0x1a   : > { %559 = vst.msk [vmem:[%s810_s16 + $0x10] sm:$0xff] %vm556_vm0, %v526_v56  ;;  %v528_v8 = vmax.f32 %v496_v57, 0.0  ;;  %v529_v9 = vmax.f32 %v497_v58, 0.0  ;;  %v498_v10 = vadd.f32 %v789_v25, %v459_v59  ;;  %v429_v11 = vmul.f32 %v745_v1, %v390_v55  ;;  %v398_v59 = vld [vmem:[%s757_s9 + $0x80] sm:$0xff] }
  0x1b   : > { %560 = vst.msk [vmem:[%s810_s16 + $0x18] sm:$0xff] %vm556_vm0, %v527_v62  ;;  %v460_v13 = vadd.f32 %v428_v3, %v357_v63  ;;  %v358_v14 = vadd.f32 %v762_v2, %v319_v4  ;;  %v320_v15 = vmul.f32 %v740_v0, %v281_v60  ;;  %v430_v16 = vmul.f32 %v745_v1, %v391_v61  ;;  %v289_v60 = vld [vmem:[%s751_s30 + $0x88] sm:$0xff] }
  0x1c   : > { %561 = vst.msk [vmem:[%s810_s16 + $0x20] sm:$0xff] %vm556_vm0, %v528_v8  ;;  %562 = vst.msk [vmem:[%s810_s16 + $0x28] sm:$0xff] %vm556_vm0, %v529_v9  ;;  %v530_v19 = vmax.f32 %v498_v10, 0.0  ;;  %v321_v20 = vmul.f32 %v740_v0, %v282_v5  ;;  %v431_v21 = vmul.f32 %v745_v1, %v392_v6  ;;  %v322_v22 = vmul.f32 %v740_v0, %v283_v7  ;;  %v399_v61 = vld [vmem:[%s757_s9 + $0x88] sm:$0xff]  ;;  %v290_v9 = vld [vmem:[%s751_s30 + $0x90] sm:$0xff] }
  0x1d   : > { %v499_v24 = vadd.f32 %v789_v25, %v460_v13  ;;  %v461_v26 = vadd.f32 %v429_v11, %v358_v14  ;;  %v359_v27 = vadd.f32 %v762_v2, %v320_v15  ;;  %v432_v28 = vmul.f32 %v745_v1, %v393_v12  ;;  %v400_v10 = vld [vmem:[%s757_s9 + $0x90] sm:$0xff]  ;;  %v291_v11 = vld [vmem:[%s751_s30 + $0x98] sm:$0xff] }
  0x1e   : > { %563 = vst.msk [vmem:[%s810_s16 + $0x30] sm:$0xff] %vm556_vm0, %v530_v19  ;;  %v360_v30 = vadd.f32 %v762_v2, %v321_v20  ;;  %v361_v31 = vadd.f32 %v762_v2, %v322_v22  ;;  %v323_v32 = vmul.f32 %v740_v0, %v284_v17  ;;  %v433_v33 = vmul.f32 %v745_v1, %v394_v18 }
  0x1f   : > { %v531_v35 = vmax.f32 %v499_v24, 0.0  ;;  %v500_v36 = vadd.f32 %v789_v25, %v461_v26  ;;  %v462_v37 = vadd.f32 %v430_v16, %v359_v27  ;;  %v324_v38 = vmul.f32 %v740_v0, %v285_v23  ;;  %v401_v16 = vld [vmem:[%s757_s9 + $0x98] sm:$0xff]  ;;  %v402_v27 = vld [vmem:[%s757_s9 + $0xa0] sm:$0xff] }
  0x20   : > { %v463_v40 = vadd.f32 %v431_v21, %v360_v30  ;;  %v464_v41 = vadd.f32 %v432_v28, %v361_v31  ;;  %v362_v42 = vadd.f32 %v762_v2, %v323_v32  ;;  %v434_v43 = vmul.f32 %v745_v1, %v395_v29  ;;  %v292_v21 = vld [vmem:[%s751_s30 + $0xa0] sm:$0xff]  ;;  %v293_v28 = vld [vmem:[%s751_s30 + $0xa8] sm:$0xff] }
  0x21   : > { %564 = vst.msk [vmem:[%s810_s16 + $0x38] sm:$0xff] %vm556_vm0, %v531_v35  ;;  %v532_v45 = vmax.f32 %v500_v36, 0.0  ;;  %v501_v46 = vadd.f32 %v789_v25, %v462_v37  ;;  %v363_v47 = vadd.f32 %v762_v2, %v324_v38  ;;  %v325_v48 = vmul.f32 %v740_v0, %v286_v34  ;;  %v403_v37 = vld [vmem:[%s757_s9 + $0xa8] sm:$0xff]  ;;  %v294_v38 = vld [vmem:[%s751_s30 + $0xb0] sm:$0xff] }
  0x22   : > { %v502_v50 = vadd.f32 %v789_v25, %v463_v40  ;;  %v503_v51 = vadd.f32 %v789_v25, %v464_v41  ;;  %v465_v52 = vadd.f32 %v433_v33, %v362_v42  ;;  %v435_v53 = vmul.f32 %v745_v1, %v396_v39 }
  0x23   : > { %565 = vst.msk [vmem:[%s810_s16 + $0x40] sm:$0xff] %vm556_vm0, %v532_v45  ;;  %v533_v55 = vmax.f32 %v501_v46, 0.0  ;;  %v466_v56 = vadd.f32 %v434_v43, %v363_v47  ;;  %v364_v57 = vadd.f32 %v762_v2, %v325_v48  ;;  %v326_v58 = vmul.f32 %v740_v0, %v287_v44  ;;  %v404_v47 = vld [vmem:[%s757_s9 + $0xb0] sm:$0xff]  ;;  %v295_v48 = vld [vmem:[%s751_s30 + $0xb8] sm:$0xff] }
  0x24   : > { %v534_v62 = vmax.f32 %v502_v50, 0.0  ;;  %v535_v63 = vmax.f32 %v503_v51, 0.0  ;;  %v504_v3 = vadd.f32 %v789_v25, %v465_v52  ;;  %v436_v4 = vmul.f32 %v745_v1, %v397_v49 }
  0x25   : > { %566 = vst.msk [vmem:[%s810_s16 + $0x48] sm:$0xff] %vm556_vm0, %v533_v55  ;;  %v505_v5 = vadd.f32 %v789_v25, %v466_v56  ;;  %v467_v6 = vadd.f32 %v435_v53, %v364_v57  ;;  %v365_v7 = vadd.f32 %v762_v2, %v326_v58  ;;  %v327_v8 = vmul.f32 %v740_v0, %v288_v54  ;;  %v405_v53 = vld [vmem:[%s757_s9 + $0xb8] sm:$0xff]  ;;  %v296_v58 = vld [vmem:[%s751_s30 + $0xc0] sm:$0xff] }
  0x26   : > { %567 = vst.msk [vmem:[%s810_s16 + $0x50] sm:$0xff] %vm556_vm0, %v534_v62  ;;  %568 = vst.msk [vmem:[%s810_s16 + $0x58] sm:$0xff] %vm556_vm0, %v535_v63  ;;  %v536_v12 = vmax.f32 %v504_v3, 0.0  ;;  %v437_v13 = vmul.f32 %v745_v1, %v398_v59  ;;  %v328_v14 = vmul.f32 %v740_v0, %v289_v60  ;;  %v438_v15 = vmul.f32 %v745_v1, %v399_v61  ;;  %v406_v63 = vld [vmem:[%s757_s9 + $0xc0] sm:$0xff]  ;;  %v297_v3 = vld [vmem:[%s751_s30 + $0xc8] sm:$0xff] }
  0x27   : > { %v537_v17 = vmax.f32 %v505_v5, 0.0  ;;  %v506_v18 = vadd.f32 %v789_v25, %v467_v6  ;;  %v468_v19 = vadd.f32 %v436_v4, %v365_v7  ;;  %v366_v20 = vadd.f32 %v762_v2, %v327_v8  ;;  %v407_v4 = vld [vmem:[%s757_s9 + $0xc8] sm:$0xff] }
  0x28   : > { %569 = vst.msk [vmem:[%s810_s16 + $0x60] sm:$0xff] %vm556_vm0, %v536_v12  ;;  %v367_v22 = vadd.f32 %v762_v2, %v328_v14  ;;  %v329_v23 = vmul.f32 %v740_v0, %v290_v9  ;;  %v439_v24 = vmul.f32 %v745_v1, %v400_v10  ;;  %v330_v26 = vmul.f32 %v740_v0, %v291_v11  ;;  %v408_v14 = vld [vmem:[%s757_s9 + $0xd0] sm:$0xff] }
  0x29   : > { %570 = vst.msk [vmem:[%s810_s16 + $0x68] sm:$0xff] %vm556_vm0, %v537_v17  ;;  %v538_v29 = vmax.f32 %v506_v18, 0.0  ;;  %v507_v30 = vadd.f32 %v789_v25, %v468_v19  ;;  %v469_v31 = vadd.f32 %v437_v13, %v366_v20  ;;  %v440_v32 = vmul.f32 %v745_v1, %v401_v16  ;;  %v298_v13 = vld [vmem:[%s751_s30 + $0xd0] sm:$0xff]  ;;  %v409_v20 = vld [vmem:[%s757_s9 + $0xd8] sm:$0xff] }
  0x2a   : > { %v470_v33 = vadd.f32 %v438_v15, %v367_v22  ;;  %v368_v34 = vadd.f32 %v762_v2, %v329_v23  ;;  %v369_v35 = vadd.f32 %v762_v2, %v330_v26  ;;  %v331_v36 = vmul.f32 %v740_v0, %v292_v21  ;;  %v299_v15 = vld [vmem:[%s751_s30 + $0xd8] sm:$0xff]  ;;  %v300_v26 = vld [vmem:[%s751_s30 + $0xe0] sm:$0xff] }
  0x2b   : > { %571 = vst.msk [vmem:[%s810_s16 + $0x70] sm:$0xff] %vm556_vm0, %v538_v29  ;;  %v539_v39 = vmax.f32 %v507_v30, 0.0  ;;  %v508_v40 = vadd.f32 %v789_v25, %v469_v31  ;;  %v441_v41 = vmul.f32 %v745_v1, %v402_v27  ;;  %v332_v42 = vmul.f32 %v740_v0, %v293_v28  ;;  %v410_v31 = vld [vmem:[%s757_s9 + $0xe0] sm:$0xff] }
  0x2c   : > { %v509_v43 = vadd.f32 %v789_v25, %v470_v33  ;;  %v471_v44 = vadd.f32 %v439_v24, %v368_v34  ;;  %v472_v45 = vadd.f32 %v440_v32, %v369_v35  ;;  %v370_v46 = vadd.f32 %v762_v2, %v331_v36  ;;  %v301_v32 = vld [vmem:[%s751_s30 + $0xe8] sm:$0xff] }
  0x2d   : > { %572 = vst.msk [vmem:[%s810_s16 + $0x78] sm:$0xff] %vm556_vm0, %v539_v39  ;;  %v540_v49 = vmax.f32 %v508_v40, 0.0  ;;  %v371_v50 = vadd.f32 %v762_v2, %v332_v42  ;;  %v442_v51 = vmul.f32 %v745_v1, %v403_v37  ;;  %v333_v52 = vmul.f32 %v740_v0, %v294_v38  ;;  %v302_v42 = vld [vmem:[%s751_s30 + $0xf0] sm:$0xff] }
  0x2e   : > { %v541_v54 = vmax.f32 %v509_v43, 0.0  ;;  %v510_v55 = vadd.f32 %v789_v25, %v471_v44  ;;  %v511_v56 = vadd.f32 %v789_v25, %v472_v45  ;;  %v473_v57 = vadd.f32 %v441_v41, %v370_v46  ;;  %v411_v41 = vld [vmem:[%s757_s9 + $0xe8] sm:$0xff] }
  0x2f   : > { %573 = vst.msk [vmem:[%s810_s16 + $0x80] sm:$0xff] %vm556_vm0, %v540_v49  ;;  %v474_v59 = vadd.f32 %v442_v51, %v371_v50  ;;  %v372_v60 = vadd.f32 %v762_v2, %v333_v52  ;;  %v443_v61 = vmul.f32 %v745_v1, %v404_v47  ;;  %v334_v62 = vmul.f32 %v740_v0, %v295_v48  ;;  %v412_v51 = vld [vmem:[%s757_s9 + $0xf0] sm:$0xff]  ;;  %v303_v52 = vld [vmem:[%s751_s30 + $0xf8] sm:$0xff] }
  0x30   : > { %574 = vst.msk [vmem:[%s810_s16 + $0x88] sm:$0xff] %vm556_vm0, %v541_v54  ;;  %v542_v5 = vmax.f32 %v510_v55, 0.0  ;;  %v543_v6 = vmax.f32 %v511_v56, 0.0  ;;  %v512_v7 = vadd.f32 %v789_v25, %v473_v57  ;;  %v444_v8 = vmul.f32 %v745_v1, %v405_v53  ;;  %v413_v57 = vld [vmem:[%s757_s9 + $0xf8] sm:$0xff] }
  0x31   : > { %v513_v9 = vadd.f32 %v789_v25, %v474_v59  ;;  %v475_v10 = vadd.f32 %v443_v61, %v372_v60  ;;  %v373_v11 = vadd.f32 %v762_v2, %v334_v62  ;;  %v335_v12 = vmul.f32 %v740_v0, %v296_v58 }
  0x32   : > { %575 = vst.msk [vmem:[%s810_s16 + $0x90] sm:$0xff] %vm556_vm0, %v542_v5  ;;  %576 = vst.msk [vmem:[%s810_s16 + $0x98] sm:$0xff] %vm556_vm0, %v543_v6  ;;  %v544_v16 = vmax.f32 %v512_v7, 0.0  ;;  %v445_v17 = vmul.f32 %v745_v1, %v406_v63  ;;  %v336_v18 = vmul.f32 %v740_v0, %v297_v3  ;;  %v446_v19 = vmul.f32 %v745_v1, %v407_v4 }
  0x33   : > { %v545_v21 = vmax.f32 %v513_v9, 0.0  ;;  %v514_v22 = vadd.f32 %v789_v25, %v475_v10  ;;  %v476_v23 = vadd.f32 %v444_v8, %v373_v11  ;;  %v374_v24 = vadd.f32 %v762_v2, %v335_v12 }
  0x34   : > { %577 = vst.msk [vmem:[%s810_s16 + $0xa0] sm:$0xff] %vm556_vm0, %v544_v16  ;;  %v375_v27 = vadd.f32 %v762_v2, %v336_v18  ;;  %v337_v28 = vmul.f32 %v740_v0, %v298_v13  ;;  %v447_v29 = vmul.f32 %v745_v1, %v408_v14  ;;  %v338_v30 = vmul.f32 %v740_v0, %v299_v15 }
  0x35   : > { %578 = vst.msk [vmem:[%s810_s16 + $0xa8] sm:$0xff] %vm556_vm0, %v545_v21  ;;  %v546_v33 = vmax.f32 %v514_v22, 0.0  ;;  %v515_v34 = vadd.f32 %v789_v25, %v476_v23  ;;  %v477_v35 = vadd.f32 %v445_v17, %v374_v24  ;;  %v448_v36 = vmul.f32 %v745_v1, %v409_v20 }
  0x36   : > { %v478_v37 = vadd.f32 %v446_v19, %v375_v27  ;;  %v376_v38 = vadd.f32 %v762_v2, %v337_v28  ;;  %v377_v39 = vadd.f32 %v762_v2, %v338_v30  ;;  %v339_v40 = vmul.f32 %v740_v0, %v300_v26 }
  0x37   : > { %579 = vst.msk [vmem:[%s810_s16 + $0xb0] sm:$0xff] %vm556_vm0, %v546_v33  ;;  %v547_v43 = vmax.f32 %v515_v34, 0.0  ;;  %v516_v44 = vadd.f32 %v789_v25, %v477_v35  ;;  %v449_v45 = vmul.f32 %v745_v1, %v410_v31  ;;  %v340_v46 = vmul.f32 %v740_v0, %v301_v32 }
  0x38   : > { %v517_v47 = vadd.f32 %v789_v25, %v478_v37  ;;  %v479_v48 = vadd.f32 %v447_v29, %v376_v38  ;;  %v480_v49 = vadd.f32 %v448_v36, %v377_v39  ;;  %v378_v50 = vadd.f32 %v762_v2, %v339_v40 }
  0x39   : > { %580 = vst.msk [vmem:[%s810_s16 + $0xb8] sm:$0xff] %vm556_vm0, %v547_v43  ;;  %v548_v53 = vmax.f32 %v516_v44, 0.0  ;;  %v379_v54 = vadd.f32 %v762_v2, %v340_v46  ;;  %v450_v55 = vmul.f32 %v745_v1, %v411_v41  ;;  %v341_v56 = vmul.f32 %v740_v0, %v302_v42 }
  0x3a   : > { %v549_v58 = vmax.f32 %v517_v47, 0.0  ;;  %v518_v59 = vadd.f32 %v789_v25, %v479_v48  ;;  %v519_v60 = vadd.f32 %v789_v25, %v480_v49  ;;  %v481_v61 = vadd.f32 %v449_v45, %v378_v50 }
  0x3b   : > { %581 = vst.msk [vmem:[%s810_s16 + $0xc0] sm:$0xff] %vm556_vm0, %v548_v53  ;;  %v482_v62 = vadd.f32 %v450_v55, %v379_v54  ;;  %v380_v63 = vadd.f32 %v762_v2, %v341_v56  ;;  %v451_v3 = vmul.f32 %v745_v1, %v412_v51  ;;  %v342_v4 = vmul.f32 %v740_v0, %v303_v52 }
  0x3c   : > { %582 = vst.msk [vmem:[%s810_s16 + $0xc8] sm:$0xff] %vm556_vm0, %v549_v58  ;;  %v550_v5 = vmax.f32 %v518_v59, 0.0  ;;  %v551_v6 = vmax.f32 %v519_v60, 0.0  ;;  %v520_v7 = vadd.f32 %v789_v25, %v481_v61  ;;  %v452_v8 = vmul.f32 %v745_v1, %v413_v57 }
  0x3d   : > { %v521_v9 = vadd.f32 %v789_v25, %v482_v62  ;;  %v483_v10 = vadd.f32 %v451_v3, %v380_v63  ;;  %v381_v11 = vadd.f32 %v762_v2, %v342_v4 }
  0x3e   : > { %583 = vst.msk [vmem:[%s810_s16 + $0xd0] sm:$0xff] %vm556_vm0, %v550_v5  ;;  %584 = vst.msk [vmem:[%s810_s16 + $0xd8] sm:$0xff] %vm556_vm0, %v551_v6  ;;  %v552_v0 = vmax.f32 %v520_v7, 0.0 }
  0x3f   : > { %v553_v12 = vmax.f32 %v521_v9, 0.0  ;;  %v522_v13 = vadd.f32 %v789_v25, %v483_v10  ;;  %v484_v14 = vadd.f32 %v452_v8, %v381_v11 }
  0x40   : > { %585 = vst.msk [vmem:[%s810_s16 + $0xe0] sm:$0xff] %vm556_vm0, %v552_v0 }
  0x41   : > { %586 = vst.msk [vmem:[%s810_s16 + $0xe8] sm:$0xff] %vm556_vm0, %v553_v12  ;;  %v554_v1 = vmax.f32 %v522_v13, 0.0  ;;  %v523_v15 = vadd.f32 %v789_v25, %v484_v14 }
  0x43   : > { %587 = vst.msk [vmem:[%s810_s16 + $0xf0] sm:$0xff] %vm556_vm0, %v554_v1  ;;  %v555_v16 = vmax.f32 %v523_v15, 0.0 }
  0x45   : > { %588 = vst.msk [vmem:[%s810_s16 + $0xf8] sm:$0xff] %vm556_vm0, %v555_v16 }
  0x46 PF: > { %s16_s21 = sadd.s32 1, %s690_s21  }
  0x47   : > { %p13_p4 = scmp.ge.s32.totalorder %s16_s21, 4  }
  0x49   :  { %15 = sbr.rel (!%p13_p4) target bundleno = 1 (0x1), region = 77 }

// kernel: basic_block_forward.4
= control target key start
LH: loop header
LB: loop body
LE: loop exit
PB: predicated region body
PF: predicated region fallthrough
CT: control target
= control target key end

     0   :  { %s2126_s21 = smov 0   ;;  %s2977_s0 = inlined_call_operand.vmem [shape: f32[2,16,16,4], index: 0, kind: input, shape index: {}]   ;;  %s2978_s1 = inlined_call_operand.vmem [shape: f32[1,4], index: 1, kind: input, shape index: {}]   ;;  %s2979_s2 = inlined_call_operand.vmem [shape: f32[1,4], index: 2, kind: input, shape index: {}]   ;;  %s2980_s3 = inlined_call_operand.vmem [shape: bf16[36,4], index: 3, kind: input, shape index: {}]   ;;  %s2981_s4 = inlined_call_operand.vmem [shape: f32[2,16,16,4], index: 4, kind: output, shape index: {0}]   ;;  %s2982_s5 = inlined_call_operand.vmem [shape: f32[2,1,4], index: 5, kind: output, shape index: {1}]   ;;  %s2983_s6 = inlined_call_operand.vmem [shape: f32[2,1,4], index: 6, kind: output, shape index: {2}]  }
   0x1 LB: > { %s1953_s22 = sadd.s32 4294967295, %s2080_s21   ;;  %p1957_p0 = scmp.ge.s32.totalorder %s2080_s21, 1  ;;  %s2080_s21 = sphi %s2126_s21, %s17_s21  }
   0x2   : > { %p217_p1 = scmp.lt.s32.totalorder %s2080_s21, 3 }
   0x4   : > { %p218_p2 = pnand %p1957_p0, %p217_p1 }
   0x5   : > { %p253_p3 = scmp.lt.s32.totalorder (!%p218_p2), %s1953_s22, 1  ;;  %s2083_s7 = smov (!%p218_p2), 8  }
   0x6   : > { %221 = sbr.rel (%p218_p2) target bundleno = 614 (0x266), region = 36  ;;  %s2084_s8 = smov (!%p218_p2), 4  }
   0x7   : > { %s2085_s9 = smov (!%p218_p2), 12   ;;  %s2086_s10 = smov (!%p218_p2), 24  }
   0x8   : > { %s2087_s11 = smov (!%p218_p2), 20   ;;  %s2088_s12 = smov (!%p218_p2), 16  }
   0x9   : > { %s2089_s13 = smov (!%p218_p2), 28   ;;  %s2090_s14 = smov (!%p218_p2), 32  }
   0xb   : > { %vm445_vm0 = vcmask 1040384   ;;  %v2082_v0 = vmov 0.0   ;;  %s2985_s22 = smov (!%p253_p3, %s1953_s22), 1  ;;  %vm871_vm1 = vcmask 1046528   ;;  %v2144_v6 = vld [vmem:[%s2978_s1] ss:$0 sm:$0xff] }
   0xc   : > { %v446_v1 = vrot.slane %v2082_v0, 7  ;;  %s1985_s23 = sshll.u32 %s2985_s22, 8  ;;  %v2159_v11 = vld [vmem:[%s2979_s2] ss:$0 sm:$0xff]  ;;  %vm614_vm2 = vsmask.f32 7424 }
   0xd   : > { %s2154_s28 = scalar_lea.vmem %s2977_s0, %s1985_s23  ;;  %vm1478_vm3 = vcmask 1041408   ;;  %vm1161_vm4 = vcmask 31744   ;;  %vm1194_vm5 = vcmask 64512   ;;  %vm1227_vm6 = vcmask 97280   ;;  %s2814_s30 = scalar_lea.vmem %s2981_s4, %s1985_s23 }
   0xe   : > { %v546_v2 = vsel %vm445_vm0, 0.0, %v446_v1  ;;  %v563_v3 = vsel %vm445_vm0, %v446_v1, 0.0  ;;  %v272_v13 = vld [vmem:[%s2154_s28 + $0x10] sm:$0xff]  ;;  %v273_v14 = vld [vmem:[%s2154_s28 + $0x18] sm:$0xff]  ;;  %v270_v15 = vld [vmem:[%s2154_s28] sm:$0xff]  ;;  %vm1260_vm7 = vcmask 130048  }
   0xf   : > { %v2138_v4 = vpack.c.bf16 %v446_v1, %v546_v2  ;;  %v581_v5 = vpack.c.bf16 %v563_v3, %v563_v3  ;;  %v311_v18 = vmul.f32 %v2144_v6, %v272_v13  ;;  %v312_v19 = vmul.f32 %v2144_v6, %v273_v14  ;;  %v271_v20 = vld [vmem:[%s2154_s28 + $0x8] sm:$0xff]  ;;  %v274_v21 = vld [vmem:[%s2154_s28 + $0x20] sm:$0xff]  ;;  %v276_v55 = vld [vmem:[%s2154_s28 + $0x30] sm:$0xff] }
  0x10   : > { %v275_v22 = vld [vmem:[%s2154_s28 + $0x28] sm:$0xff]  ;;  %v309_v24 = vmul.f32 %v2144_v6, %v270_v15  ;;  %v310_v25 = vmul.f32 %v2144_v6, %v271_v20  ;;  %v313_v26 = vmul.f32 %v2144_v6, %v274_v21  ;;  %v277_v56 = vld [vmem:[%s2154_s28 + $0x38] sm:$0xff]  ;;  %v315_v1 = vmul.f32 %v2144_v6, %v276_v55 }
  0x11   : > { %v872_v7 = vrot.slane %v2138_v4, 1  ;;  %v873_v8 = vrot.slane %v581_v5, 1  ;;  %v616_v9 = vshrl.u32 %v2138_v4, 16  ;;  %v618_v10 = vshll.u32 %v2138_v4, 16 }
  0x12   : > { %v623_v12 = vshll.u32 %v581_v5, 16  ;;  %v350_v28 = vadd.f32 %v2159_v11, %v311_v18  ;;  %v351_v29 = vadd.f32 %v2159_v11, %v312_v19  ;;  %v314_v30 = vmul.f32 %v2144_v6, %v275_v22 }
  0x13   : > { %v2165_v16 = vsel %vm871_vm1, %v872_v7, %v873_v8  ;;  %v620_v17 = vrot.slane %v618_v10, 1  ;;  %v348_v31 = vadd.f32 %v2159_v11, %v309_v24  ;;  %v349_v32 = vadd.f32 %v2159_v11, %v310_v25 }
  0x14   : > { %920 = vrot.lane.b32.xlu1 %v2165_v16, %s2083_s7  ;;  %v625_v23 = vrot.slane %v623_v12, 1  ;;  %v352_v33 = vadd.f32 %v2159_v11, %v313_v26  ;;  %v382_v35 = vmax.f32 %v350_v28, 0.0  ;;  %v383_v36 = vmax.f32 %v351_v29, 0.0 }
  0x15   : > { %v621_v27 = vor.u32 %v620_v17, %v616_v9  ;;  %v353_v37 = vadd.f32 %v2159_v11, %v314_v30  ;;  %v380_v38 = vmax.f32 %v348_v31, 0.0  ;;  %v381_v39 = vmax.f32 %v349_v32, 0.0 }
  0x16   : > { %v384_v40 = vmax.f32 %v352_v33, 0.0  ;;  %v451_v41 = vrot.slane %v382_v35, 7  ;;  %v452_v42 = vrot.slane %v383_v36, 7  ;;  %v316_v2 = vmul.f32 %v2144_v6, %v277_v56  ;;  %v278_v35 = vld [vmem:[%s2154_s28 + $0x40] sm:$0xff]  ;;  %v279_v36 = vld [vmem:[%s2154_s28 + $0x48] sm:$0xff] }
  0x17   : > { %v2184_v34 = vsel %vm614_vm2, %v621_v27, %v625_v23  ;;  %v385_v43 = vmax.f32 %v353_v37, 0.0  ;;  %v448_v44 = vrot.slane %v380_v38, 7  ;;  %v449_v45 = vrot.slane %v381_v39, 7 }
  0x18   : > { %807 = vrot.lane.b32.xlu0 %v2184_v34, %s2084_s8  ;;  %v454_v46 = vrot.slane %v384_v40, 7  ;;  %v453_v47 = vsel %vm445_vm0, %v451_v41, %v452_v42  ;;  %v548_v48 = vsel %vm445_vm0, 0.0, %v451_v41  ;;  %v565_v50 = vsel %vm445_vm0, %v452_v42, 0.0 }
  0x19   : > { %v455_v49 = vrot.slane %v385_v43, 7  ;;  %v2192_v51 = vpack.c.bf16 %v453_v47, %v548_v48  ;;  %v450_v52 = vsel %vm445_vm0, %v448_v44, %v449_v45  ;;  %v547_v53 = vsel %vm445_vm0, 0.0, %v448_v44 }
  0x1a   : > { %v549_v54 = vsel %vm445_vm0, 0.0, %v454_v46  ;;  %v2199_v57 = vpack.c.bf16 %v450_v52, %v547_v53  ;;  %v564_v59 = vsel %vm445_vm0, %v449_v45, 0.0  ;;  %v585_v62 = vpack.c.bf16 %v565_v50, %v565_v50 }
  0x1b   : > { %v456_v58 = vsel %vm445_vm0, %v454_v46, %v455_v49  ;;  %955 = vrot.lane.b32.xlu1 %v2192_v51, %s2085_s9  ;;  %v583_v61 = vpack.c.bf16 %v564_v59, %v564_v59  ;;  %v642_v8 = vshll.u32 %v2192_v51, 16  ;;  %v566_v10 = vsel %vm445_vm0, %v455_v49, 0.0 }
  0x1c   : > { %v2205_v60 = vpack.c.bf16 %v456_v58, %v549_v54  ;;  %953 = vrot.lane.b32.xlu0 %v2199_v57, %s2085_s9  ;;  %v875_v63 = vrot.slane %v2199_v57, 1  ;;  %v630_v0 = vshll.u32 %v2199_v57, 16  ;;  %v628_v5 = vshrl.u32 %v2199_v57, 16 }
  0x1d   : > { %v876_v3 = vrot.slane %v583_v61, 1  ;;  %v635_v7 = vshll.u32 %v583_v61, 16  ;;  %v878_v12 = vrot.slane %v2192_v51, 1  ;;  %v879_v13 = vrot.slane %v585_v62, 1 }
  0x1e   : > { %v632_v9 = vrot.slane %v630_v0, 1  ;;  %v640_v14 = vshrl.u32 %v2192_v51, 16  ;;  %v647_v15 = vshll.u32 %v585_v62, 16  ;;  %v644_v18 = vrot.slane %v642_v8, 1 }
  0x1f   : > { %1067 = vrot.lane.b32.xlu1 %v2205_v60, %s2086_s10  ;;  %v877_v17 = vsel %vm871_vm1, %v875_v63, %v876_v3  ;;  %v587_v19 = vpack.c.bf16 %v566_v10, %v566_v10  ;;  %v654_v20 = vshll.u32 %v2205_v60, 16  ;;  %v637_v22 = vrot.slane %v635_v7, 1  ;;  %v281_v7 = vld [vmem:[%s2154_s28 + $0x58] sm:$0xff]  ;;  %v2069_v8 = vld [vmem:[%s2980_s3 + $0x10] ss:$0 sps:$4 sm:$0x33]  }
  0x20   : > { %1065 = vrot.lane.b32.xlu0 %v2192_v51, %s2086_s10  ;;  %v633_v21 = vor.u32 %v632_v9, %v628_v5  ;;  %v354_v23 = vadd.f32 %v2159_v11, %v315_v1  ;;  %v355_v24 = vadd.f32 %v2159_v11, %v316_v2  ;;  %v880_v25 = vsel %vm871_vm1, %v878_v12, %v879_v13  ;;  %v280_v5 = vld [vmem:[%s2154_s28 + $0x50] sm:$0xff] }
  0x21   : > { %v652_v26 = vshrl.u32 %v2205_v60, 16  ;;  %v645_v27 = vor.u32 %v644_v18, %v640_v14  ;;  %v649_v28 = vrot.slane %v647_v15, 1  ;;  %v656_v29 = vrot.slane %v654_v20, 1  ;;  %2050 = vmatprep.subr.msk.bf16.mxu0 %vm1478_vm3, %v2069_v8  ;;  %2051 = vmatprep.subr.msk.bf16.mxu1 %vm1478_vm3, %v2069_v8 }
  0x22   : > { %v659_v30 = vshll.u32 %v587_v19, 16  ;;  %v638_v31 = vsel %vm614_vm2, %v633_v21, %v637_v22  ;;  %v386_v32 = vmax.f32 %v354_v23, 0.0  ;;  %v387_v33 = vmax.f32 %v355_v24, 0.0 }
  0x23   : > { %922 = vrot.lane.b32.xlu1 %v877_v17, %s2083_s7  ;;  %v650_v37 = vsel %vm614_vm2, %v645_v27, %v649_v28  ;;  %v657_v38 = vor.u32 %v656_v29, %v652_v26  ;;  %v317_v42 = vmul.f32 %v2144_v6, %v278_v35  ;;  %v318_v43 = vmul.f32 %v2144_v6, %v279_v36  ;;  %v2071_v26 = vld [vmem:[%s2980_s3] sm:$0xff]   ;;  %v283_v35 = vld [vmem:[%s2154_s28 + $0x68] sm:$0xff] }
  0x24   : > { %1033 = vrot.lane.b32.xlu0 %v877_v17, %s2087_s11  ;;  %v661_v39 = vrot.slane %v659_v30, 1  ;;  %v457_v40 = vrot.slane %v386_v32, 7  ;;  %v458_v41 = vrot.slane %v387_v33, 7  ;;  %v881_v49 = vrot.slane %v2205_v60, 1  ;;  %v2070_v17 = vld [vmem:[%s2980_s3 + $0x8] sm:$0xff]   ;;  %v282_v33 = vld [vmem:[%s2154_s28 + $0x60] sm:$0xff] }
  0x25   : > { %v356_v47 = vadd.f32 %v2159_v11, %v317_v42  ;;  %v357_v48 = vadd.f32 %v2159_v11, %v318_v43  ;;  %v882_v52 = vrot.slane %v587_v19, 1  ;;  %v319_v14 = vmul.f32 %v2144_v6, %v280_v5  ;;  %v285_v5 = vld [vmem:[%s2154_s28 + $0x78] sm:$0xff] }
  0x26   : > { %v662_v44 = vsel %vm614_vm2, %v657_v38, %v661_v39  ;;  %v459_v45 = vsel %vm445_vm0, %v457_v40, %v458_v41  ;;  %v550_v46 = vsel %vm445_vm0, 0.0, %v457_v40  ;;  %v567_v53 = vsel %vm445_vm0, %v458_v41, 0.0 }
  0x27   : > { %1035 = vrot.lane.b32.xlu1 %v880_v25, %s2087_s11  ;;  %v2248_v50 = vpack.c.bf16 %v459_v45, %v550_v46  ;;  %v388_v54 = vmax.f32 %v356_v47, 0.0  ;;  %v389_v55 = vmax.f32 %v357_v48, 0.0  ;;  %v589_v56 = vpack.c.bf16 %v567_v53, %v567_v53 }
  0x28   : > { %809 = vrot.lane.b32.xlu0 %v638_v31, %s2084_s8  ;;  %v883_v59 = vsel %vm871_vm1, %v881_v49, %v882_v52  ;;  %v320_v15 = vmul.f32 %v2144_v6, %v281_v7  ;;  %v1480_v19 = vsel %vm1478_vm3, %v2069_v8, 0  ;;  %v358_v24 = vadd.f32 %v2159_v11, %v319_v14 }
  0x29   : > { %v666_v58 = vshll.u32 %v2248_v50, 16  ;;  %v460_v61 = vrot.slane %v388_v54, 7  ;;  %v461_v62 = vrot.slane %v389_v55, 7  ;;  %v664_v63 = vshrl.u32 %v2248_v50, 16  ;;  %2007 = vmatpush3.bf16.msra.mxu0 %v1480_v19  ;;  %2047 = vmatpush3.bf16.msra.mxu1 %v1480_v19 }
  0x2a   : > { %v671_v1 = vshll.u32 %v589_v56, 16  ;;  %v884_v18 = vrot.slane %v2248_v50, 1  ;;  %v885_v21 = vrot.slane %v589_v56, 1  ;;  %2008 = vmatprep.subr.bf16.mxu0 %v2070_v17  ;;  %2045 = vmatprep.subr.bf16.mxu1 %v2070_v17  ;;  %v321_v40 = vmul.f32 %v2144_v6, %v282_v33 }
  0x2b   : > { %999 = vrot.lane.b32.xlu1 %v650_v37, %s2088_s12  ;;  %v668_v0 = vrot.slane %v666_v58, 1  ;;  %v462_v2 = vsel %vm445_vm0, %v460_v61, %v461_v62  ;;  %v551_v3 = vsel %vm445_vm0, 0.0, %v460_v61  ;;  %v568_v13 = vsel %vm445_vm0, %v461_v62, 0.0 }
  0x2c   : > { %997 = vrot.lane.b32.xlu0 %v638_v31, %s2088_s12  ;;  %v673_v10 = vrot.slane %v671_v1, 1  ;;  %v2267_v12 = vpack.c.bf16 %v462_v2, %v551_v3  ;;  %v591_v22 = vpack.c.bf16 %v568_v13, %v568_v13  ;;  %v886_v27 = vsel %vm871_vm1, %v884_v18, %v885_v21  ;;  %v284_v3 = vld [vmem:[%s2154_s28 + $0x70] sm:$0xff] }
  0x2d   : > { %v669_v9 = vor.u32 %v668_v0, %v664_v63  ;;  %2009 = vmatpush3.bf16.msra.mxu0 %v2070_v17  ;;  %v390_v31 = vmax.f32 %v358_v24, 0.0  ;;  %2048 = vmatpush3.bf16.msra.mxu1 %v2070_v17  ;;  %v322_v41 = vmul.f32 %v2144_v6, %v283_v35  ;;  %v360_v45 = vadd.f32 %v2159_v11, %v321_v40 }
  0x2e   : > { %v678_v23 = vshll.u32 %v2267_v12, 16  ;;  %v676_v28 = vshrl.u32 %v2267_v12, 16  ;;  %v683_v30 = vshll.u32 %v591_v22, 16  ;;  %2010 = vmatprep.subr.bf16.mxu0 %v2071_v26  ;;  %2046 = vmatprep.subr.bf16.mxu1 %v2071_v26  ;;  %v887_v47 = vrot.slane %v2267_v12, 1 }
  0x2f   : > { %1099 = vrot.lane.b32.xlu1 %v662_v44, %s2089_s13  ;;  %v674_v20 = vsel %vm614_vm2, %v669_v9, %v673_v10  ;;  %v463_v38 = vrot.slane %v390_v31, 7  ;;  %v361_v46 = vadd.f32 %v2159_v11, %v322_v41  ;;  %v888_v49 = vrot.slane %v591_v22, 1 }
  0x30   : > { %1097 = vrot.lane.b32.xlu0 %v650_v37, %s2089_s13  ;;  %v680_v29 = vrot.slane %v678_v23, 1  ;;  %v392_v53 = vmax.f32 %v360_v45, 0.0  ;;  %v323_v13 = vmul.f32 %v2144_v6, %v284_v3  ;;  %v324_v14 = vmul.f32 %v2144_v6, %v285_v5 }
  0x31   : > { %2011 = vmatpush3.bf16.msra.mxu0 %v2071_v26  ;;  %2049 = vmatpush3.bf16.msra.mxu1 %v2071_v26  ;;  %v393_v54 = vmax.f32 %v361_v46, 0.0  ;;  %v889_v58 = vsel %vm871_vm1, %v887_v47, %v888_v49  ;;  %vm1293_vm8 = vcmask 162816   ;;  %vm1326_vm9 = vcmask 195584  }
  0x32   : > { %v681_v36 = vor.u32 %v680_v29, %v676_v28  ;;  %v362_v21 = vadd.f32 %v2159_v11, %v323_v13  ;;  %v363_v22 = vadd.f32 %v2159_v11, %v324_v14  ;;  %v286_v29 = vld [vmem:[%s2154_s28 + $0x80] sm:$0xff]  ;;  %vm1359_vm10 = vcmask 228352  }
  0x33   : > { %811 = vrot.lane.b32.xlu1 %v650_v37, %s2084_s8  ;;  %v685_v37 = vrot.slane %v683_v30, 1  ;;  %v467_v61 = vrot.slane %v393_v54, 7  ;;  %v287_v30 = vld [vmem:[%s2154_s28 + $0x88] sm:$0xff]  ;;  %vm1392_vm11 = vcmask 261120   ;;  %vm1445_vm12 = vcmask 293888  }
  0x34   : > { %1129 = vrot.lane.b32.xlu0 %v880_v25, %s2090_s14  ;;  %v395_v28 = vmax.f32 %v363_v22, 0.0  ;;  %vm1744_vm13 = vcmask 24576  }
  0x35   : > { %v686_v42 = vsel %vm614_vm2, %v681_v36, %v685_v37  ;;  %v570_v10 = vsel %vm445_vm0, %v467_v61, 0.0  ;;  %v325_v36 = vmul.f32 %v2144_v6, %v286_v29  ;;  %v326_v37 = vmul.f32 %v2144_v6, %v287_v30 }
  0x36   : > { %v595_v19 = vpack.c.bf16 %v570_v10, %v570_v10  ;;  %v470_v35 = vrot.slane %v395_v28, 7  ;;  %v291_v28 = vld [vmem:[%s2154_s28 + $0xa8] sm:$0xff] }
  0x37   : > { %813 = vrot.lane.b32.xlu1 %v662_v44, %s2084_s8  ;;  %v364_v41 = vadd.f32 %v2159_v11, %v325_v36 }
  0x38   : > { %1131 = vrot.lane.b32.xlu0 %v883_v59, %s2090_s14  ;;  %v707_v26 = vshll.u32 %v595_v19, 16  ;;  %v894_v45 = vrot.slane %v595_v19, 1  ;;  %v571_v46 = vsel %vm445_vm0, %v470_v35, 0.0 }
  0x39   : > { %v396_v47 = vmax.f32 %v364_v41, 0.0 }
  0x3b   : > { %926 = vrot.lane.b32.xlu1 %v883_v59, %s2083_s7 }
  0x3c   : > { %924 = vrot.lane.b32.xlu0 %v880_v25, %s2083_s7  ;;  %v359_v25 = vadd.f32 %v2159_v11, %v320_v15 }
  0x3e   : > { %v391_v32 = vmax.f32 %v359_v25, 0.0 }
  0x3f   : > { %959 = vrot.lane.b32.xlu1 %v2248_v50, %s2085_s9 }
  0x40   : > { %957 = vrot.lane.b32.xlu0 %v2205_v60, %s2085_s9  ;;  %v464_v39 = vrot.slane %v391_v32, 7  ;;  %v709_v32 = vrot.slane %v707_v26, 1 }
  0x42   : > { %v465_v43 = vsel %vm445_vm0, %v463_v38, %v464_v39  ;;  %v569_v52 = vsel %vm445_vm0, %v464_v39, 0.0 }
  0x43   : > { %1003 = vrot.lane.b32.xlu1 %v674_v20, %s2088_s12  ;;  %v593_v55 = vpack.c.bf16 %v569_v52, %v569_v52  ;;  %v597_v52 = vpack.c.bf16 %v571_v46, %v571_v46 }
  0x44   : > { %1001 = vrot.lane.b32.xlu0 %v662_v44, %s2088_s12  ;;  %v552_v44 = vsel %vm445_vm0, 0.0, %v463_v38 }
  0x45   : > { %v2309_v48 = vpack.c.bf16 %v465_v43, %v552_v44  ;;  %v695_v0 = vshll.u32 %v593_v55, 16  ;;  %v891_v18 = vrot.slane %v593_v55, 1  ;;  %v472_v55 = vrot.slane %v396_v47, 7 }
  0x47   : > { %1039 = vrot.lane.b32.xlu1 %v886_v27, %s2087_s11  ;;  %v690_v56 = vshll.u32 %v2309_v48, 16  ;;  %v688_v62 = vshrl.u32 %v2309_v48, 16  ;;  %v697_v8 = vrot.slane %v695_v0, 1  ;;  %v890_v15 = vrot.slane %v2309_v48, 1  ;;  %v288_v0 = vld [vmem:[%s2154_s28 + $0x90] sm:$0xff] }
  0x48   : > { %1037 = vrot.lane.b32.xlu0 %v883_v59, %s2087_s11  ;;  %v466_v59 = vrot.slane %v392_v53, 7 }
  0x49   : > { %v692_v63 = vrot.slane %v690_v56, 1  ;;  %v892_v23 = vsel %vm871_vm1, %v890_v15, %v891_v18  ;;  %v897_v15 = vrot.slane %v597_v52, 1 }
  0x4a   : > { %v468_v1 = vsel %vm445_vm0, %v466_v59, %v467_v61  ;;  %v553_v2 = vsel %vm445_vm0, 0.0, %v466_v59  ;;  %v719_v61 = vshll.u32 %v597_v52, 16 }
  0x4b   : > { %1071 = vrot.lane.b32.xlu1 %v2267_v12, %s2086_s10  ;;  %v693_v7 = vor.u32 %v692_v63, %v688_v62  ;;  %v2325_v9 = vpack.c.bf16 %v468_v1, %v553_v2  ;;  %v555_v63 = vsel %vm445_vm0, 0.0, %v472_v55  ;;  %v289_v1 = vld [vmem:[%s2154_s28 + $0x98] sm:$0xff] }
  0x4c   : > { %1069 = vrot.lane.b32.xlu0 %v2248_v50, %s2086_s10  ;;  %v721_v3 = vrot.slane %v719_v61, 1  ;;  %v328_v10 = vmul.f32 %v2144_v6, %v289_v1 }
  0x4d   : > { %v698_v17 = vsel %vm614_vm2, %v693_v7, %v697_v8  ;;  %v700_v24 = vshrl.u32 %v2325_v9, 16  ;;  %v893_v43 = vrot.slane %v2325_v9, 1  ;;  %v327_v8 = vmul.f32 %v2144_v6, %v288_v0 }
  0x4f   : > { %1103 = vrot.lane.b32.xlu1 %v686_v42, %s2089_s13  ;;  %v895_v54 = vsel %vm871_vm1, %v893_v43, %v894_v45  ;;  %v366_v19 = vadd.f32 %v2159_v11, %v327_v8 }
  0x50   : > { %1101 = vrot.lane.b32.xlu0 %v674_v20, %s2089_s13 }
  0x53   : > { %815 = vrot.lane.b32.xlu1 %v674_v20, %s2084_s8  ;;  %v702_v20 = vshll.u32 %v2325_v9, 16 }
  0x54   : > { %1133 = vrot.lane.b32.xlu0 %v886_v27, %s2090_s14 }
  0x55   : > { %v704_v25 = vrot.slane %v702_v20, 1  ;;  %v367_v20 = vadd.f32 %v2159_v11, %v328_v10 }
  0x57   : > { %817 = vrot.lane.b32.xlu1 %v686_v42, %s2084_s8  ;;  %v705_v31 = vor.u32 %v704_v25, %v700_v24  ;;  %v398_v25 = vmax.f32 %v366_v19, 0.0  ;;  %v399_v26 = vmax.f32 %v367_v20, 0.0 }
  0x58   : > { %1135 = vrot.lane.b32.xlu0 %v889_v58, %s2090_s14 }
  0x59   : > { %v710_v38 = vsel %vm614_vm2, %v705_v31, %v709_v32 }
  0x5b   : > { %930 = vrot.lane.b32.xlu1 %v889_v58, %s2083_s7 }
  0x5c   : > { %928 = vrot.lane.b32.xlu0 %v886_v27, %s2083_s7  ;;  %v394_v27 = vmax.f32 %v362_v21, 0.0 }
  0x5e   : > { %v469_v33 = vrot.slane %v394_v27, 7  ;;  %v290_v27 = vld [vmem:[%s2154_s28 + $0xa0] sm:$0xff] }
  0x5f   : > { %963 = vrot.lane.b32.xlu1 %v2309_v48, %s2085_s9  ;;  %v329_v36 = vmul.f32 %v2144_v6, %v290_v27 }
  0x60   : > { %961 = vrot.lane.b32.xlu0 %v2267_v12, %s2085_s9  ;;  %v471_v39 = vsel %vm445_vm0, %v469_v33, %v470_v35  ;;  %v554_v40 = vsel %vm445_vm0, 0.0, %v469_v33  ;;  %v475_v33 = vrot.slane %v398_v25, 7  ;;  %v476_v35 = vrot.slane %v399_v26, 7 }
  0x61   : > { %v2361_v44 = vpack.c.bf16 %v471_v39, %v554_v40 }
  0x62   : > { %v477_v40 = vsel %vm445_vm0, %v475_v33, %v476_v35  ;;  %v556_v41 = vsel %vm445_vm0, 0.0, %v475_v33 }
  0x63   : > { %1007 = vrot.lane.b32.xlu1 %v698_v17, %s2088_s12  ;;  %v714_v53 = vshll.u32 %v2361_v44, 16  ;;  %v896_v13 = vrot.slane %v2361_v44, 1  ;;  %v2419_v47 = vpack.c.bf16 %v477_v40, %v556_v41 }
  0x64   : > { %1005 = vrot.lane.b32.xlu0 %v686_v42, %s2088_s12  ;;  %v365_v42 = vadd.f32 %v2159_v11, %v326_v37  ;;  %v330_v37 = vmul.f32 %v2144_v6, %v291_v28 }
  0x65   : > { %v716_v59 = vrot.slane %v714_v53, 1  ;;  %v2394_v21 = vsel %vm871_vm1, %v896_v13, %v897_v15  ;;  %v573_v53 = vsel %vm445_vm0, %v476_v35, 0.0 }
  0x66   : > { %v397_v49 = vmax.f32 %v365_v42, 0.0  ;;  %v368_v42 = vadd.f32 %v2159_v11, %v329_v36  ;;  %v369_v43 = vadd.f32 %v2159_v11, %v330_v37 }
  0x67   : > { %1043 = vrot.lane.b32.xlu1 %v892_v23, %s2087_s11 }
  0x68   : > { %1041 = vrot.lane.b32.xlu0 %v889_v58, %s2087_s11  ;;  %v473_v56 = vrot.slane %v397_v49, 7  ;;  %v712_v58 = vshrl.u32 %v2361_v44, 16 }
  0x6a   : > { %v474_v62 = vsel %vm445_vm0, %v472_v55, %v473_v56  ;;  %v717_v2 = vor.u32 %v716_v59, %v712_v58  ;;  %v572_v7 = vsel %vm445_vm0, %v473_v56, 0.0  ;;  %v401_v55 = vmax.f32 %v369_v43, 0.0 }
  0x6b   : > { %1075 = vrot.lane.b32.xlu1 %v2325_v9, %s2086_s10  ;;  %v2377_v5 = vpack.c.bf16 %v474_v62, %v555_v63  ;;  %v601_v58 = vpack.c.bf16 %v573_v53, %v573_v53  ;;  %v738_v59 = vshll.u32 %v2419_v47, 16 }
  0x6c   : > { %1073 = vrot.lane.b32.xlu0 %v2309_v48, %s2086_s10  ;;  %v722_v14 = vsel %vm614_vm2, %v717_v2, %v721_v3  ;;  %v479_v0 = vrot.slane %v401_v55, 7  ;;  %v736_v2 = vshrl.u32 %v2419_v47, 16 }
  0x6d   : > { %v726_v18 = vshll.u32 %v2377_v5, 16  ;;  %v724_v22 = vshrl.u32 %v2377_v5, 16  ;;  %v899_v46 = vrot.slane %v2377_v5, 1  ;;  %v740_v3 = vrot.slane %v738_v59, 1 }
  0x6e   : > { %v574_v27 = vsel %vm445_vm0, %v479_v0, 0.0  ;;  %v903_v33 = vrot.slane %v601_v58, 1 }
  0x6f   : > { %1107 = vrot.lane.b32.xlu1 %v710_v38, %s2089_s13  ;;  %v2465_v37 = vpack.c.bf16 %v574_v27, %v574_v27 }
  0x70   : > { %1105 = vrot.lane.b32.xlu0 %v698_v17, %s2089_s13 }
  0x73   : > { %819 = vrot.lane.b32.xlu1 %v698_v17, %s2084_s8  ;;  %v599_v17 = vpack.c.bf16 %v572_v7, %v572_v7  ;;  %v743_v7 = vshll.u32 %v601_v58, 16  ;;  %v755_v58 = vshll.u32 %v2465_v37, 16 }
  0x74   : > { %1137 = vrot.lane.b32.xlu0 %v892_v23, %s2090_s14 }
  0x75   : > { %v731_v24 = vshll.u32 %v599_v17, 16  ;;  %v900_v52 = vrot.slane %v599_v17, 1  ;;  %v292_v17 = vld [vmem:[%s2154_s28 + $0xb0] sm:$0xff] }
  0x77   : > { %821 = vrot.lane.b32.xlu1 %v710_v38, %s2084_s8  ;;  %v733_v32 = vrot.slane %v731_v24, 1  ;;  %v2429_v62 = vsel %vm871_vm1, %v899_v46, %v900_v52 }
  0x78   : > { %1139 = vrot.lane.b32.xlu0 %v895_v54, %s2090_s14 }
  0x7b   : > { %934 = vrot.lane.b32.xlu1 %v895_v54, %s2083_s7 }
  0x7c   : > { %932 = vrot.lane.b32.xlu0 %v892_v23, %s2083_s7  ;;  %v728_v23 = vrot.slane %v726_v18, 1  ;;  %v293_v18 = vld [vmem:[%s2154_s28 + $0xb8] sm:$0xff] }
  0x7d   : > { %v332_v28 = vmul.f32 %v2144_v6, %v293_v18 }
  0x7e   : > { %v729_v31 = vor.u32 %v728_v23, %v724_v22  ;;  %v741_v22 = vor.u32 %v740_v3, %v736_v2  ;;  %v745_v23 = vrot.slane %v743_v7, 1  ;;  %v295_v2 = vld [vmem:[%s2154_s28 + $0xc8] sm:$0xff] }
  0x7f   : > { %967 = vrot.lane.b32.xlu1 %v2361_v44, %s2085_s9  ;;  %v371_v43 = vadd.f32 %v2159_v11, %v332_v28 }
  0x80   : > { %965 = vrot.lane.b32.xlu0 %v2325_v9, %s2085_s9  ;;  %v746_v36 = vsel %vm614_vm2, %v741_v22, %v745_v23 }
  0x83   : > { %1011 = vrot.lane.b32.xlu1 %v722_v14, %s2088_s12 }
  0x84   : > { %1009 = vrot.lane.b32.xlu0 %v710_v38, %s2088_s12  ;;  %v2409_v38 = vsel %vm614_vm2, %v729_v31, %v733_v32 }
  0x86   : > { %v921_v29 = vpop.permute.xlu1 %920 }
  0x87   : > { %1047 = vrot.lane.b32.xlu1 %v2394_v21, %s2087_s11 }
  0x88   : > { %1045 = vrot.lane.b32.xlu0 %v895_v54, %s2087_s11  ;;  %v400_v54 = vmax.f32 %v368_v42, 0.0 }
  0x8a   : > { %v808_v30 = vpop.permute.xlu0 %807  ;;  %v478_v63 = vrot.slane %v400_v54, 7 }
  0x8b   : > { %1079 = vrot.lane.b32.xlu1 %v2377_v5, %s2086_s10 }
  0x8c   : > { %1077 = vrot.lane.b32.xlu0 %v2361_v44, %s2086_s10  ;;  %v480_v10 = vsel %vm445_vm0, %v478_v63, %v479_v0  ;;  %v557_v13 = vsel %vm445_vm0, 0.0, %v478_v63  ;;  %v294_v63 = vld [vmem:[%s2154_s28 + $0xc0] sm:$0xff] }
  0x8d   : > { %v956_v39 = vpop.permute.xlu1 %955  ;;  %v2449_v24 = vpack.c.bf16 %v480_v10, %v557_v13  ;;  %v333_v10 = vmul.f32 %v2144_v6, %v294_v63 }
  0x8e   : > { %v954_v45 = vpop.permute.xlu0 %953 }
  0x8f   : > { %1111 = vrot.lane.b32.xlu1 %v2409_v38, %s2089_s13  ;;  %v748_v54 = vshrl.u32 %v2449_v24, 16 }
  0x90   : > { %1109 = vrot.lane.b32.xlu0 %v722_v14, %s2089_s13 }
  0x91   : > { %v2421_v49 = vpop.permute.xlu1 %1067 }
  0x92   : > { %v1066_v56 = vpop.permute.xlu0 %1065 }
  0x93   : > { %823 = vrot.lane.b32.xlu1 %v722_v14, %s2084_s8  ;;  %v1163_v14 = vsel %vm1161_vm4, %v2138_v4, %v808_v30 }
  0x94   : > { %1141 = vrot.lane.b32.xlu0 %v2394_v21, %s2090_s14  ;;  %v1196_v25 = vsel %vm1194_vm5, %v1163_v14, %v921_v29  ;;  %v902_v29 = vrot.slane %v2419_v47, 1 }
  0x95   : > { %v923_v61 = vpop.permute.xlu1 %922  ;;  %v1229_v30 = vsel %vm1227_vm6, %v1196_v25, %v954_v45 }
  0x96   : > { %v1034_v1 = vpop.permute.xlu0 %1033  ;;  %v2474_v52 = vsel %vm871_vm1, %v902_v29, %v903_v33 }
  0x97   : > { %825 = vrot.lane.b32.xlu1 %v2409_v38, %s2084_s8 }
  0x98   : > { %1143 = vrot.lane.b32.xlu0 %v2429_v62, %s2090_s14 }
  0x99   : > { %v1036_v8 = vpop.permute.xlu1 %1035 }
  0x9a   : > { %v810_v15 = vpop.permute.xlu0 %809 }
  0x9b   : > { %v1165_v19 = vsel %vm1161_vm4, %v2199_v57, %v810_v15  ;;  %938 = vrot.lane.b32.xlu1 %v2429_v62, %s2083_s7  ;;  %v331_v57 = vmul.f32 %v2144_v6, %v292_v17 }
  0x9c   : > { %v1198_v20 = vsel %vm1194_vm5, %v1165_v19, %v923_v61  ;;  %936 = vrot.lane.b32.xlu0 %v2394_v21, %s2083_s7  ;;  %v403_v61 = vmax.f32 %v371_v43, 0.0 }
  0x9d   : > { %v1000_v26 = vpop.permute.xlu1 %999  ;;  %v1231_v31 = vsel %vm1227_vm6, %v1198_v20, %v956_v39  ;;  %v750_v39 = vshll.u32 %v2449_v24, 16  ;;  %v370_v42 = vadd.f32 %v2159_v11, %v331_v57  ;;  %v372_v20 = vadd.f32 %v2159_v11, %v333_v10 }
  0x9e   : > { %v998_v32 = vpop.permute.xlu0 %997  ;;  %v1264_v40 = vsel %vm1260_vm7, %v1231_v31, %v1000_v26  ;;  %v482_v15 = vrot.slane %v403_v61, 7  ;;  %v905_v31 = vrot.slane %v2449_v24, 1  ;;  %v297_v61 = vld [vmem:[%s2154_s28 + $0xd8] sm:$0xff] }
  0x9f   : > { %v1262_v21 = vsel %vm1260_vm7, %v1229_v30, %v998_v32  ;;  %971 = vrot.lane.b32.xlu1 %v2419_v47, %s2085_s9  ;;  %v1297_v53 = vsel %vm1293_vm8, %v1264_v40, %v1036_v8  ;;  %v752_v55 = vrot.slane %v750_v39, 1  ;;  %v757_v8 = vrot.slane %v755_v58, 1 }
  0xa0   : > { %v1295_v35 = vsel %vm1293_vm8, %v1262_v21, %v1034_v1  ;;  %969 = vrot.lane.b32.xlu0 %v2377_v5, %s2085_s9  ;;  %v1330_v3 = vsel %vm1326_vm9, %v1297_v53, %v2421_v49  ;;  %v334_v49 = vmul.f32 %v2144_v6, %v295_v2  ;;  %v404_v28 = vmax.f32 %v372_v20, 0.0 }
  0xa1   : > { %v1100_v41 = vpop.permute.xlu1 %1099  ;;  %v1328_v46 = vsel %vm1326_vm9, %v1295_v35, %v1066_v56  ;;  %v402_v56 = vmax.f32 %v370_v42, 0.0  ;;  %v753_v7 = vor.u32 %v752_v55, %v748_v54  ;;  %v906_v32 = vrot.slane %v2465_v37, 1 }
  0xa2   : > { %v1098_v45 = vpop.permute.xlu0 %1097  ;;  %v1363_v17 = vsel %vm1359_vm10, %v1330_v3, %v1100_v41  ;;  %v373_v26 = vadd.f32 %v2159_v11, %v334_v49  ;;  %v575_v21 = vsel %vm445_vm0, %v482_v15, 0.0  ;;  %v484_v42 = vrot.slane %v404_v28, 7 }
  0xa3   : > { %1015 = vrot.lane.b32.xlu1 %v746_v36, %s2088_s12  ;;  %v1361_v0 = vsel %vm1359_vm10, %v1328_v46, %v1098_v45  ;;  %v481_v14 = vrot.slane %v402_v56, 7  ;;  %v605_v35 = vpack.c.bf16 %v575_v21, %v575_v21  ;;  %v2529_v41 = vsel %vm871_vm1, %v905_v31, %v906_v32  ;;  %v296_v56 = vld [vmem:[%s2154_s28 + $0xd0] sm:$0xff] }
  0xa4   : > { %1013 = vrot.lane.b32.xlu0 %v2409_v38, %s2088_s12  ;;  %v405_v29 = vmax.f32 %v373_v26, 0.0  ;;  %v559_v55 = vsel %vm445_vm0, 0.0, %v484_v42 }
  0xa5   : > { %v2481_v59 = vpop.permute.xlu1 %811  ;;  %v483_v23 = vsel %vm445_vm0, %v481_v14, %v482_v15  ;;  %v558_v25 = vsel %vm445_vm0, 0.0, %v481_v14  ;;  %v767_v46 = vshll.u32 %v605_v35, 16  ;;  %v909_v14 = vrot.slane %v605_v35, 1 }
  0xa6   : > { %v1130_v1 = vpop.permute.xlu0 %1129  ;;  %v2517_v57 = vpack.c.bf16 %v483_v23, %v558_v25  ;;  %v485_v37 = vrot.slane %v405_v29, 7 }
  0xa7   : > { %1051 = vrot.lane.b32.xlu1 %v2474_v52, %s2087_s11  ;;  %v1394_v38 = vsel %vm1392_vm11, %v1361_v0, %v1130_v1  ;;  %v769_v0 = vrot.slane %v767_v46, 1 }
  0xa8   : > { %1049 = vrot.lane.b32.xlu0 %v2429_v62, %s2087_s11  ;;  %2012 = vmatprep.mubr.msk.bf16.mxu0 %vm1445_vm12, %v1394_v38  ;;  %v2506_v62 = vsel %vm614_vm2, %v753_v7, %v757_v8  ;;  %v762_v39 = vshll.u32 %v2517_v57, 16  ;;  %v486_v54 = vsel %vm445_vm0, %v484_v42, %v485_v37  ;;  %v576_v3 = vsel %vm445_vm0, %v485_v37, 0.0 }
  0xa9   : > { %v2495_v13 = vpop.permute.xlu1 %813  ;;  %v2544_v1 = vpack.c.bf16 %v486_v54, %v559_v55  ;;  %v335_v38 = vmul.f32 %v2144_v6, %v296_v56  ;;  %v336_v7 = vmul.f32 %v2144_v6, %v297_v61  ;;  %v908_v10 = vrot.slane %v2517_v57, 1 }
  0xaa   : > { %v1132_v18 = vpop.permute.xlu0 %1131  ;;  %v764_v45 = vrot.slane %v762_v39, 1  ;;  %v2560_v49 = vpack.c.bf16 %v576_v3, %v576_v3  ;;  %v298_v39 = vld [vmem:[%s2154_s28 + $0xe0] sm:$0xff] }
  0xab   : > { %v1396_v19 = vsel %vm1392_vm11, %v1363_v17, %v1132_v18  ;;  %1083 = vrot.lane.b32.xlu1 %v2449_v24, %s2086_s10  ;;  %v774_v6 = vshll.u32 %v2544_v1, 16  ;;  %v375_v20 = vadd.f32 %v2159_v11, %v336_v7  ;;  %v2571_v25 = vsel %vm871_vm1, %v908_v10, %v909_v14 }
  0xac   : > { %1081 = vrot.lane.b32.xlu0 %v2419_v47, %s2086_s10  ;;  %2013 = vmatmul.mubr.msk.bf16.vlgmr.msra.gmra.mxu0 %vm1445_vm12, %v1396_v19  ;;  %v374_v19 = vadd.f32 %v2159_v11, %v335_v38  ;;  %v772_v26 = vshrl.u32 %v2544_v1, 16  ;;  %v779_v31 = vshll.u32 %v2560_v49, 16  ;;  %v2073_v38 = vld [vmem:[%s2979_s2] ss:$0 sm:$0xff]  ;;  %v911_v14 = vrot.slane %v2544_v1, 1 }
  0xad   : > { %v2509_v22 = vpop.permute.xlu1 %926  ;;  %v776_v28 = vrot.slane %v774_v6, 1  ;;  %v407_v35 = vmax.f32 %v375_v20, 0.0 }
  0xae   : > { %v925_v27 = vpop.permute.xlu0 %924 }
  0xaf   : > { %1115 = vrot.lane.b32.xlu1 %v2506_v62, %s2089_s13 }
  0xb0   : > { %1113 = vrot.lane.b32.xlu0 %v746_v36, %s2089_s13 }
  0xb1   : > { %v2519_v30 = vpop.permute.xlu1 %959 }
  0xb2   : > { %v958_v33 = vpop.permute.xlu0 %957 }
  0xb3   : > { %827 = vrot.lane.b32.xlu1 %v746_v36, %s2084_s8  ;;  %v760_v36 = vshrl.u32 %v2517_v57, 16 }
  0xb4   : > { %1145 = vrot.lane.b32.xlu0 %v2474_v52, %s2090_s14 }
  0xb5   : > { %v1004_v40 = vpop.permute.xlu1 %1003  ;;  %v765_v63 = vor.u32 %v764_v45, %v760_v36  ;;  %v777_v36 = vor.u32 %v776_v28, %v772_v26  ;;  %v2072_v45 = vld [vmem:[%s2978_s1] ss:$0 sm:$0xff] }
  0xb6   : > { %v1002_v43 = vpop.permute.xlu0 %1001  ;;  %v337_v46 = vmul.f32 %v2072_v45, %v298_v39 }
  0xb7   : > { %829 = vrot.lane.b32.xlu1 %v2506_v62, %s2084_s8  ;;  %v2558_v15 = vsel %vm614_vm2, %v765_v63, %v769_v0 }
  0xb8   : > { %1147 = vrot.lane.b32.xlu0 %v2529_v41, %s2090_s14  ;;  %v376_v7 = vadd.f32 %v2073_v38, %v337_v46 }
  0xb9   : > { %v1040_v53 = vpop.permute.xlu1 %1039 }
  0xba   : > { %v1038_v58 = vpop.permute.xlu0 %1037 }
  0xbb   : > { %942 = vrot.lane.b32.xlu1 %v2529_v41, %s2083_s7 }
  0xbc   : > { %940 = vrot.lane.b32.xlu0 %v2474_v52, %s2083_s7  ;;  %v1167_v52 = vsel %vm1161_vm4, %v2192_v51, %v2481_v59 }
  0xbd   : > { %v1072_v2 = vpop.permute.xlu1 %1071  ;;  %v1200_v17 = vsel %vm1194_vm5, %v1167_v52, %v925_v27  ;;  %v1169_v27 = vsel %vm1161_vm4, %v2205_v60, %v2495_v13 }
  0xbe   : > { %v1070_v8 = vpop.permute.xlu0 %1069  ;;  %v1233_v23 = vsel %vm1227_vm6, %v1200_v17, %v958_v33  ;;  %v1202_v32 = vsel %vm1194_vm5, %v1169_v27, %v2509_v22  ;;  %v406_v33 = vmax.f32 %v374_v19, 0.0  ;;  %v912_v17 = vrot.slane %v2560_v49, 1 }
  0xbf   : > { %975 = vrot.lane.b32.xlu1 %v2517_v57, %s2085_s9  ;;  %v1266_v59 = vsel %vm1260_vm7, %v1233_v23, %v1002_v43  ;;  %v1235_v60 = vsel %vm1227_vm6, %v1202_v32, %v2519_v30  ;;  %v781_v30 = vrot.slane %v779_v31, 1  ;;  %v408_v19 = vmax.f32 %v376_v7, 0.0 }
  0xc0   : > { %973 = vrot.lane.b32.xlu0 %v2449_v24, %s2085_s9  ;;  %v1299_v11 = vsel %vm1293_vm8, %v1266_v59, %v1038_v58  ;;  %v1268_v37 = vsel %vm1260_vm7, %v1235_v60, %v1004_v40  ;;  %v487_v55 = vrot.slane %v406_v33, 7  ;;  %v488_v58 = vrot.slane %v407_v35, 7  ;;  %v300_v60 = vld [vmem:[%s2154_s28 + $0xf0] sm:$0xff] }
  0xc1   : > { %v1104_v18 = vpop.permute.xlu1 %1103  ;;  %v1332_v21 = vsel %vm1326_vm9, %v1299_v11, %v1070_v8  ;;  %v1301_v22 = vsel %vm1293_vm8, %v1268_v37, %v1040_v53  ;;  %v2613_v63 = vsel %vm614_vm2, %v777_v36, %v781_v30  ;;  %v913_v27 = vsel %vm871_vm1, %v911_v14, %v912_v17 }
  0xc2   : > { %v1102_v51 = vpop.permute.xlu0 %1101  ;;  %v1334_v40 = vsel %vm1326_vm9, %v1301_v22, %v1072_v2  ;;  %v489_v2 = vsel %vm445_vm0, %v487_v55, %v488_v58  ;;  %v560_v3 = vsel %vm445_vm0, 0.0, %v487_v55  ;;  %v490_v49 = vrot.slane %v408_v19, 7 }
  0xc3   : > { %1019 = vrot.lane.b32.xlu1 %v2558_v15, %s2088_s12  ;;  %v1365_v13 = vsel %vm1359_vm10, %v1332_v21, %v1102_v51  ;;  %v1367_v53 = vsel %vm1359_vm10, %v1334_v40, %v1104_v18  ;;  %v2627_v52 = vpack.c.bf16 %v489_v2, %v560_v3  ;;  %v577_v18 = vsel %vm445_vm0, %v488_v58, 0.0 }
  0xc4   : > { %1017 = vrot.lane.b32.xlu0 %v2506_v62, %s2088_s12  ;;  %v299_v62 = vld [vmem:[%s2154_s28 + $0xe8] sm:$0xff]  ;;  %v609_v51 = vpack.c.bf16 %v577_v18, %v577_v18  ;;  %v561_v35 = vsel %vm445_vm0, 0.0, %v490_v49  ;;  %v339_v36 = vmul.f32 %v2072_v45, %v300_v60 }
  0xc5   : > { %v2584_v29 = vpop.permute.xlu1 %815  ;;  %v338_v56 = vmul.f32 %v2072_v45, %v299_v62  ;;  %v786_v59 = vshll.u32 %v2627_v52, 16  ;;  %v914_v40 = vrot.slane %v2627_v52, 1 }
  0xc6   : > { %v1134_v42 = vpop.permute.xlu0 %1133  ;;  %v791_v32 = vshll.u32 %v609_v51, 16  ;;  %v915_v55 = vrot.slane %v609_v51, 1 }
  0xc7   : > { %v1398_v43 = vsel %vm1392_vm11, %v1365_v13, %v1134_v42  ;;  %1055 = vrot.lane.b32.xlu1 %v2571_v25, %s2087_s11  ;;  %v377_v8 = vadd.f32 %v2073_v38, %v338_v56  ;;  %v788_v31 = vrot.slane %v786_v59, 1  ;;  %v301_v13 = vld [vmem:[%s2154_s28 + $0xf8] sm:$0xff] }
  0xc8   : > { %1053 = vrot.lane.b32.xlu0 %v2529_v41, %s2087_s11  ;;  %2016 = vmatprep.mubr.msk.bf16.mxu0 %vm1445_vm12, %v1398_v43  ;;  %v793_v62 = vrot.slane %v791_v32, 1  ;;  %v340_v30 = vmul.f32 %v2072_v45, %v301_v13 }
  0xc9   : > { %v2603_v54 = vpop.permute.xlu1 %817  ;;  %v409_v20 = vmax.f32 %v377_v8, 0.0 }
  0xca   : > { %v1136_v61 = vpop.permute.xlu0 %1135  ;;  %v379_v2 = vadd.f32 %v2073_v38, %v340_v30  ;;  %v1173_v14 = vsel %vm1161_vm4, %v2267_v12, %v2603_v54 }
  0xcb   : > { %v1400_v41 = vsel %vm1392_vm11, %v1367_v53, %v1136_v61  ;;  %1087 = vrot.lane.b32.xlu1 %v2544_v1, %s2086_s10  ;;  %v491_v11 = vrot.slane %v409_v20, 7 }
  0xcc   : > { %1085 = vrot.lane.b32.xlu0 %v2517_v57, %s2086_s10  ;;  %2017 = vmatmul.mubr.msk.bf16.gmra.mxu0 %vm1445_vm12, %v1400_v41  ;;  %v378_v41 = vadd.f32 %v2073_v38, %v339_v36  ;;  %v411_v51 = vmax.f32 %v379_v2, 0.0 }
  0xcd   : > { %v2615_v0 = vpop.permute.xlu1 %930  ;;  %v492_v33 = vsel %vm445_vm0, %v490_v49, %v491_v11  ;;  %v578_v22 = vsel %vm445_vm0, %v491_v11, 0.0 }
  0xce   : > { %v929_v10 = vpop.permute.xlu0 %928  ;;  %v2650_v37 = vpack.c.bf16 %v492_v33, %v561_v35  ;;  %v2662_v56 = vpack.c.bf16 %v578_v22, %v578_v22  ;;  %v1206_v18 = vsel %vm1194_vm5, %v1173_v14, %v2615_v0  ;;  %v494_v32 = vrot.slane %v411_v51, 7 }
  0xcf   : > { %1119 = vrot.lane.b32.xlu1 %v2613_v63, %s2089_s13 }
  0xd0   : > { %1117 = vrot.lane.b32.xlu0 %v2558_v15, %s2089_s13  ;;  %v798_v45 = vshll.u32 %v2650_v37, 16  ;;  %v803_v17 = vshll.u32 %v2662_v56, 16  ;;  %v918_v22 = vrot.slane %v2662_v56, 1  ;;  %v579_v36 = vsel %vm445_vm0, %v494_v32, 0.0 }
  0xd1   : > { %v2629_v6 = vpop.permute.xlu1 %963 }
  0xd2   : > { %v962_v23 = vpop.permute.xlu0 %961  ;;  %v800_v38 = vrot.slane %v798_v45, 1  ;;  %v1239_v59 = vsel %vm1227_vm6, %v1206_v18, %v2629_v6 }
  0xd3   : > { %831 = vrot.lane.b32.xlu1 %v2558_v15, %s2084_s8  ;;  %v784_v15 = vshrl.u32 %v2627_v52, 16 }
  0xd4   : > { %1149 = vrot.lane.b32.xlu0 %v2571_v25, %s2090_s14 }
  0xd5   : > { %v1008_v26 = vpop.permute.xlu1 %1007  ;;  %v789_v42 = vor.u32 %v788_v31, %v784_v15 }
  0xd6   : > { %v1006_v28 = vpop.permute.xlu0 %1005  ;;  %v1272_v49 = vsel %vm1260_vm7, %v1239_v59, %v1008_v26 }
  0xd7   : > { %833 = vrot.lane.b32.xlu1 %v2613_v63, %s2084_s8  ;;  %v794_v58 = vsel %vm614_vm2, %v789_v42, %v793_v62 }
  0xd8   : > { %1151 = vrot.lane.b32.xlu0 %v913_v27, %s2090_s14 }
  0xd9   : > { %v1044_v21 = vpop.permute.xlu1 %1043 }
  0xda   : > { %v1042_v39 = vpop.permute.xlu0 %1041  ;;  %v1305_v11 = vsel %vm1293_vm8, %v1272_v49, %v1044_v21 }
  0xdb   : > { %946 = vrot.lane.b32.xlu1 %v913_v27, %s2083_s7 }
  0xdc   : > { %944 = vrot.lane.b32.xlu0 %v2571_v25, %s2083_s7  ;;  %v1171_v25 = vsel %vm1161_vm4, %v2248_v50, %v2584_v29  ;;  %v916_v50 = vsel %vm871_vm1, %v914_v40, %v915_v55  ;;  %v796_v29 = vshrl.u32 %v2650_v37, 16 }
  0xdd   : > { %v1076_v43 = vpop.permute.xlu1 %1075  ;;  %v1204_v53 = vsel %vm1194_vm5, %v1171_v25, %v929_v10 }
  0xde   : > { %v1074_v46 = vpop.permute.xlu0 %1073  ;;  %v1237_v3 = vsel %vm1227_vm6, %v1204_v53, %v962_v23  ;;  %v410_v23 = vmax.f32 %v378_v41, 0.0  ;;  %v801_v0 = vor.u32 %v800_v38, %v796_v29  ;;  %v1338_v15 = vsel %vm1326_vm9, %v1305_v11, %v1076_v43 }
  0xdf   : > { %979 = vrot.lane.b32.xlu1 %v2627_v52, %s2085_s9  ;;  %v1270_v8 = vsel %vm1260_vm7, %v1237_v3, %v1006_v28  ;;  %v805_v28 = vrot.slane %v803_v17, 1  ;;  %v917_v43 = vrot.slane %v2650_v37, 1 }
  0xe0   : > { %977 = vrot.lane.b32.xlu0 %v2544_v1, %s2085_s9  ;;  %v1303_v10 = vsel %vm1293_vm8, %v1270_v8, %v1042_v39  ;;  %v493_v31 = vrot.slane %v410_v23, 7 }
  0xe1   : > { %v1108_v61 = vpop.permute.xlu1 %1107  ;;  %v1336_v19 = vsel %vm1326_vm9, %v1303_v10, %v1074_v46  ;;  %v613_v46 = vpack.c.bf16 %v579_v36, %v579_v36  ;;  %v919_v25 = vsel %vm871_vm1, %v917_v43, %v918_v22 }
  0xe2   : > { %v1106_v7 = vpop.permute.xlu0 %1105  ;;  %v1371_v33 = vsel %vm1359_vm10, %v1338_v15, %v1108_v61  ;;  %v495_v39 = vsel %vm445_vm0, %v493_v31, %v494_v32  ;;  %v562_v60 = vsel %vm445_vm0, 0.0, %v493_v31 }
  0xe3   : > { %1023 = vrot.lane.b32.xlu1 %v794_v58, %s2088_s12  ;;  %v1369_v12 = vsel %vm1359_vm10, %v1336_v19, %v1106_v7  ;;  %v612_v42 = vpack.c.bf16 %v495_v39, %v562_v60  ;;  %v993_v56 = vshll.u32 %v613_v46, 16  ;;  %v1031_v38 = vrot.slane %v613_v46, 1 }
  0xe4   : > { %1021 = vrot.lane.b32.xlu0 %v2613_v63, %s2088_s12 }
  0xe5   : > { %v820_v20 = vpop.permute.xlu1 %819  ;;  %v988_v40 = vshll.u32 %v612_v42, 16  ;;  %v986_v53 = vshrl.u32 %v612_v42, 16  ;;  %v995_v3 = vrot.slane %v993_v56, 1  ;;  %v1030_v10 = vrot.slane %v612_v42, 1 }
  0xe6   : > { %v1138_v54 = vpop.permute.xlu0 %1137  ;;  %v1175_v29 = vsel %vm1161_vm4, %v2309_v48, %v820_v20 }
  0xe7   : > { %v1402_v63 = vsel %vm1392_vm11, %v1369_v12, %v1138_v54  ;;  %1059 = vrot.lane.b32.xlu1 %v916_v50, %s2087_s11  ;;  %v990_v61 = vrot.slane %v988_v40, 1  ;;  %v1032_v51 = vsel %vm871_vm1, %v1030_v10, %v1031_v38 }
  0xe8   : > { %1057 = vrot.lane.b32.xlu0 %v913_v27, %s2087_s11  ;;  %2020 = vmatprep.mubr.msk.bf16.mxu0 %vm1445_vm12, %v1402_v63  ;;  %v806_v27 = vsel %vm614_vm2, %v801_v0, %v805_v28 }
  0xe9   : > { %v822_v6 = vpop.permute.xlu1 %821 }
  0xea   : > { %v1140_v26 = vpop.permute.xlu0 %1139  ;;  %v1177_v48 = vsel %vm1161_vm4, %v2325_v9, %v822_v6 }
  0xeb   : > { %v1404_v35 = vsel %vm1392_vm11, %v1371_v33, %v1140_v26  ;;  %1091 = vrot.lane.b32.xlu1 %v2650_v37, %s2086_s10 }
  0xec   : > { %1089 = vrot.lane.b32.xlu0 %v2627_v52, %s2086_s10  ;;  %2021 = vmatmul.mubr.msk.bf16.gmra.mxu0 %vm1445_vm12, %v1404_v35 }
  0xed   : > { %v935_v21 = vpop.permute.xlu1 %934 }
  0xee   : > { %v933_v13 = vpop.permute.xlu0 %932  ;;  %v1210_v59 = vsel %vm1194_vm5, %v1177_v48, %v935_v21 }
  0xef   : > { %1123 = vrot.lane.b32.xlu1 %v806_v27, %s2089_s13  ;;  %v1208_v17 = vsel %vm1194_vm5, %v1175_v29, %v933_v13 }
  0xf0   : > { %1121 = vrot.lane.b32.xlu0 %v794_v58, %s2089_s13 }
  0xf1   : > { %v968_v62 = vpop.permute.xlu1 %967 }
  0xf2   : > { %v966_v30 = vpop.permute.xlu0 %965  ;;  %v1243_v49 = vsel %vm1227_vm6, %v1210_v59, %v968_v62 }
  0xf3   : > { %835 = vrot.lane.b32.xlu1 %v794_v58, %s2084_s8  ;;  %v991_v58 = vor.u32 %v990_v61, %v986_v53 }
  0xf4   : > { %1153 = vrot.lane.b32.xlu0 %v916_v50, %s2090_s14 }
  0xf5   : > { %v1012_v55 = vpop.permute.xlu1 %1011  ;;  %v996_v14 = vsel %vm614_vm2, %v991_v58, %v995_v3 }
  0xf6   : > { %v1010_v45 = vpop.permute.xlu0 %1009  ;;  %v1276_v0 = vsel %vm1260_vm7, %v1243_v49, %v1012_v55 }
  0xf7   : > { %837 = vrot.lane.b32.xlu1 %v806_v27, %s2084_s8  ;;  %s265_s8 = scalar_lea.vmem %s2982_s5, %s2985_s22 }
  0xf8   : > { %1155 = vrot.lane.b32.xlu0 %v919_v25, %s2090_s14 }
  0xf9   : > { %v1048_v41 = vpop.permute.xlu1 %1047 }
  0xfa   : > { %v1046_v2 = vpop.permute.xlu0 %1045  ;;  %v1309_v28 = vsel %vm1293_vm8, %v1276_v0, %v1048_v41 }
  0xfb   : > { %950 = vrot.lane.b32.xlu1 %v919_v25, %s2083_s7 }
  0xfc   : > { %948 = vrot.lane.b32.xlu0 %v916_v50, %s2083_s7  ;;  %v1241_v50 = vsel %vm1227_vm6, %v1208_v17, %v966_v30 }
  0xfd   : > { %v1080_v7 = vpop.permute.xlu1 %1079  ;;  %v1274_v23 = vsel %vm1260_vm7, %v1241_v50, %v1010_v45 }
  0xfe   : > { %v1078_v8 = vpop.permute.xlu0 %1077  ;;  %v1307_v20 = vsel %vm1293_vm8, %v1274_v23, %v1046_v2  ;;  %v1342_v15 = vsel %vm1326_vm9, %v1309_v28, %v1080_v7 }
  0xff   : > { %983 = vrot.lane.b32.xlu1 %v612_v42, %s2085_s9  ;;  %v1340_v12 = vsel %vm1326_vm9, %v1307_v20, %v1078_v8 }
 0x100   : > { %981 = vrot.lane.b32.xlu0 %v2650_v37, %s2085_s9 }
 0x101   : > { %v1112_v18 = vpop.permute.xlu1 %1111 }
 0x102   : > { %v1110_v19 = vpop.permute.xlu0 %1109  ;;  %v1375_v31 = vsel %vm1359_vm10, %v1342_v15, %v1112_v18 }
 0x103   : > { %1027 = vrot.lane.b32.xlu1 %v996_v14, %s2088_s12  ;;  %v1373_v63 = vsel %vm1359_vm10, %v1340_v12, %v1110_v19 }
 0x104   : > { %1025 = vrot.lane.b32.xlu0 %v806_v27, %s2088_s12 }
 0x105   : > { %v824_v54 = vpop.permute.xlu1 %823 }
 0x106   : > { %v1142_v11 = vpop.permute.xlu0 %1141  ;;  %v1179_v43 = vsel %vm1161_vm4, %v2361_v44, %v824_v54 }
 0x107   : > { %v1406_v9 = vsel %vm1392_vm11, %v1373_v63, %v1142_v11  ;;  %1063 = vrot.lane.b32.xlu1 %v1032_v51, %s2087_s11 }
 0x108   : > { %1061 = vrot.lane.b32.xlu0 %v919_v25, %s2087_s11  ;;  %2024 = vmatprep.mubr.msk.bf16.mxu0 %vm1445_vm12, %v1406_v9  ;;  %s268_s11 = scalar_lea.vmem %s2983_s6, %s2985_s22 }
 0x109   : > { %v826_v6 = vpop.permute.xlu1 %825 }
 0x10a   : > { %v1144_v32 = vpop.permute.xlu0 %1143 }
 0x10b   : > { %v1408_v33 = vsel %vm1392_vm11, %v1375_v31, %v1144_v32  ;;  %1095 = vrot.lane.b32.xlu1 %v2138_v4, %s2086_s10 }
 0x10c   : > { %1093 = vrot.lane.b32.xlu0 %v612_v42, %s2086_s10  ;;  %2025 = vmatmul.mubr.msk.bf16.gmra.mxu0 %vm1445_vm12, %v1408_v33 }
 0x10d   : > { %v939_v26 = vpop.permute.xlu1 %938 }
 0x10e   : > { %v937_v35 = vpop.permute.xlu0 %936 }
 0x10f   : > { %1127 = vrot.lane.b32.xlu1 %v2184_v34, %s2089_s13  ;;  %v1212_v34 = vsel %vm1194_vm5, %v1179_v43, %v937_v35 }
 0x110   : > { %1125 = vrot.lane.b32.xlu0 %v996_v14, %s2089_s13 }
 0x111   : > { %v972_v27 = vpop.permute.xlu1 %971 }
 0x112   : > { %v970_v21 = vpop.permute.xlu0 %969 }
 0x113   : > { %1159 = vrot.lane.b32.xlu1 %v2165_v16, %s2090_s14  ;;  %v1245_v36 = vsel %vm1227_vm6, %v1212_v34, %v970_v21  ;;  %v1181_v16 = vsel %vm1161_vm4, %v2377_v5, %v826_v6 }
 0x114   : > { %1157 = vrot.lane.b32.xlu0 %v1032_v51, %s2090_s14  ;;  %v1214_v55 = vsel %vm1194_vm5, %v1181_v16, %v939_v26 }
 0x115   : > { %v1016_v39 = vpop.permute.xlu1 %1015  ;;  %v1247_v44 = vsel %vm1227_vm6, %v1214_v55, %v972_v27 }
 0x116   : > { %v1014_v4 = vpop.permute.xlu0 %1013  ;;  %v1280_v56 = vsel %vm1260_vm7, %v1247_v44, %v1016_v39 }
 0x117   : > { %v1278_v46 = vsel %vm1260_vm7, %v1245_v36, %v1014_v4 }
 0x119   : > { %v1052_v60 = vpop.permute.xlu1 %1051 }
 0x11a   : > { %v1050_v13 = vpop.permute.xlu0 %1049  ;;  %v1313_v2 = vsel %vm1293_vm8, %v1280_v56, %v1052_v60 }
 0x11b   : > { %v1311_v40 = vsel %vm1293_vm8, %v1278_v46, %v1050_v13 }
 0x11d   : > { %v1084_v42 = vpop.permute.xlu1 %1083 }
 0x11e   : > { %v1082_v62 = vpop.permute.xlu0 %1081  ;;  %v1346_v5 = vsel %vm1326_vm9, %v1313_v2, %v1084_v42 }
 0x11f   : > { %v1344_v25 = vsel %vm1326_vm9, %v1311_v40, %v1082_v62 }
 0x121   : > { %v1116_v22 = vpop.permute.xlu1 %1115 }
 0x122   : > { %v1114_v30 = vpop.permute.xlu0 %1113  ;;  %v1379_v3 = vsel %vm1359_vm10, %v1346_v5, %v1116_v22 }
 0x123   : > { %v1377_v53 = vsel %vm1359_vm10, %v1344_v25, %v1114_v30 }
 0x125   : > { %v828_v45 = vpop.permute.xlu1 %827 }
 0x126   : > { %v1146_v61 = vpop.permute.xlu0 %1145  ;;  %v1183_v20 = vsel %vm1161_vm4, %v2419_v47, %v828_v45 }
 0x127   : > { %v1410_v41 = vsel %vm1392_vm11, %v1377_v53, %v1146_v61 }
 0x128   : > { %2028 = vmatprep.mubr.msk.bf16.mxu1 %vm1445_vm12, %v1410_v41 }
 0x129   : > { %v830_v58 = vpop.permute.xlu1 %829 }
 0x12a   : > { %v1148_v7 = vpop.permute.xlu0 %1147  ;;  %v1185_v63 = vsel %vm1161_vm4, %v2449_v24, %v830_v58 }
 0x12b   : > { %v1412_v8 = vsel %vm1392_vm11, %v1379_v3, %v1148_v7 }
 0x12c   : > { %2029 = vmatmul.mubr.msk.bf16.vlgmr.msra.gmra.mxu1 %vm1445_vm12, %v1412_v8 }
 0x12d   : > { %v943_v29 = vpop.permute.xlu1 %942 }
 0x12e   : > { %v941_v14 = vpop.permute.xlu0 %940  ;;  %v1218_v0 = vsel %vm1194_vm5, %v1185_v63, %v943_v29 }
 0x12f   : > { %v1216_v51 = vsel %vm1194_vm5, %v1183_v20, %v941_v14 }
 0x131   : > { %v976_v10 = vpop.permute.xlu1 %975 }
 0x132   : > { %v974_v38 = vpop.permute.xlu0 %973  ;;  %v1251_v47 = vsel %vm1227_vm6, %v1218_v0, %v976_v10 }
 0x133   : > { %v1249_v12 = vsel %vm1227_vm6, %v1216_v51, %v974_v38 }
 0x135   : > { %v1020_v17 = vpop.permute.xlu1 %1019 }
 0x136   : > { %v1018_v18 = vpop.permute.xlu0 %1017  ;;  %v1284_v31 = vsel %vm1260_vm7, %v1251_v47, %v1020_v17 }
 0x137   : > { %v1282_v49 = vsel %vm1260_vm7, %v1249_v12, %v1018_v18 }
 0x139   : > { %v1056_v50 = vpop.permute.xlu1 %1055 }
 0x13a   : > { %v1054_v19 = vpop.permute.xlu0 %1053  ;;  %v1317_v33 = vsel %vm1293_vm8, %v1284_v31, %v1056_v50 }
 0x13b   : > { %v1315_v11 = vsel %vm1293_vm8, %v1282_v49, %v1054_v19 }
 0x13d   : > { %v1088_v23 = vpop.permute.xlu1 %1087 }
 0x13e   : > { %v1086_v48 = vpop.permute.xlu0 %1085  ;;  %v1350_v24 = vsel %vm1326_vm9, %v1317_v33, %v1088_v23 }
 0x13f   : > { %v1348_v9 = vsel %vm1326_vm9, %v1315_v11, %v1086_v48 }
 0x141   : > { %v1120_v59 = vpop.permute.xlu1 %1119 }
 0x142   : > { %v1118_v54 = vpop.permute.xlu0 %1117  ;;  %v1383_v35 = vsel %vm1359_vm10, %v1350_v24, %v1120_v59 }
 0x143   : > { %v1381_v15 = vsel %vm1359_vm10, %v1348_v9, %v1118_v54 }
 0x145   : > { %v832_v28 = vpop.permute.xlu1 %831 }
 0x146   : > { %v1150_v6 = vpop.permute.xlu0 %1149  ;;  %v1187_v30 = vsel %vm1161_vm4, %v2517_v57, %v832_v28 }
 0x147   : > { %v1414_v32 = vsel %vm1392_vm11, %v1381_v15, %v1150_v6 }
 0x148   : > { %2032 = vmatprep.mubr.msk.bf16.mxu1 %vm1445_vm12, %v1414_v32 }
 0x149   : > { %v834_v26 = vpop.permute.xlu1 %833 }
 0x14a   : > { %v1152_v27 = vpop.permute.xlu0 %1151  ;;  %v1189_v45 = vsel %vm1161_vm4, %v2544_v1, %v834_v26 }
 0x14b   : > { %v1416_v21 = vsel %vm1392_vm11, %v1383_v35, %v1152_v27 }
 0x14c   : > { %2033 = vmatmul.mubr.msk.bf16.gmra.mxu1 %vm1445_vm12, %v1416_v21 }
 0x14d   : > { %v947_v39 = vpop.permute.xlu1 %946 }
 0x14e   : > { %v945_v4 = vpop.permute.xlu0 %944  ;;  %v1222_v53 = vsel %vm1194_vm5, %v1189_v45, %v947_v39 }
 0x14f   : > { %v1220_v46 = vsel %vm1194_vm5, %v1187_v30, %v945_v4 }
 0x151   : > { %v980_v60 = vpop.permute.xlu1 %979 }
 0x152   : > { %v978_v13 = vpop.permute.xlu0 %977  ;;  %v1255_v57 = vsel %vm1227_vm6, %v1222_v53, %v980_v60 }
 0x153   : > { %v1253_v40 = vsel %vm1227_vm6, %v1220_v46, %v978_v13 }
 0x155   : > { %v1024_v42 = vpop.permute.xlu1 %1023 }
 0x156   : > { %v1022_v62 = vpop.permute.xlu0 %1021  ;;  %v1288_v5 = vsel %vm1260_vm7, %v1255_v57, %v1024_v42 }
 0x157   : > { %v1286_v25 = vsel %vm1260_vm7, %v1253_v40, %v1022_v62 }
 0x159   : > { %v1060_v43 = vpop.permute.xlu1 %1059 }
 0x15a   : > { %v1058_v34 = vpop.permute.xlu0 %1057  ;;  %v1321_v3 = vsel %vm1293_vm8, %v1288_v5, %v1060_v43 }
 0x15b   : > { %v1319_v44 = vsel %vm1293_vm8, %v1286_v25, %v1058_v34 }
 0x15d   : > { %v1092_v22 = vpop.permute.xlu1 %1091 }
 0x15e   : > { %v1090_v36 = vpop.permute.xlu0 %1089  ;;  %v1354_v1 = vsel %vm1326_vm9, %v1321_v3, %v1092_v22 }
 0x15f   : > { %v1352_v61 = vsel %vm1326_vm9, %v1319_v44, %v1090_v36 }
 0x161   : > { %v1124_v16 = vpop.permute.xlu1 %1123 }
 0x162   : > { %v1122_v55 = vpop.permute.xlu0 %1121  ;;  %v1387_v8 = vsel %vm1359_vm10, %v1354_v1, %v1124_v16 }
 0x163   : > { %v1385_v41 = vsel %vm1359_vm10, %v1352_v61, %v1122_v55 }
 0x165   : > { %v836_v56 = vpop.permute.xlu1 %835 }
 0x166   : > { %v1154_v2 = vpop.permute.xlu0 %1153  ;;  %v1191_v13 = vsel %vm1161_vm4, %v2627_v52, %v836_v56 }
 0x167   : > { %v1418_v58 = vsel %vm1392_vm11, %v1385_v41, %v1154_v2 }
 0x168   : > { %2036 = vmatprep.mubr.msk.bf16.mxu1 %vm1445_vm12, %v1418_v58 }
 0x169   : > { %v838_v7 = vpop.permute.xlu1 %837 }
 0x16a   : > { %v1156_v29 = vpop.permute.xlu0 %1155  ;;  %v1193_v60 = vsel %vm1161_vm4, %v2650_v37, %v838_v7 }
 0x16b   : > { %v1420_v14 = vsel %vm1392_vm11, %v1387_v8, %v1156_v29 }
 0x16c   : > { %v2014_v10 = vpop.f32.mrf.mxu0  ;;  %2037 = vmatmul.mubr.msk.bf16.gmra.mxu1 %vm1445_vm12, %v1420_v14 }
 0x16d   : > { %1645 = vst.msk [vmem:[%s2814_s30 + $0x10] sm:$0xff] %vm1161_vm4, %v2014_v10  ;;  %v951_v38 = vpop.permute.xlu1 %950  ;;  %v1748_v51 = vmul.f32 %v2014_v10, %v2014_v10  ;;  %v1678_v63 = vsel %vm1161_vm4, %v2014_v10, 0.0 }
 0x16e   : > { %v1516_v17 = vpop.f32.mrf.mxu0  ;;  %v949_v18 = vpop.permute.xlu0 %948  ;;  %v1226_v42 = vsel %vm1194_vm5, %v1193_v60, %v951_v38 }
 0x16f   : > { %1643 = vst.msk [vmem:[%s2814_s30] sm:$0xff] %vm1161_vm4, %v1516_v17  ;;  %v1746_v19 = vmul.f32 %v1516_v17, %v1516_v17  ;;  %v1675_v59 = vsel %vm1161_vm4, %v1516_v17, 0.0  ;;  %v1781_v31 = vsel %vm1161_vm4, %v1748_v51, 0.0  ;;  %v1224_v62 = vsel %vm1194_vm5, %v1191_v13, %v949_v18 }
 0x170   : > { %v2015_v50 = vpop.f32.mrf.mxu0 }
 0x171   : > { %1646 = vst.msk [vmem:[%s2814_s30 + $0x18] sm:$0xff] %vm1161_vm4, %v2015_v50  ;;  %v984_v23 = vpop.permute.xlu1 %983  ;;  %v1778_v11 = vsel %vm1161_vm4, %v1746_v19, 0.0  ;;  %v1749_v0 = vmul.f32 %v2015_v50, %v2015_v50  ;;  %v1680_v32 = vsel %vm1161_vm4, %v2015_v50, 0.0 }
 0x172   : > { %v1519_v48 = vpop.f32.mrf.mxu0  ;;  %v982_v20 = vpop.permute.xlu0 %981  ;;  %v1259_v43 = vsel %vm1227_vm6, %v1226_v42, %v984_v23 }
 0x173   : > { %1644 = vst.msk [vmem:[%s2814_s30 + $0x8] sm:$0xff] %vm1161_vm4, %v1519_v48  ;;  %v1676_v12 = vsel %vm1161_vm4, %v1519_v48, 0.0  ;;  %v1747_v54 = vmul.f32 %v1519_v48, %v1519_v48  ;;  %v1783_v26 = vsel %vm1161_vm4, %v1749_v0, 0.0  ;;  %v1257_v22 = vsel %vm1227_vm6, %v1224_v62, %v982_v20 }
 0x174   : > { %v1677_v49 = vadd.f32 %v1676_v12, %v1675_v59 }
 0x175   : > { %v1779_v9 = vsel %vm1161_vm4, %v1747_v54, 0.0  ;;  %v1028_v28 = vpop.permute.xlu1 %1027 }
 0x176   : > { %v1679_v47 = vadd.f32 %v1678_v63, %v1677_v49  ;;  %v1780_v15 = vadd.f32 %v1779_v9, %v1778_v11  ;;  %v1026_v6 = vpop.permute.xlu0 %1025  ;;  %v1292_v36 = vsel %vm1260_vm7, %v1259_v43, %v1028_v28 }
 0x177   : > { %v1290_v46 = vsel %vm1260_vm7, %v1257_v22, %v1026_v6 }
 0x178   : > { %v1782_v33 = vadd.f32 %v1781_v31, %v1780_v15  ;;  %v1681_v24 = vadd.f32 %v1680_v32, %v1679_v47 }
 0x179   : > { %v1064_v35 = vpop.permute.xlu1 %1063 }
 0x17a   : > { %v1062_v27 = vpop.permute.xlu0 %1061  ;;  %v1784_v21 = vadd.f32 %v1783_v26, %v1782_v33  ;;  %v1325_v37 = vsel %vm1293_vm8, %v1292_v36, %v1064_v35 }
 0x17b   : > { %v1323_v52 = vsel %vm1293_vm8, %v1290_v46, %v1062_v27 }
 0x17d   : > { %v1096_v39 = vpop.permute.xlu1 %1095 }
 0x17e   : > { %v1094_v4 = vpop.permute.xlu0 %1093  ;;  %v1358_v16 = vsel %vm1326_vm9, %v1325_v37, %v1096_v39 }
 0x17f   : > { %v1356_v40 = vsel %vm1326_vm9, %v1323_v52, %v1094_v4 }
 0x181   : > { %v1128_v34 = vpop.permute.xlu1 %1127 }
 0x182   : > { %v1126_v30 = vpop.permute.xlu0 %1125  ;;  %v1391_v55 = vsel %vm1359_vm10, %v1358_v16, %v1128_v34 }
 0x183   : > { %v1389_v45 = vsel %vm1359_vm10, %v1356_v40, %v1126_v30 }
 0x185   : > { %v1160_v25 = vpop.permute.xlu1 %1159 }
 0x186   : > { %v1424_v44 = vsel %vm1392_vm11, %v1391_v55, %v1160_v25  ;;  %v1158_v53 = vpop.permute.xlu0 %1157 }
 0x187   : > { %v1422_v61 = vsel %vm1392_vm11, %v1389_v45, %v1158_v53 }
 0x188   : > { %2040 = vmatprep.mubr.msk.bf16.mxu1 %vm1445_vm12, %v1422_v61 }
 0x189   : > { %2041 = vmatmul.mubr.msk.bf16.gmra.mxu1 %vm1445_vm12, %v1424_v44 }
 0x18c   : > { %v2018_v56 = vpop.f32.mrf.mxu0 }
 0x18d   : > { %1649 = vst.msk [vmem:[%s2814_s30 + $0x30] sm:$0xff] %vm1161_vm4, %v2018_v56  ;;  %v1752_v8 = vmul.f32 %v2018_v56, %v2018_v56  ;;  %v1686_v38 = vsel %vm1161_vm4, %v2018_v56, 0.0 }
 0x18e   : > { %v1532_v57 = vpop.f32.mrf.mxu0 }
 0x18f   : > { %1647 = vst.msk [vmem:[%s2814_s30 + $0x20] sm:$0xff] %vm1161_vm4, %v1532_v57  ;;  %v1682_v41 = vsel %vm1161_vm4, %v1532_v57, 0.0  ;;  %v1750_v2 = vmul.f32 %v1532_v57, %v1532_v57  ;;  %v1789_v23 = vsel %vm1161_vm4, %v1752_v8, 0.0 }
 0x190   : > { %v1683_v5 = vadd.f32 %v1682_v41, %v1681_v24  ;;  %v2019_v58 = vpop.f32.mrf.mxu0 }
 0x191   : > { %v1785_v3 = vsel %vm1161_vm4, %v1750_v2, 0.0  ;;  %1650 = vst.msk [vmem:[%s2814_s30 + $0x38] sm:$0xff] %vm1161_vm4, %v2019_v58  ;;  %v1753_v17 = vmul.f32 %v2019_v58, %v2019_v58  ;;  %v1688_v48 = vsel %vm1161_vm4, %v2019_v58, 0.0 }
 0x192   : > { %v1786_v1 = vadd.f32 %v1785_v3, %v1784_v21  ;;  %v1535_v7 = vpop.f32.mrf.mxu0 }
 0x193   : > { %1648 = vst.msk [vmem:[%s2814_s30 + $0x28] sm:$0xff] %vm1161_vm4, %v1535_v7  ;;  %v1684_v29 = vsel %vm1161_vm4, %v1535_v7, 0.0  ;;  %v1751_v14 = vmul.f32 %v1535_v7, %v1535_v7  ;;  %v1791_v59 = vsel %vm1161_vm4, %v1753_v17, 0.0 }
 0x194   : > { %v1685_v10 = vadd.f32 %v1684_v29, %v1683_v5 }
 0x195   : > { %v1787_v18 = vsel %vm1161_vm4, %v1751_v14, 0.0 }
 0x196   : > { %v1687_v50 = vadd.f32 %v1686_v38, %v1685_v10  ;;  %v1788_v19 = vadd.f32 %v1787_v18, %v1786_v1 }
 0x198   : > { %v1790_v20 = vadd.f32 %v1789_v23, %v1788_v19  ;;  %v1689_v51 = vadd.f32 %v1688_v48, %v1687_v50 }
 0x19a   : > { %v1792_v12 = vadd.f32 %v1791_v59, %v1790_v20 }
 0x1ac   : > { %v2022_v54 = vpop.f32.mrf.mxu0 }
 0x1ad   : > { %1653 = vst.msk [vmem:[%s2814_s30 + $0x50] sm:$0xff] %vm1161_vm4, %v2022_v54  ;;  %v1756_v6 = vmul.f32 %v2022_v54, %v2022_v54  ;;  %v1694_v24 = vsel %vm1161_vm4, %v2022_v54, 0.0 }
 0x1ae   : > { %v1548_v49 = vpop.f32.mrf.mxu0 }
 0x1af   : > { %1651 = vst.msk [vmem:[%s2814_s30 + $0x40] sm:$0xff] %vm1161_vm4, %v1548_v49  ;;  %v1690_v63 = vsel %vm1161_vm4, %v1548_v49, 0.0  ;;  %v1754_v11 = vmul.f32 %v1548_v49, %v1548_v49  ;;  %v1797_v39 = vsel %vm1161_vm4, %v1756_v6, 0.0 }
 0x1b0   : > { %v1691_v0 = vadd.f32 %v1690_v63, %v1689_v51  ;;  %v2023_v9 = vpop.f32.mrf.mxu0 }
 0x1b1   : > { %v1793_v28 = vsel %vm1161_vm4, %v1754_v11, 0.0  ;;  %1654 = vst.msk [vmem:[%s2814_s30 + $0x58] sm:$0xff] %vm1161_vm4, %v2023_v9  ;;  %v1757_v26 = vmul.f32 %v2023_v9, %v2023_v9  ;;  %v1696_v4 = vsel %vm1161_vm4, %v2023_v9, 0.0 }
 0x1b2   : > { %v1794_v47 = vadd.f32 %v1793_v28, %v1792_v12  ;;  %v1551_v15 = vpop.f32.mrf.mxu0 }
 0x1b3   : > { %1652 = vst.msk [vmem:[%s2814_s30 + $0x48] sm:$0xff] %vm1161_vm4, %v1551_v15  ;;  %v1692_v31 = vsel %vm1161_vm4, %v1551_v15, 0.0  ;;  %v1755_v32 = vmul.f32 %v1551_v15, %v1551_v15  ;;  %v1799_v42 = vsel %vm1161_vm4, %v1757_v26, 0.0 }
 0x1b4   : > { %v1693_v33 = vadd.f32 %v1692_v31, %v1691_v0 }
 0x1b5   : > { %v1795_v35 = vsel %vm1161_vm4, %v1755_v32, 0.0 }
 0x1b6   : > { %v1695_v27 = vadd.f32 %v1694_v24, %v1693_v33  ;;  %v1796_v21 = vadd.f32 %v1795_v35, %v1794_v47 }
 0x1b8   : > { %v1798_v60 = vadd.f32 %v1797_v39, %v1796_v21  ;;  %v1697_v13 = vadd.f32 %v1696_v4, %v1695_v27 }
 0x1ba   : > { %v1800_v62 = vadd.f32 %v1799_v42, %v1798_v60 }
 0x1cc   : > { %v2026_v43 = vpop.f32.mrf.mxu0 }
 0x1cd   : > { %1657 = vst.msk [vmem:[%s2814_s30 + $0x70] sm:$0xff] %vm1161_vm4, %v2026_v43  ;;  %v1760_v40 = vmul.f32 %v2026_v43, %v2026_v43  ;;  %v1702_v44 = vsel %vm1161_vm4, %v2026_v43, 0.0 }
 0x1ce   : > { %v1564_v34 = vpop.f32.mrf.mxu0 }
 0x1cf   : > { %1655 = vst.msk [vmem:[%s2814_s30 + $0x60] sm:$0xff] %vm1161_vm4, %v1564_v34  ;;  %v1698_v22 = vsel %vm1161_vm4, %v1564_v34, 0.0  ;;  %v1758_v36 = vmul.f32 %v1564_v34, %v1564_v34  ;;  %v1805_v41 = vsel %vm1161_vm4, %v1760_v40, 0.0 }
 0x1d0   : > { %v1699_v30 = vadd.f32 %v1698_v22, %v1697_v13  ;;  %v2027_v46 = vpop.f32.mrf.mxu0 }
 0x1d1   : > { %v1801_v37 = vsel %vm1161_vm4, %v1758_v36, 0.0  ;;  %1658 = vst.msk [vmem:[%s2814_s30 + $0x78] sm:$0xff] %vm1161_vm4, %v2027_v46  ;;  %v1761_v53 = vmul.f32 %v2027_v46, %v2027_v46  ;;  %v1704_v2 = vsel %vm1161_vm4, %v2027_v46, 0.0 }
 0x1d2   : > { %v1802_v52 = vadd.f32 %v1801_v37, %v1800_v62  ;;  %v1567_v16 = vpop.f32.mrf.mxu0 }
 0x1d3   : > { %1656 = vst.msk [vmem:[%s2814_s30 + $0x68] sm:$0xff] %vm1161_vm4, %v1567_v16  ;;  %v1700_v55 = vsel %vm1161_vm4, %v1567_v16, 0.0  ;;  %v1759_v25 = vmul.f32 %v1567_v16, %v1567_v16  ;;  %v1807_v3 = vsel %vm1161_vm4, %v1761_v53, 0.0 }
 0x1d4   : > { %v1701_v45 = vadd.f32 %v1700_v55, %v1699_v30 }
 0x1d5   : > { %v1803_v61 = vsel %vm1161_vm4, %v1759_v25, 0.0 }
 0x1d6   : > { %v1703_v56 = vadd.f32 %v1702_v44, %v1701_v45  ;;  %v1804_v57 = vadd.f32 %v1803_v61, %v1802_v52 }
 0x1d8   : > { %v1806_v5 = vadd.f32 %v1805_v41, %v1804_v57  ;;  %v1705_v58 = vadd.f32 %v1704_v2, %v1703_v56 }
 0x1da   : > { %v1808_v1 = vadd.f32 %v1807_v3, %v1806_v5 }
 0x1ec   : > { %v2030_v7 = vpop.f32.mrf.mxu1 }
 0x1ed   : > { %1661 = vst.msk [vmem:[%s2814_s30 + $0x90] sm:$0xff] %vm1161_vm4, %v2030_v7  ;;  %v1764_v19 = vmul.f32 %v2030_v7, %v2030_v7  ;;  %v1710_v51 = vsel %vm1161_vm4, %v2030_v7, 0.0 }
 0x1ee   : > { %v1580_v8 = vpop.f32.mrf.mxu1 }
 0x1ef   : > { %1659 = vst.msk [vmem:[%s2814_s30 + $0x80] sm:$0xff] %vm1161_vm4, %v1580_v8  ;;  %v1706_v29 = vsel %vm1161_vm4, %v1580_v8, 0.0  ;;  %v1762_v14 = vmul.f32 %v1580_v8, %v1580_v8  ;;  %v1813_v63 = vsel %vm1161_vm4, %v1764_v19, 0.0 }
 0x1f0   : > { %v1707_v10 = vadd.f32 %v1706_v29, %v1705_v58  ;;  %v2031_v38 = vpop.f32.mrf.mxu1 }
 0x1f1   : > { %v1809_v17 = vsel %vm1161_vm4, %v1762_v14, 0.0  ;;  %1662 = vst.msk [vmem:[%s2814_s30 + $0x98] sm:$0xff] %vm1161_vm4, %v2031_v38  ;;  %v1765_v59 = vmul.f32 %v2031_v38, %v2031_v38  ;;  %v1712_v11 = vsel %vm1161_vm4, %v2031_v38, 0.0 }
 0x1f2   : > { %v1810_v18 = vadd.f32 %v1809_v17, %v1808_v1  ;;  %v1583_v50 = vpop.f32.mrf.mxu1 }
 0x1f3   : > { %1660 = vst.msk [vmem:[%s2814_s30 + $0x88] sm:$0xff] %vm1161_vm4, %v1583_v50  ;;  %v1708_v23 = vsel %vm1161_vm4, %v1583_v50, 0.0  ;;  %v1763_v48 = vmul.f32 %v1583_v50, %v1583_v50  ;;  %v1815_v28 = vsel %vm1161_vm4, %v1765_v59, 0.0 }
 0x1f4   : > { %v1709_v20 = vadd.f32 %v1708_v23, %v1707_v10 }
 0x1f5   : > { %v1811_v12 = vsel %vm1161_vm4, %v1763_v48, 0.0 }
 0x1f6   : > { %v1711_v54 = vadd.f32 %v1710_v51, %v1709_v20  ;;  %v1812_v49 = vadd.f32 %v1811_v12, %v1810_v18 }
 0x1f8   : > { %v1814_v0 = vadd.f32 %v1813_v63, %v1812_v49  ;;  %v1713_v9 = vadd.f32 %v1712_v11, %v1711_v54 }
 0x1fa   : > { %v1816_v47 = vadd.f32 %v1815_v28, %v1814_v0 }
 0x20c   : > { %v2034_v15 = vpop.f32.mrf.mxu1 }
 0x20d   : > { %1665 = vst.msk [vmem:[%s2814_s30 + $0xb0] sm:$0xff] %vm1161_vm4, %v2034_v15  ;;  %v1768_v34 = vmul.f32 %v2034_v15, %v2034_v15  ;;  %v1718_v36 = vsel %vm1161_vm4, %v2034_v15, 0.0 }
 0x20e   : > { %v1596_v6 = vpop.f32.mrf.mxu1 }
 0x20f   : > { %1663 = vst.msk [vmem:[%s2814_s30 + $0xa0] sm:$0xff] %vm1161_vm4, %v1596_v6  ;;  %v1766_v35 = vmul.f32 %v1596_v6, %v1596_v6  ;;  %v1714_v21 = vsel %vm1161_vm4, %v1596_v6, 0.0  ;;  %v1821_v46 = vsel %vm1161_vm4, %v1768_v34, 0.0 }
 0x210   : > { %v2035_v31 = vpop.f32.mrf.mxu1  ;;  %v1715_v13 = vadd.f32 %v1714_v21, %v1713_v9 }
 0x211   : > { %1666 = vst.msk [vmem:[%s2814_s30 + $0xb8] sm:$0xff] %vm1161_vm4, %v2035_v31  ;;  %v1817_v4 = vsel %vm1161_vm4, %v1766_v35, 0.0  ;;  %v1769_v37 = vmul.f32 %v2035_v31, %v2035_v31  ;;  %v1720_v40 = vsel %vm1161_vm4, %v2035_v31, 0.0 }
 0x212   : > { %v1599_v32 = vpop.f32.mrf.mxu1  ;;  %v1818_v62 = vadd.f32 %v1817_v4, %v1816_v47 }
 0x213   : > { %1664 = vst.msk [vmem:[%s2814_s30 + $0xa8] sm:$0xff] %vm1161_vm4, %v1599_v32  ;;  %v1767_v39 = vmul.f32 %v1599_v32, %v1599_v32  ;;  %v1716_v60 = vsel %vm1161_vm4, %v1599_v32, 0.0  ;;  %v1823_v44 = vsel %vm1161_vm4, %v1769_v37, 0.0 }
 0x214   : > { %v1717_v43 = vadd.f32 %v1716_v60, %v1715_v13 }
 0x215   : > { %v1819_v42 = vsel %vm1161_vm4, %v1767_v39, 0.0 }
 0x216   : > { %v1820_v22 = vadd.f32 %v1819_v42, %v1818_v62  ;;  %v1719_v30 = vadd.f32 %v1718_v36, %v1717_v43 }
 0x218   : > { %v1822_v16 = vadd.f32 %v1821_v46, %v1820_v22  ;;  %v1721_v45 = vadd.f32 %v1720_v40, %v1719_v30 }
 0x21a   : > { %v1824_v57 = vadd.f32 %v1823_v44, %v1822_v16 }
 0x22c   : > { %v2038_v33 = vpop.f32.mrf.mxu1 }
 0x22d   : > { %1669 = vst.msk [vmem:[%s2814_s30 + $0xd0] sm:$0xff] %vm1161_vm4, %v2038_v33  ;;  %v1772_v58 = vmul.f32 %v2038_v33, %v2038_v33  ;;  %v1726_v1 = vsel %vm1161_vm4, %v2038_v33, 0.0 }
 0x22e   : > { %v1612_v24 = vpop.f32.mrf.mxu1 }
 0x22f   : > { %1667 = vst.msk [vmem:[%s2814_s30 + $0xc0] sm:$0xff] %vm1161_vm4, %v1612_v24  ;;  %v1770_v52 = vmul.f32 %v1612_v24, %v1612_v24  ;;  %v1722_v55 = vsel %vm1161_vm4, %v1612_v24, 0.0  ;;  %v1829_v29 = vsel %vm1161_vm4, %v1772_v58, 0.0 }
 0x230   : > { %v2039_v26 = vpop.f32.mrf.mxu1  ;;  %v1723_v56 = vadd.f32 %v1722_v55, %v1721_v45 }
 0x231   : > { %1670 = vst.msk [vmem:[%s2814_s30 + $0xd8] sm:$0xff] %vm1161_vm4, %v2039_v26  ;;  %v1825_v53 = vsel %vm1161_vm4, %v1770_v52, 0.0  ;;  %v1773_v14 = vmul.f32 %v2039_v26, %v2039_v26  ;;  %v1728_v17 = vsel %vm1161_vm4, %v2039_v26, 0.0 }
 0x232   : > { %v1615_v27 = vpop.f32.mrf.mxu1  ;;  %v1826_v2 = vadd.f32 %v1825_v53, %v1824_v57 }
 0x233   : > { %1668 = vst.msk [vmem:[%s2814_s30 + $0xc8] sm:$0xff] %vm1161_vm4, %v1615_v27  ;;  %v1771_v25 = vmul.f32 %v1615_v27, %v1615_v27  ;;  %v1724_v61 = vsel %vm1161_vm4, %v1615_v27, 0.0  ;;  %v1831_v48 = vsel %vm1161_vm4, %v1773_v14, 0.0 }
 0x234   : > { %v1725_v5 = vadd.f32 %v1724_v61, %v1723_v56 }
 0x235   : > { %v1827_v41 = vsel %vm1161_vm4, %v1771_v25, 0.0 }
 0x236   : > { %v1828_v3 = vadd.f32 %v1827_v41, %v1826_v2  ;;  %v1727_v7 = vadd.f32 %v1726_v1, %v1725_v5 }
 0x238   : > { %v1830_v10 = vadd.f32 %v1829_v29, %v1828_v3  ;;  %v1729_v19 = vadd.f32 %v1728_v17, %v1727_v7 }
 0x23a   : > { %v1832_v59 = vadd.f32 %v1831_v48, %v1830_v10 }
 0x249   : > { %v2042_v8 = vpop.f32.mrf.mxu1 }
 0x24a   : > { %1673 = vst.msk [vmem:[%s2814_s30 + $0xf0] sm:$0xff] %vm1161_vm4, %v2042_v8  ;;  %v1776_v54 = vmul.f32 %v2042_v8, %v2042_v8  ;;  %v1734_v9 = vsel %vm1161_vm4, %v2042_v8, 0.0 }
 0x24b   : > { %v1628_v38 = vpop.f32.mrf.mxu1 }
 0x24c   : > { %1671 = vst.msk [vmem:[%s2814_s30 + $0xe0] sm:$0xff] %vm1161_vm4, %v1628_v38  ;;  %v1730_v18 = vsel %vm1161_vm4, %v1628_v38, 0.0  ;;  %v1774_v50 = vmul.f32 %v1628_v38, %v1628_v38  ;;  %v1837_v31 = vsel %vm1161_vm4, %v1776_v54, 0.0 }
 0x24d   : > { %v2043_v23 = vpop.f32.mrf.mxu1  ;;  %v1731_v51 = vadd.f32 %v1730_v18, %v1729_v19 }
 0x24e   : > { %v1833_v20 = vsel %vm1161_vm4, %v1774_v50, 0.0  ;;  %1674 = vst.msk [vmem:[%s2814_s30 + $0xf8] sm:$0xff] %vm1161_vm4, %v2043_v23  ;;  %v1777_v28 = vmul.f32 %v2043_v23, %v2043_v23  ;;  %v1736_v32 = vsel %vm1161_vm4, %v2043_v23, 0.0 }
 0x24f   : > { %v1631_v12 = vpop.f32.mrf.mxu1  ;;  %v1834_v11 = vadd.f32 %v1833_v20, %v1832_v59 }
 0x250   : > { %1672 = vst.msk [vmem:[%s2814_s30 + $0xe8] sm:$0xff] %vm1161_vm4, %v1631_v12  ;;  %v1732_v49 = vsel %vm1161_vm4, %v1631_v12, 0.0  ;;  %v1775_v63 = vmul.f32 %v1631_v12, %v1631_v12  ;;  %v1839_v26 = vsel %vm1161_vm4, %v1777_v28, 0.0 }
 0x251   : > { %v1733_v0 = vadd.f32 %v1732_v49, %v1731_v51 }
 0x252   : > { %v1835_v47 = vsel %vm1161_vm4, %v1775_v63, 0.0 }
 0x253   : > { %v1735_v15 = vadd.f32 %v1734_v9, %v1733_v0  ;;  %v1836_v6 = vadd.f32 %v1835_v47, %v1834_v11 }
 0x255   : > { %v1737_v33 = vadd.f32 %v1736_v32, %v1735_v15  ;;  %v1838_v24 = vadd.f32 %v1837_v31, %v1836_v6 }
 0x257   : > { %v1738_v35 = vrot.slane %v1737_v33, 4  ;;  %v1840_v27 = vadd.f32 %v1839_v26, %v1838_v24 }
 0x259   : > { %v1739_v21 = vadd.f32 %v1738_v35, %v1737_v33  ;;  %v1841_v39 = vrot.slane %v1840_v27, 4 }
 0x25b   : > { %v1740_v4 = vrot.slane %v1739_v21, 2  ;;  %v1842_v60 = vadd.f32 %v1841_v39, %v1840_v27 }
 0x25d   : > { %v1741_v13 = vadd.f32 %v1740_v4, %v1739_v21  ;;  %v1843_v42 = vrot.slane %v1842_v60, 2 }
 0x25f   : > { %v1742_v62 = vrot.slane %v1741_v13, 1  ;;  %v1844_v43 = vadd.f32 %v1843_v42, %v1842_v60 }
 0x261   : > { %v1743_v34 = vadd.f32 %v1742_v62, %v1741_v13  ;;  %v1845_v22 = vrot.slane %v1844_v43, 1 }
 0x263   : > { %1745 = vst.msk [vmem:[%s265_s8] sm:$0x1] %vm1744_vm13, %v1743_v34  ;;  %v1846_v36 = vadd.f32 %v1845_v22, %v1844_v43 }
 0x265   : > { %1847 = vst.msk [vmem:[%s268_s11] sm:$0x1] %vm1744_vm13, %v1846_v36 }
 0x266 PF: > { %s17_s21 = sadd.s32 1, %s2080_s21  }
 0x267   : > { %p14_p4 = scmp.ge.s32.totalorder %s17_s21, 4  }
 0x269   :  { %16 = sbr.rel (!%p14_p4) target bundleno = 1 (0x1), region = 90 }

// kernel: basic_block_forward.3
= control target key start
LH: loop header
LB: loop body
LE: loop exit
PB: predicated region body
PF: predicated region fallthrough
CT: control target
= control target key end

     0   :  { %s2828_s24 = smov 0   ;;  %s4014_s0 = inlined_call_operand.vmem [shape: bf16[2,18,18,4], index: 0, kind: input, shape index: {}]   ;;  %s4015_s1 = inlined_call_operand.vmem [shape: bf16[36,4], index: 1, kind: input, shape index: {}]   ;;  %s4016_s2 = inlined_call_operand.vmem [shape: f32[2,16,16,4], index: 2, kind: output, shape index: {0}]   ;;  %s4017_s3 = inlined_call_operand.vmem [shape: f32[2,16,16,4], index: 3, kind: output, shape index: {1}]   ;;  %s4018_s4 = inlined_call_operand.vmem [shape: f32[2,1,4], index: 4, kind: output, shape index: {2}]   ;;  %s4019_s5 = inlined_call_operand.vmem [shape: f32[2,1,4], index: 5, kind: output, shape index: {3}]   ;;  %s4020_s6 = inlined_call_operand.vmem [shape: f32[2,1,4], index: 6, kind: output, shape index: {4}]   ;;  %s4021_s7 = inlined_call_operand.vmem [shape: f32[2,1,4], index: 7, kind: output, shape index: {5}]  }
   0x1 LB: > { %s2581_s25 = sadd.s32 4294967295, %s2778_s24   ;;  %p2585_p0 = scmp.ge.s32.totalorder %s2778_s24, 1  ;;  %s2778_s24 = sphi %s2828_s24, %s18_s24  }
   0x2   : > { %p248_p1 = scmp.lt.s32.totalorder %s2778_s24, 3 }
   0x4   : > { %p249_p2 = pnand %p2585_p0, %p248_p1 }
   0x5   : > { %p297_p3 = scmp.lt.s32.totalorder (!%p249_p2), %s2581_s25, 1  ;;  %s2780_s30 = smov (!%p249_p2), 12  }
   0x6   : > { %252 = sbr.rel (%p249_p2) target bundleno = 616 (0x268), region = 28  ;;  %s2781_s9 = smov (!%p249_p2), 20  }
   0x7   : > { %s2782_s13 = smov (!%p249_p2), 8   ;;  %s2783_s14 = smov (!%p249_p2), 4  }
   0x8   : > { %s2784_s15 = smov (!%p249_p2), 16   ;;  %s2785_s16 = smov (!%p249_p2), 24  }
   0x9   : > { %s2786_s17 = smov (!%p249_p2), 28   ;;  %s2787_s18 = smov (!%p249_p2), 32  }
   0xb   : > { %s4025_s25 = smov (!%p297_p3, %s2581_s25), 1  ;;  %vm1533_vm0 = vsmask.f32 3328  ;;  %vm1534_vm1 = vsmask.f32 7440  ;;  %vm732_vm2 = vcmask 1046528  }
   0xc   : > { %s2715_s26 = smul.u32 216, %s4025_s25  ;;  %vm507_vm3 = vsmask.f32 7424  ;;  %vm1051_vm4 = vcmask 31744   ;;  %vm2870_vm5 = vmor %vm1533_vm0, %vm1534_vm1  ;;  %s2648_s8 = sshll.u32 %s4025_s25, 8  ;;  %vm1368_vm6 = vcmask 1041408  }
   0xd   : > { %s2884_s12 = scalar_lea.vmem %s4017_s3, %s2648_s8  ;;  %vm1084_vm7 = vcmask 64512   ;;  %vm1117_vm8 = vcmask 97280   ;;  %vm1150_vm9 = vcmask 130048   ;;  %vm1183_vm10 = vcmask 162816  }
   0xe   : > { %s2842_s29 = scalar_lea.vmem %s4014_s0, %s2715_s26  ;;  %vm1216_vm11 = vcmask 195584   ;;  %vm1249_vm12 = vcmask 228352   ;;  %vm1282_vm13 = vcmask 261120   ;;  %vm1335_vm14 = vcmask 293888  }
   0xf   : > { %v331_v0 = vld [vmem:[%s2842_s29 + $0x18] sm:$0xf]  ;;  %v2846_v1 = vld [vmem:[%s2842_s29 + $0x1c] sm:$0xf]  ;;  %v328_v2 = vld [vmem:[%s2842_s29 + $0xc] sm:$0xf] }
  0x10   : > { %v2850_v3 = vcombine.low %v331_v0, %v2846_v1  ;;  %v1561_v4 = vshrl.u32 %v331_v0, 16  ;;  %v1564_v5 = vshll.u32 %v331_v0, 16  ;;  %v1570_v6 = vshll.u32 %v2846_v1, 16  ;;  %v329_v7 = vld [vmem:[%s2842_s29 + $0x10] sm:$0xf]  ;;  %v2735_v13 = vld [vmem:[%s2842_s29] sm:$0xff]  }
  0x11   : > { %v1574_v8 = vshrl.u32 %v2846_v1, 16  ;;  %v2855_v9 = vcombine.low %v328_v2, %v329_v7  ;;  %v1537_v10 = vshrl.u32 %v328_v2, 16  ;;  %v1540_v11 = vshll.u32 %v328_v2, 16  ;;  %v330_v12 = vld [vmem:[%s2842_s29 + $0x14] sm:$0x1] }
  0x12   : > { %v1563_v14 = vrot.slane %v1561_v4, 4  ;;  %v1566_v15 = vrot.slane %v1564_v5, 5  ;;  %820 = vrot.lane.b32.xlu1 %v2850_v3, %s2780_s30  ;;  %v1546_v16 = vshll.u32 %v329_v7, 16  ;;  %v1550_v17 = vshrl.u32 %v329_v7, 16  ;;  %v333_v36 = vld [vmem:[%s2842_s29 + $0x20] sm:$0x1] }
  0x13   : > { %v1539_v18 = vrot.slane %v1537_v10, 4  ;;  %v1542_v19 = vrot.slane %v1540_v11, 5  ;;  %818 = vrot.lane.b32.xlu0 %v2855_v9, %s2780_s30  ;;  %v2863_v20 = vcombine.low %v330_v12, %v330_v12  ;;  %v736_v21 = vrot.slane %v2855_v9, 1  ;;  %v2736_v28 = vld [vmem:[%s2842_s29 + $0x8] ss:$0 sps:$4 sm:$0x11]  }
  0x14   : > { %v1567_v22 = vor.u32 %v1566_v15, %v1563_v14  ;;  %v1548_v23 = vrot.slane %v1546_v16, 5  ;;  %v1552_v24 = vrot.slane %v1550_v17, 4  ;;  %v1556_v25 = vshll.u32 %v330_v12, 16  ;;  %v334_v15 = vld [vmem:[%s2842_s29 + $0x24] sm:$0xf] }
  0x15   : > { %v1543_v26 = vor.u32 %v1542_v19, %v1539_v18  ;;  %v737_v27 = vrot.slane %v2863_v20, 1  ;;  %v733_v29 = vrot.slane %v2735_v13, 1  ;;  %v509_v30 = vshrl.u32 %v2735_v13, 16  ;;  %v335_v16 = vld [vmem:[%s2842_s29 + $0x28] sm:$0xf] }
  0x16   : > { %v1568_v31 = vrot.slane %v1567_v22, 4  ;;  %v1553_v33 = vor.u32 %v1552_v24, %v1548_v23  ;;  %v1558_v34 = vrot.slane %v1556_v25, 5  ;;  %v511_v35 = vshll.u32 %v2735_v13, 16 }
  0x17   : > { %v1544_v37 = vrot.slane %v1543_v26, 4  ;;  %v738_v38 = vsel %vm732_vm2, %v736_v21, %v737_v27  ;;  %v734_v39 = vrot.slane %v2736_v28, 1  ;;  %v516_v40 = vshll.u32 %v2736_v28, 16 }
  0x18   : > { %v1554_v41 = vrot.slane %v1553_v33, 4  ;;  %900 = vrot.lane.b32.xlu0 %v738_v38, %s2781_s9  ;;  %v513_v42 = vrot.slane %v511_v35, 1  ;;  %v2609_v43 = vcombine.low %v333_v36, %v333_v36  ;;  %v739_v44 = vrot.slane %v2850_v3, 1 }
  0x19   : > { %v1549_v45 = vsel %vm2870_vm5, %v1544_v37, %v1548_v23  ;;  %v735_v46 = vsel %vm732_vm2, %v733_v29, %v734_v39  ;;  %v518_v47 = vrot.slane %v516_v40, 1  ;;  %v1572_v48 = vrot.slane %v1570_v6, 5 }
  0x1a   : > { %v1952_v49 = vunpack.c.l.bf16 %v1549_v45  ;;  %v1559_v50 = vsel %vm2870_vm5, %v1554_v41, %v1558_v34  ;;  %781 = vrot.lane.b32.xlu1 %v735_v46, %s2782_s13  ;;  %v514_v51 = vor.u32 %v513_v42, %v509_v30  ;;  %v740_v52 = vrot.slane %v2609_v43, 1  ;;  %v336_v34 = vld [vmem:[%s2842_s29 + $0x2c] sm:$0x1] }
  0x1b   : > { %v1953_v53 = vunpack.c.l.bf16 %v1559_v50  ;;  %v1573_v54 = vsel %vm2870_vm5, %v1568_v31, %v1572_v48  ;;  %v1576_v55 = vrot.slane %v1574_v8, 4  ;;  %v1580_v56 = vshll.u32 %v333_v36, 16 }
  0x1c   : > { %2016 = vst.msk [vmem:[%s2884_s12] sm:$0xff] %vm1051_vm4, %v1952_v49  ;;  %v2221_v57 = vsel %vm1051_vm4, %v1952_v49, 0.0  ;;  %v2291_v58 = vmul.f32 %v1952_v49, %v1952_v49  ;;  %v519_v59 = vsel %vm507_vm3, %v514_v51, %v518_v47  ;;  %v2899_v60 = vsel %vm732_vm2, %v739_v44, %v740_v52 }
  0x1d   : > { %2017 = vst.msk [vmem:[%s2884_s12 + $0x8] sm:$0xff] %vm1051_vm4, %v1953_v53  ;;  %v2222_v61 = vsel %vm1051_vm4, %v1953_v53, 0.0  ;;  %v2292_v62 = vmul.f32 %v1953_v53, %v1953_v53  ;;  %700 = vrot.lane.b32.xlu0 %v519_v59, %s2783_s14  ;;  %v1577_v63 = vor.u32 %v1576_v55, %v1572_v48  ;;  %v1582_v0 = vrot.slane %v1580_v56, 5  ;;  %v338_v55 = vld [vmem:[%s2842_s29 + $0x34] sm:$0xf] }
  0x1e   : > { %v2223_v1 = vadd.f32 %v2222_v61, %v2221_v57  ;;  %v2323_v2 = vsel %vm1051_vm4, %v2291_v58, 0.0  ;;  %783 = vrot.lane.b32.xlu1 %v738_v38, %s2782_s13  ;;  %v1954_v4 = vunpack.c.l.bf16 %v1573_v54  ;;  %v521_v5 = vshrl.u32 %v2855_v9, 16  ;;  %v337_v54 = vld [vmem:[%s2842_s29 + $0x30] sm:$0xf] }
  0x1f   : > { %v2324_v6 = vsel %vm1051_vm4, %v2292_v62, 0.0  ;;  %v1578_v7 = vrot.slane %v1577_v63, 4  ;;  %v523_v8 = vshll.u32 %v2855_v9, 16  ;;  %v528_v10 = vshll.u32 %v2863_v20, 16 }
  0x20   : > { %v2325_v11 = vadd.f32 %v2324_v6, %v2323_v2  ;;  %2018 = vst.msk [vmem:[%s2884_s12 + $0x10] sm:$0xff] %vm1051_vm4, %v1954_v4  ;;  %v2224_v12 = vsel %vm1051_vm4, %v1954_v4, 0.0  ;;  %v2293_v13 = vmul.f32 %v1954_v4, %v1954_v4  ;;  %v533_v14 = vshrl.u32 %v2850_v3, 16 }
  0x21   : > { %v1583_v17 = vsel %vm2870_vm5, %v1578_v7, %v1582_v0  ;;  %v2225_v18 = vadd.f32 %v2224_v12, %v2223_v1  ;;  %v525_v19 = vrot.slane %v523_v8, 1  ;;  %v530_v21 = vrot.slane %v528_v10, 1 }
  0x22   : > { %v1955_v22 = vunpack.c.l.bf16 %v1583_v17  ;;  %v2326_v20 = vsel %vm1051_vm4, %v2293_v13, 0.0  ;;  %902 = vrot.lane.b32.xlu1 %v2899_v60, %s2781_s9  ;;  %v535_v23 = vshll.u32 %v2850_v3, 16  ;;  %v540_v24 = vshll.u32 %v2609_v43, 16  ;;  %v339_v13 = vld [vmem:[%s2842_s29 + $0x38] sm:$0x1] }
  0x23   : > { %v2327_v25 = vadd.f32 %v2326_v20, %v2325_v11  ;;  %v526_v26 = vor.u32 %v525_v19, %v521_v5  ;;  %v2923_v27 = vcombine.low %v334_v15, %v335_v16  ;;  %v1585_v28 = vshrl.u32 %v334_v15, 16 }
  0x24   : > { %2019 = vst.msk [vmem:[%s2884_s12 + $0x18] sm:$0xff] %vm1051_vm4, %v1955_v22  ;;  %v2226_v29 = vsel %vm1051_vm4, %v1955_v22, 0.0  ;;  %v2294_v30 = vmul.f32 %v1955_v22, %v1955_v22  ;;  %v537_v31 = vrot.slane %v535_v23, 1  ;;  %v542_v33 = vrot.slane %v540_v24, 1 }
  0x25   : > { %v2227_v35 = vadd.f32 %v2226_v29, %v2225_v18  ;;  %v531_v36 = vsel %vm507_vm3, %v526_v26, %v530_v21  ;;  %v1587_v37 = vrot.slane %v1585_v28, 4  ;;  %v1588_v38 = vshll.u32 %v334_v15, 16 }
  0x26   : > { %v2328_v39 = vsel %vm1051_vm4, %v2294_v30, 0.0  ;;  %702 = vrot.lane.b32.xlu0 %v531_v36, %s2783_s14  ;;  %v538_v40 = vor.u32 %v537_v31, %v533_v14  ;;  %v1594_v41 = vshll.u32 %v335_v16, 16  ;;  %v1598_v42 = vshrl.u32 %v335_v16, 16 }
  0x27   : > { %v2329_v43 = vadd.f32 %v2328_v39, %v2327_v25  ;;  %v1590_v44 = vrot.slane %v1588_v38, 5  ;;  %v2932_v45 = vcombine.low %v336_v34, %v336_v34  ;;  %v545_v46 = vshrl.u32 %v2923_v27, 16 }
  0x28   : > { %v543_v47 = vsel %vm507_vm3, %v538_v40, %v542_v33  ;;  %v1596_v48 = vrot.slane %v1594_v41, 5  ;;  %v1600_v49 = vrot.slane %v1598_v42, 4  ;;  %v547_v50 = vshll.u32 %v2923_v27, 16  ;;  %v340_v41 = vld [vmem:[%s2842_s29 + $0x3c] sm:$0xf] }
  0x29   : > { %867 = vrot.lane.b32.xlu1 %v543_v47, %s2784_s15  ;;  %v1591_v51 = vor.u32 %v1590_v44, %v1587_v37  ;;  %v552_v52 = vshll.u32 %v2932_v45, 16  ;;  %v1604_v53 = vshll.u32 %v336_v34, 16  ;;  %v1609_v62 = vshrl.u32 %v337_v54, 16 }
  0x2a   : > { %865 = vrot.lane.b32.xlu0 %v531_v36, %s2784_s15  ;;  %v549_v56 = vrot.slane %v547_v50, 1  ;;  %v1601_v57 = vor.u32 %v1600_v49, %v1596_v48  ;;  %v2942_v1 = vcombine.low %v337_v54, %v338_v55  ;;  %v1612_v2 = vshll.u32 %v337_v54, 16 }
  0x2b   : > { %v1592_v58 = vrot.slane %v1591_v51, 4  ;;  %v554_v59 = vrot.slane %v552_v52, 1  ;;  %v1606_v61 = vrot.slane %v1604_v53, 5  ;;  %v1611_v5 = vrot.slane %v1609_v62, 4  ;;  %v341_v52 = vld [vmem:[%s2842_s29 + $0x40] sm:$0xf] }
  0x2c   : > { %v550_v63 = vor.u32 %v549_v56, %v545_v46  ;;  %v1602_v0 = vrot.slane %v1601_v57, 4  ;;  %v1618_v6 = vshll.u32 %v338_v55, 16  ;;  %v1622_v7 = vshrl.u32 %v338_v55, 16 }
  0x2d   : > { %v1597_v4 = vsel %vm2870_vm5, %v1592_v58, %v1596_v48  ;;  %939 = vrot.lane.b32.xlu1 %v2923_v27, %s2785_s16  ;;  %v1614_v12 = vrot.slane %v1612_v2, 5  ;;  %v742_v19 = vrot.slane %v2923_v27, 1  ;;  %v2965_v24 = vcombine.low %v339_v13, %v339_v13 }
  0x2e   : > { %v1956_v8 = vunpack.c.l.bf16 %v1597_v4  ;;  %937 = vrot.lane.b32.xlu0 %v2850_v3, %s2785_s16  ;;  %v2951_v10 = vsel %vm507_vm3, %v550_v63, %v554_v59  ;;  %v1607_v11 = vsel %vm2870_vm5, %v1602_v0, %v1606_v61  ;;  %v1620_v15 = vrot.slane %v1618_v6, 5 }
  0x2f   : > { %v1957_v14 = vunpack.c.l.bf16 %v1607_v11  ;;  %v1624_v16 = vrot.slane %v1622_v7, 4  ;;  %v1615_v21 = vor.u32 %v1614_v12, %v1611_v5  ;;  %v559_v28 = vshll.u32 %v2942_v1, 16  ;;  %v342_v5 = vld [vmem:[%s2842_s29 + $0x44] sm:$0x1] }
  0x30   : > { %2020 = vst.msk [vmem:[%s2884_s12 + $0x20] sm:$0xff] %vm1051_vm4, %v1956_v8  ;;  %v2228_v17 = vsel %vm1051_vm4, %v1956_v8, 0.0  ;;  %v2295_v18 = vmul.f32 %v1956_v8, %v1956_v8  ;;  %v743_v34 = vrot.slane %v2932_v45, 1  ;;  %v1628_v37 = vshll.u32 %v339_v13, 16 }
  0x31   : > { %2021 = vst.msk [vmem:[%s2884_s12 + $0x28] sm:$0xff] %vm1051_vm4, %v1957_v14  ;;  %v2229_v22 = vadd.f32 %v2228_v17, %v2227_v35  ;;  %v2230_v20 = vsel %vm1051_vm4, %v1957_v14, 0.0  ;;  %v2296_v23 = vmul.f32 %v1957_v14, %v1957_v14  ;;  %986 = vrot.lane.b32.xlu1 %v2951_v10, %s2786_s17  ;;  %v1616_v26 = vrot.slane %v1615_v21, 4 }
  0x32   : > { %v2330_v25 = vsel %vm1051_vm4, %v2295_v18, 0.0  ;;  %984 = vrot.lane.b32.xlu0 %v543_v47, %s2786_s17  ;;  %v1625_v29 = vor.u32 %v1624_v16, %v1620_v15  ;;  %v557_v40 = vshrl.u32 %v2942_v1, 16  ;;  %v561_v42 = vrot.slane %v559_v28, 1 }
  0x33   : > { %v2231_v30 = vadd.f32 %v2230_v20, %v2229_v22  ;;  %v2331_v31 = vadd.f32 %v2330_v25, %v2329_v43  ;;  %v2332_v33 = vsel %vm1051_vm4, %v2296_v23, 0.0  ;;  %v1621_v35 = vsel %vm2870_vm5, %v1616_v26, %v1620_v15  ;;  %v343_v20 = vld [vmem:[%s2842_s29 + $0x48] sm:$0xf]  ;;  %v344_v26 = vld [vmem:[%s2842_s29 + $0x4c] sm:$0xf] }
  0x34   : > { %v1626_v36 = vrot.slane %v1625_v29, 4  ;;  %v1958_v39 = vunpack.c.l.bf16 %v1621_v35  ;;  %v564_v43 = vshll.u32 %v2965_v24, 16  ;;  %v1630_v44 = vrot.slane %v1628_v37, 5 }
  0x35   : > { %v2333_v38 = vadd.f32 %v2332_v33, %v2331_v31  ;;  %704 = vrot.lane.b32.xlu1 %v543_v47, %s2783_s14  ;;  %v1633_v45 = vshrl.u32 %v340_v41, 16  ;;  %v2981_v46 = vsel %vm732_vm2, %v742_v19, %v743_v34  ;;  %v1636_v49 = vshll.u32 %v340_v41, 16 }
  0x36   : > { %1019 = vrot.lane.b32.xlu0 %v2899_v60, %s2787_s18  ;;  %2022 = vst.msk [vmem:[%s2884_s12 + $0x30] sm:$0xff] %vm1051_vm4, %v1958_v39  ;;  %v2232_v47 = vsel %vm1051_vm4, %v1958_v39, 0.0  ;;  %v2297_v48 = vmul.f32 %v1958_v39, %v1958_v39  ;;  %v1631_v50 = vsel %vm2870_vm5, %v1626_v36, %v1630_v44  ;;  %v1642_v57 = vshll.u32 %v341_v52, 16 }
  0x37   : > { %v2233_v51 = vadd.f32 %v2232_v47, %v2231_v30  ;;  %v1635_v53 = vrot.slane %v1633_v45, 4  ;;  %v1959_v54 = vunpack.c.l.bf16 %v1631_v50  ;;  %v1638_v56 = vrot.slane %v1636_v49, 5 }
  0x38   : > { %v2334_v55 = vsel %vm1051_vm4, %v2297_v48, 0.0  ;;  %v562_v58 = vor.u32 %v561_v42, %v557_v40  ;;  %v566_v59 = vrot.slane %v564_v43, 1  ;;  %v1646_v62 = vshrl.u32 %v341_v52, 16 }
  0x39   : > { %706 = vrot.lane.b32.xlu1 %v2951_v10, %s2783_s14  ;;  %v2335_v61 = vadd.f32 %v2334_v55, %v2333_v38  ;;  %2023 = vst.msk [vmem:[%s2884_s12 + $0x38] sm:$0xff] %vm1051_vm4, %v1959_v54  ;;  %v2234_v63 = vsel %vm1051_vm4, %v1959_v54, 0.0  ;;  %v2298_v0 = vmul.f32 %v1959_v54, %v1959_v54  ;;  %v1639_v2 = vor.u32 %v1638_v56, %v1635_v53 }
  0x3a   : > { %1021 = vrot.lane.b32.xlu0 %v2981_v46, %s2787_s18  ;;  %v1644_v4 = vrot.slane %v1642_v57, 5  ;;  %v2235_v6 = vadd.f32 %v2234_v63, %v2233_v51  ;;  %v2998_v7 = vcombine.low %v340_v41, %v341_v52  ;;  %v1648_v8 = vrot.slane %v1646_v62, 4  ;;  %v345_v52 = vld [vmem:[%s2842_s29 + $0x50] sm:$0x1]  ;;  %v3046_v63 = vld [vmem:[%s2842_s29 + $0x54] sm:$0xf] }
  0x3b   : > { %v2336_v11 = vsel %vm1051_vm4, %v2298_v0, 0.0  ;;  %v1640_v12 = vrot.slane %v1639_v2, 4  ;;  %v1652_v13 = vshll.u32 %v342_v5, 16  ;;  %v745_v15 = vrot.slane %v2942_v1, 1 }
  0x3c   : > { %v2337_v14 = vadd.f32 %v2336_v11, %v2335_v61  ;;  %v3006_v16 = vcombine.low %v342_v5, %v342_v5  ;;  %v1649_v17 = vor.u32 %v1648_v8, %v1644_v4  ;;  %v3009_v18 = vsel %vm507_vm3, %v562_v58, %v566_v59 }
  0x3d   : > { %787 = vrot.lane.b32.xlu1 %v2981_v46, %s2782_s13  ;;  %v746_v19 = vrot.slane %v2965_v24, 1  ;;  %v1645_v21 = vsel %vm2870_vm5, %v1640_v12, %v1644_v4  ;;  %v1654_v22 = vrot.slane %v1652_v13, 5  ;;  %v1657_v28 = vshrl.u32 %v343_v20, 16  ;;  %v3052_v4 = vld [vmem:[%s2842_s29 + $0x58] sm:$0xf] }
  0x3e   : > { %785 = vrot.lane.b32.xlu0 %v2899_v60, %s2782_s13  ;;  %v1960_v23 = vunpack.c.l.bf16 %v1645_v21  ;;  %v571_v60 = vshll.u32 %v2998_v7, 16  ;;  %v1650_v25 = vrot.slane %v1649_v17, 4  ;;  %v569_v29 = vshrl.u32 %v2998_v7, 16 }
  0x3f   : > { %v1660_v30 = vshll.u32 %v343_v20, 16  ;;  %v1666_v31 = vshll.u32 %v344_v26, 16  ;;  %v1670_v33 = vshrl.u32 %v344_v26, 16  ;;  %v576_v24 = vshll.u32 %v3006_v16, 16 }
  0x40   : > { %2024 = vst.msk [vmem:[%s2884_s12 + $0x40] sm:$0xff] %vm1051_vm4, %v1960_v23  ;;  %v1655_v34 = vsel %vm2870_vm5, %v1650_v25, %v1654_v22  ;;  %v2236_v35 = vsel %vm1051_vm4, %v1960_v23, 0.0  ;;  %v2299_v36 = vmul.f32 %v1960_v23, %v1960_v23  ;;  %v1659_v39 = vrot.slane %v1657_v28, 4 }
  0x41   : > { %824 = vrot.lane.b32.xlu1 %v2942_v1, %s2780_s30  ;;  %v1961_v37 = vunpack.c.l.bf16 %v1655_v34  ;;  %v2237_v38 = vadd.f32 %v2236_v35, %v2235_v6  ;;  %v1662_v40 = vrot.slane %v1660_v30, 5  ;;  %v573_v41 = vrot.slane %v571_v60, 1  ;;  %v348_v34 = vld [vmem:[%s2842_s29 + $0x5c] sm:$0x1] }
  0x42   : > { %822 = vrot.lane.b32.xlu0 %v2923_v27, %s2780_s30  ;;  %v2338_v42 = vsel %vm1051_vm4, %v2299_v36, 0.0  ;;  %v1668_v43 = vrot.slane %v1666_v31, 5  ;;  %v1672_v44 = vrot.slane %v1670_v33, 4  ;;  %v3037_v50 = vsel %vm732_vm2, %v745_v15, %v746_v19 }
  0x43   : > { %2025 = vst.msk [vmem:[%s2884_s12 + $0x48] sm:$0xff] %vm1051_vm4, %v1961_v37  ;;  %v2238_v45 = vsel %vm1051_vm4, %v1961_v37, 0.0  ;;  %v2300_v47 = vmul.f32 %v1961_v37, %v1961_v37  ;;  %v2339_v48 = vadd.f32 %v2338_v42, %v2337_v14  ;;  %v1663_v49 = vor.u32 %v1662_v40, %v1659_v39  ;;  %v3092_v42 = vld [vmem:[%s2842_s29 + $0x60] sm:$0xf] }
  0x44   : > { %v2239_v51 = vadd.f32 %v2238_v45, %v2237_v38  ;;  %v1673_v55 = vor.u32 %v1672_v44, %v1668_v43  ;;  %v1676_v56 = vshll.u32 %v345_v52, 16  ;;  %v574_v57 = vor.u32 %v573_v41, %v569_v29 }
  0x45   : > { %871 = vrot.lane.b32.xlu1 %v3009_v18, %s2784_s15  ;;  %v2340_v53 = vsel %vm1051_vm4, %v2300_v47, 0.0  ;;  %v1664_v54 = vrot.slane %v1663_v49, 4  ;;  %v578_v58 = vrot.slane %v576_v24, 1  ;;  %v748_v0 = vrot.slane %v2998_v7, 1 }
  0x46   : > { %869 = vrot.lane.b32.xlu0 %v2951_v10, %s2784_s15  ;;  %v2341_v59 = vadd.f32 %v2340_v53, %v2339_v48  ;;  %v1674_v61 = vrot.slane %v1673_v55, 4  ;;  %v1678_v62 = vrot.slane %v1676_v56, 5  ;;  %v1681_v5 = vshrl.u32 %v3046_v63, 16  ;;  %v3097_v48 = vld [vmem:[%s2842_s29 + $0x64] sm:$0xf] }
  0x47   : > { %v1669_v10 = vsel %vm2870_vm5, %v1664_v54, %v1668_v43  ;;  %v3055_v6 = vcombine.low %v343_v20, %v344_v26  ;;  %v1684_v11 = vshll.u32 %v3046_v63, 16  ;;  %v1690_v12 = vshll.u32 %v3052_v4, 16 }
  0x48   : > { %v1962_v2 = vunpack.c.l.bf16 %v1669_v10  ;;  %v1679_v8 = vsel %vm2870_vm5, %v1674_v61, %v1678_v62  ;;  %v3062_v13 = vsel %vm507_vm3, %v574_v57, %v578_v58  ;;  %v1683_v19 = vrot.slane %v1681_v5, 4 }
  0x49   : > { %906 = vrot.lane.b32.xlu1 %v3037_v50, %s2781_s9  ;;  %v1686_v21 = vrot.slane %v1684_v11, 5  ;;  %v1692_v22 = vrot.slane %v1690_v12, 5  ;;  %v1694_v25 = vshrl.u32 %v3052_v4, 16  ;;  %v749_v26 = vrot.slane %v3006_v16, 1 }
  0x4a   : > { %904 = vrot.lane.b32.xlu0 %v2981_v46, %s2781_s9  ;;  %2026 = vst.msk [vmem:[%s2884_s12 + $0x50] sm:$0xff] %vm1051_vm4, %v1962_v2  ;;  %v1963_v46 = vunpack.c.l.bf16 %v1679_v8  ;;  %v2240_v14 = vsel %vm1051_vm4, %v1962_v2, 0.0  ;;  %v2301_v15 = vmul.f32 %v1962_v2, %v1962_v2  ;;  %v3077_v31 = vcombine.low %v345_v52, %v345_v52 }
  0x4b   : > { %v2241_v17 = vadd.f32 %v2240_v14, %v2239_v51  ;;  %v1687_v30 = vor.u32 %v1686_v21, %v1683_v19  ;;  %v1696_v24 = vrot.slane %v1694_v25, 4  ;;  %v1700_v37 = vshll.u32 %v348_v34, 16 }
  0x4c   : > { %2027 = vst.msk [vmem:[%s2884_s12 + $0x58] sm:$0xff] %vm1051_vm4, %v1963_v46  ;;  %v2242_v20 = vsel %vm1051_vm4, %v1963_v46, 0.0  ;;  %v2302_v23 = vmul.f32 %v1963_v46, %v1963_v46  ;;  %v2342_v60 = vsel %vm1051_vm4, %v2301_v15, 0.0  ;;  %v583_v16 = vshll.u32 %v3055_v6, 16 }
  0x4d   : > { %943 = vrot.lane.b32.xlu1 %v2998_v7, %s2785_s16  ;;  %v2243_v28 = vadd.f32 %v2242_v20, %v2241_v17  ;;  %v2343_v29 = vadd.f32 %v2342_v60, %v2341_v59  ;;  %v1688_v36 = vrot.slane %v1687_v30, 4  ;;  %v1697_v38 = vor.u32 %v1696_v24, %v1692_v22  ;;  %v3125_v17 = vld [vmem:[%s2842_s29 + $0x68] sm:$0x1] }
  0x4e   : > { %941 = vrot.lane.b32.xlu0 %v2942_v1, %s2785_s16  ;;  %v2344_v33 = vsel %vm1051_vm4, %v2302_v23, 0.0  ;;  %v3087_v39 = vsel %vm732_vm2, %v748_v0, %v749_v26  ;;  %v1702_v41 = vrot.slane %v1700_v37, 5  ;;  %v581_v43 = vshrl.u32 %v3055_v6, 16 }
  0x4f   : > { %v2345_v35 = vadd.f32 %v2344_v33, %v2343_v29  ;;  %v1693_v40 = vsel %vm2870_vm5, %v1688_v36, %v1692_v22  ;;  %v588_v44 = vshll.u32 %v3077_v31, 16  ;;  %v1698_v47 = vrot.slane %v1697_v38, 4  ;;  %v3138_v29 = vld [vmem:[%s2842_s29 + $0x6c] sm:$0xf] }
  0x50   : > { %v1964_v45 = vunpack.c.l.bf16 %v1693_v40  ;;  %v1705_v49 = vshrl.u32 %v3092_v42, 16  ;;  %v1708_v51 = vshll.u32 %v3092_v42, 16  ;;  %v1714_v52 = vshll.u32 %v3097_v48, 16 }
  0x51   : > { %990 = vrot.lane.b32.xlu1 %v3062_v13, %s2786_s17  ;;  %v1718_v53 = vshrl.u32 %v3097_v48, 16  ;;  %v585_v54 = vrot.slane %v583_v16, 1  ;;  %v1703_v55 = vsel %vm2870_vm5, %v1698_v47, %v1702_v41  ;;  %v590_v46 = vrot.slane %v588_v44, 1 }
  0x52   : > { %988 = vrot.lane.b32.xlu0 %v3009_v18, %s2786_s17  ;;  %2028 = vst.msk [vmem:[%s2884_s12 + $0x60] sm:$0xff] %vm1051_vm4, %v1964_v45  ;;  %v2303_v56 = vmul.f32 %v1964_v45, %v1964_v45  ;;  %v1965_v57 = vunpack.c.l.bf16 %v1703_v55  ;;  %v1707_v59 = vrot.slane %v1705_v49, 4  ;;  %v1710_v10 = vrot.slane %v1708_v51, 5 }
  0x53   : > { %v1716_v62 = vrot.slane %v1714_v52, 5  ;;  %v1720_v0 = vrot.slane %v1718_v53, 4  ;;  %v586_v12 = vor.u32 %v585_v54, %v581_v43  ;;  %v3122_v14 = vcombine.low %v3046_v63, %v3052_v4 }
  0x54   : > { %v2346_v61 = vsel %vm1051_vm4, %v2303_v56, 0.0  ;;  %2029 = vst.msk [vmem:[%s2884_s12 + $0x68] sm:$0xff] %vm1051_vm4, %v1965_v57  ;;  %v2246_v2 = vsel %vm1051_vm4, %v1965_v57, 0.0  ;;  %v2304_v5 = vmul.f32 %v1965_v57, %v1965_v57  ;;  %v1711_v11 = vor.u32 %v1710_v10, %v1707_v59  ;;  %v3170_v59 = vld [vmem:[%s2842_s29 + $0x74] sm:$0x1] }
  0x55   : > { %708 = vrot.lane.b32.xlu1 %v3009_v18, %s2783_s14  ;;  %v2244_v18 = vsel %vm1051_vm4, %v1964_v45, 0.0  ;;  %v2347_v8 = vadd.f32 %v2346_v61, %v2345_v35  ;;  %v1721_v22 = vor.u32 %v1720_v0, %v1716_v62  ;;  %v1724_v20 = vshll.u32 %v3125_v17, 16 }
  0x56   : > { %1023 = vrot.lane.b32.xlu0 %v3037_v50, %s2787_s18  ;;  %v2245_v58 = vadd.f32 %v2244_v18, %v2243_v28  ;;  %v2348_v19 = vsel %vm1051_vm4, %v2304_v5, 0.0  ;;  %v1712_v21 = vrot.slane %v1711_v11, 4  ;;  %v751_v23 = vrot.slane %v3055_v6, 1 }
  0x57   : > { %v3130_v60 = vcombine.low %v348_v34, %v348_v34  ;;  %v2349_v25 = vadd.f32 %v2348_v19, %v2347_v8  ;;  %v752_v63 = vrot.slane %v3077_v31, 1  ;;  %v1722_v26 = vrot.slane %v1721_v22, 4  ;;  %v3147_v34 = vld [vmem:[%s2842_s29 + $0x70] sm:$0xf] }
  0x58   : > { %v2247_v15 = vadd.f32 %v2246_v2, %v2245_v58  ;;  %v1717_v4 = vsel %vm2870_vm5, %v1712_v21, %v1716_v62  ;;  %v1726_v28 = vrot.slane %v1724_v20, 5  ;;  %v3143_v30 = vsel %vm507_vm3, %v586_v12, %v590_v46  ;;  %v2752_v19 = vld [vmem:[%s4015_s1 + $0x10] ss:$0 sps:$4 sm:$0x33]  }
  0x59   : > { %710 = vrot.lane.b32.xlu1 %v3062_v13, %s2783_s14  ;;  %v593_v33 = vshrl.u32 %v3122_v14, 16  ;;  %v1966_v24 = vunpack.c.l.bf16 %v1717_v4  ;;  %v1729_v31 = vshrl.u32 %v3138_v29, 16  ;;  %v595_v35 = vshll.u32 %v3122_v14, 16  ;;  %v3201_v4 = vld [vmem:[%s2842_s29 + $0x7c] sm:$0xf]  ;;  %2713 = vmatprep.subr.msk.bf16.mxu0 %vm1368_vm6, %v2752_v19 }
  0x5a   : > { %1025 = vrot.lane.b32.xlu0 %v3087_v39, %s2787_s18  ;;  %v1727_v36 = vsel %vm2870_vm5, %v1722_v26, %v1726_v28  ;;  %v1732_v37 = vshll.u32 %v3138_v29, 16  ;;  %v600_v16 = vshll.u32 %v3130_v60, 16  ;;  %v1742_v53 = vshrl.u32 %v3147_v34, 16  ;;  %2714 = vmatprep.subr.msk.bf16.mxu1 %vm1368_vm6, %v2752_v19 }
  0x5b   : > { %2030 = vst.msk [vmem:[%s2884_s12 + $0x70] sm:$0xff] %vm1051_vm4, %v1966_v24  ;;  %v1967_v38 = vunpack.c.l.bf16 %v1727_v36  ;;  %v2248_v40 = vsel %vm1051_vm4, %v1966_v24, 0.0  ;;  %v2305_v41 = vmul.f32 %v1966_v24, %v1966_v24  ;;  %v1731_v44 = vrot.slane %v1729_v31, 4 }
  0x5c   : > { %v2249_v43 = vadd.f32 %v2248_v40, %v2247_v15  ;;  %v1734_v45 = vrot.slane %v1732_v37, 5  ;;  %v597_v54 = vrot.slane %v595_v35, 1  ;;  %v1744_v58 = vrot.slane %v1742_v53, 4  ;;  %v2754_v37 = vld [vmem:[%s4015_s1 + $0x8] sm:$0xff]   ;;  %v3229_v53 = vld [vmem:[%s2842_s29 + $0x80] sm:$0x1] }
  0x5d   : > { %791 = vrot.lane.b32.xlu1 %v3087_v39, %s2782_s13  ;;  %2031 = vst.msk [vmem:[%s2884_s12 + $0x78] sm:$0xff] %vm1051_vm4, %v1967_v38  ;;  %v2250_v49 = vsel %vm1051_vm4, %v1967_v38, 0.0  ;;  %v2306_v51 = vmul.f32 %v1967_v38, %v1967_v38  ;;  %v2350_v52 = vsel %vm1051_vm4, %v2305_v41, 0.0  ;;  %v1748_v62 = vshll.u32 %v3170_v59, 16 }
  0x5e   : > { %789 = vrot.lane.b32.xlu0 %v3037_v50, %s2782_s13  ;;  %v1738_v50 = vshll.u32 %v3147_v34, 16  ;;  %v2251_v55 = vadd.f32 %v2250_v49, %v2249_v43  ;;  %v2351_v18 = vadd.f32 %v2350_v52, %v2349_v25  ;;  %v1735_v56 = vor.u32 %v1734_v45, %v1731_v44 }
  0x5f   : > { %v2352_v57 = vsel %vm1051_vm4, %v2306_v51, 0.0  ;;  %v3178_v0 = vsel %vm732_vm2, %v751_v23, %v752_v63  ;;  %v598_v5 = vor.u32 %v597_v54, %v593_v33  ;;  %v602_v8 = vrot.slane %v600_v16, 1  ;;  %v3198_v63 = vld [vmem:[%s2842_s29 + $0x78] sm:$0xf] }
  0x60   : > { %v1740_v47 = vrot.slane %v1738_v50, 5  ;;  %v2353_v10 = vadd.f32 %v2352_v57, %v2351_v18  ;;  %v1736_v61 = vrot.slane %v1735_v56, 4  ;;  %v1750_v12 = vrot.slane %v1748_v62, 5 }
  0x61   : > { %828 = vrot.lane.b32.xlu1 %v3055_v6, %s2780_s30  ;;  %v3195_v20 = vsel %vm507_vm3, %v598_v5, %v602_v8  ;;  %v1753_v26 = vshrl.u32 %v3198_v63, 16  ;;  %v1756_v28 = vshll.u32 %v3198_v63, 16  ;;  %v1762_v33 = vshll.u32 %v3201_v4, 16  ;;  %v3259_v8 = vld [vmem:[%s2842_s29 + $0x88] sm:$0xf] }
  0x62   : > { %826 = vrot.lane.b32.xlu0 %v2998_v7, %s2780_s30  ;;  %v1745_v2 = vor.u32 %v1744_v58, %v1740_v47  ;;  %v1741_v11 = vsel %vm2870_vm5, %v1736_v61, %v1740_v47  ;;  %v1766_v36 = vshrl.u32 %v3201_v4, 16  ;;  %v3222_v41 = vcombine.low %v3092_v42, %v3097_v48  ;;  %v3251_v61 = vld [vmem:[%s2842_s29 + $0x84] sm:$0xf] }
  0x63   : > { %v1968_v46 = vunpack.c.l.bf16 %v1741_v11  ;;  %v1755_v16 = vrot.slane %v1753_v26, 4  ;;  %v1758_v38 = vrot.slane %v1756_v28, 5  ;;  %v1764_v40 = vrot.slane %v1762_v33, 5 }
  0x64   : > { %v1746_v15 = vrot.slane %v1745_v2, 4  ;;  %v1768_v44 = vrot.slane %v1766_v36, 4  ;;  %v1370_v45 = vsel %vm1368_vm6, %v2752_v19, 0  ;;  %v754_v47 = vrot.slane %v3122_v14, 1 }
  0x65   : > { %875 = vrot.lane.b32.xlu1 %v3143_v30, %s2784_s15  ;;  %2032 = vst.msk [vmem:[%s2884_s12 + $0x80] sm:$0xff] %vm1051_vm4, %v1968_v46  ;;  %v2252_v21 = vsel %vm1051_vm4, %v1968_v46, 0.0  ;;  %v2307_v22 = vmul.f32 %v1968_v46, %v1968_v46  ;;  %v755_v49 = vrot.slane %v3130_v60, 1  ;;  %v1759_v52 = vor.u32 %v1758_v38, %v1755_v16  ;;  %2670 = vmatpush3.bf16.msra.mxu0 %v1370_v45  ;;  %v2756_v60 = vld [vmem:[%s4015_s1] sm:$0xff]   ;;  %v3280_v38 = vld [vmem:[%s2842_s29 + $0x8c] sm:$0x1] }
  0x66   : > { %873 = vrot.lane.b32.xlu0 %v3062_v13, %s2784_s15  ;;  %v1751_v13 = vsel %vm2870_vm5, %v1746_v15, %v1750_v12  ;;  %v2253_v25 = vadd.f32 %v2252_v21, %v2251_v55  ;;  %2710 = vmatpush3.bf16.msra.mxu1 %v1370_v45  ;;  %v3235_v42 = vcombine.low %v3125_v17, %v3125_v17  ;;  %v1772_v54 = vshll.u32 %v3229_v53, 16 }
  0x67   : > { %v1969_v23 = vunpack.c.l.bf16 %v1751_v13  ;;  %2671 = vmatprep.subr.bf16.mxu0 %v2754_v37  ;;  %v1769_v48 = vor.u32 %v1768_v44, %v1764_v40  ;;  %v1760_v55 = vrot.slane %v1759_v52, 4  ;;  %2708 = vmatprep.subr.bf16.mxu1 %v2754_v37  ;;  %v607_v18 = vshll.u32 %v3222_v41, 16  ;;  %v3291_v52 = vld [vmem:[%s2842_s29 + $0x90] sm:$0xf] }
  0x68   : > { %v1774_v57 = vrot.slane %v1772_v54, 5  ;;  %v3245_v17 = vsel %vm732_vm2, %v754_v47, %v755_v49  ;;  %v605_v58 = vshrl.u32 %v3222_v41, 16  ;;  %v612_v62 = vshll.u32 %v3235_v42, 16 }
  0x69   : > { %910 = vrot.lane.b32.xlu1 %v3178_v0, %s2781_s9  ;;  %2033 = vst.msk [vmem:[%s2884_s12 + $0x88] sm:$0xff] %vm1051_vm4, %v1969_v23  ;;  %v2254_v24 = vsel %vm1051_vm4, %v1969_v23, 0.0  ;;  %v2308_v31 = vmul.f32 %v1969_v23, %v1969_v23  ;;  %v1770_v56 = vrot.slane %v1769_v48, 4  ;;  %2672 = vmatpush3.bf16.msra.mxu0 %v2754_v37  ;;  %v1777_v11 = vshrl.u32 %v3251_v61, 16 }
  0x6a   : > { %908 = vrot.lane.b32.xlu0 %v3087_v39, %s2781_s9  ;;  %v2354_v39 = vsel %vm1051_vm4, %v2307_v22, 0.0  ;;  %v2255_v50 = vadd.f32 %v2254_v24, %v2253_v25  ;;  %2711 = vmatpush3.bf16.msra.mxu1 %v2754_v37  ;;  %v1780_v46 = vshll.u32 %v3251_v61, 16  ;;  %v1790_v15 = vshrl.u32 %v3259_v8, 16 }
  0x6b   : > { %v2355_v35 = vadd.f32 %v2354_v39, %v2353_v10  ;;  %v2356_v43 = vsel %vm1051_vm4, %v2308_v31, 0.0  ;;  %v1765_v10 = vsel %vm2870_vm5, %v1760_v55, %v1764_v40  ;;  %v1775_v5 = vsel %vm2870_vm5, %v1770_v56, %v1774_v57  ;;  %2673 = vmatprep.subr.bf16.mxu0 %v2756_v60  ;;  %2709 = vmatprep.subr.bf16.mxu1 %v2756_v60  ;;  %v3307_v56 = vld [vmem:[%s2842_s29 + $0x94] sm:$0xf] }
  0x6c   : > { %v1970_v2 = vunpack.c.l.bf16 %v1765_v10  ;;  %v1971_v12 = vunpack.c.l.bf16 %v1775_v5  ;;  %v609_v19 = vrot.slane %v607_v18, 1  ;;  %v1779_v22 = vrot.slane %v1777_v11, 4 }
  0x6d   : > { %947 = vrot.lane.b32.xlu1 %v3122_v14, %s2785_s16  ;;  %v2357_v51 = vadd.f32 %v2356_v43, %v2355_v35  ;;  %2674 = vmatpush3.bf16.msra.mxu0 %v2756_v60  ;;  %v1782_v26 = vrot.slane %v1780_v46, 5  ;;  %v1792_v24 = vrot.slane %v1790_v15, 4  ;;  %v614_v16 = vrot.slane %v612_v62, 1 }
  0x6e   : > { %945 = vrot.lane.b32.xlu0 %v3055_v6, %s2785_s16  ;;  %2034 = vst.msk [vmem:[%s2884_s12 + $0x90] sm:$0xff] %vm1051_vm4, %v1970_v2  ;;  %v2256_v13 = vsel %vm1051_vm4, %v1970_v2, 0.0  ;;  %v2309_v21 = vmul.f32 %v1970_v2, %v1970_v2  ;;  %2035 = vst.msk [vmem:[%s2884_s12 + $0x98] sm:$0xff] %vm1051_vm4, %v1971_v12  ;;  %v2258_v25 = vsel %vm1051_vm4, %v1971_v12, 0.0  ;;  %v2310_v39 = vmul.f32 %v1971_v12, %v1971_v12 }
  0x6f   : > { %v2257_v23 = vadd.f32 %v2256_v13, %v2255_v50  ;;  %2712 = vmatpush3.bf16.msra.mxu1 %v2756_v60  ;;  %v1783_v37 = vor.u32 %v1782_v26, %v1779_v22  ;;  %v610_v50 = vor.u32 %v609_v19, %v605_v58  ;;  %v1796_v45 = vshll.u32 %v3280_v38, 16 }
  0x70   : > { %v2358_v28 = vsel %vm1051_vm4, %v2309_v21, 0.0  ;;  %v2360_v36 = vsel %vm1051_vm4, %v2310_v39, 0.0  ;;  %v757_v47 = vrot.slane %v3222_v41, 1  ;;  %v3288_v49 = vcombine.low %v3138_v29, %v3147_v34 }
  0x71   : > { %994 = vrot.lane.b32.xlu1 %v3195_v20, %s2786_s17  ;;  %v2259_v31 = vadd.f32 %v2258_v25, %v2257_v23  ;;  %v2359_v35 = vadd.f32 %v2358_v28, %v2357_v51  ;;  %v1784_v44 = vrot.slane %v1783_v37, 4  ;;  %v758_v48 = vrot.slane %v3235_v42, 1 }
  0x72   : > { %992 = vrot.lane.b32.xlu0 %v3143_v30, %s2786_s17  ;;  %v1798_v60 = vrot.slane %v1796_v45, 5  ;;  %v1801_v55 = vshrl.u32 %v3291_v52, 16  ;;  %v3300_v18 = vsel %vm507_vm3, %v610_v50, %v614_v16  ;;  %v3304_v29 = vcombine.low %v3170_v59, %v3170_v59 }
  0x73   : > { %v2361_v43 = vadd.f32 %v2360_v36, %v2359_v35  ;;  %v1810_v58 = vshll.u32 %v3307_v56, 16  ;;  %v1814_v10 = vshrl.u32 %v3307_v56, 16  ;;  %v619_v59 = vshll.u32 %v3288_v49, 16 }
  0x74   : > { %v1803_v57 = vrot.slane %v1801_v55, 4  ;;  %v617_v21 = vshrl.u32 %v3288_v49, 16  ;;  %v624_v26 = vshll.u32 %v3304_v29, 16  ;;  %vm2117_vm15 = vcmask 24576  }
  0x75   : > { %712 = vrot.lane.b32.xlu1 %v3143_v30, %s2783_s14  ;;  %v1786_v30 = vshll.u32 %v3259_v8, 16  ;;  %v1812_v46 = vrot.slane %v1810_v58, 5  ;;  %v621_v39 = vrot.slane %v619_v59, 1 }
  0x76   : > { %1027 = vrot.lane.b32.xlu0 %v3178_v0, %s2787_s18 }
  0x77   : > { %v1788_v33 = vrot.slane %v1786_v30, 5  ;;  %v1816_v30 = vrot.slane %v1814_v10, 4 }
  0x79   : > { %714 = vrot.lane.b32.xlu1 %v3195_v20, %s2783_s14  ;;  %v1793_v40 = vor.u32 %v1792_v24, %v1788_v33  ;;  %v1789_v54 = vsel %vm2870_vm5, %v1784_v44, %v1788_v33  ;;  %v3332_v33 = vld [vmem:[%s2842_s29 + $0x98] sm:$0x1]  ;;  %v1817_v24 = vor.u32 %v1816_v30, %v1812_v46 }
  0x7a   : > { %1029 = vrot.lane.b32.xlu0 %v3245_v17, %s2787_s18  ;;  %v1972_v34 = vunpack.c.l.bf16 %v1789_v54  ;;  %v1820_v16 = vshll.u32 %v3332_v33, 16  ;;  %v3353_v54 = vld [vmem:[%s2842_s29 + $0xa0] sm:$0xf] }
  0x7b   : > { %v1794_v51 = vrot.slane %v1793_v40, 4  ;;  %v1818_v40 = vrot.slane %v1817_v24, 4 }
  0x7c   : > { %2036 = vst.msk [vmem:[%s2884_s12 + $0xa0] sm:$0xff] %vm1051_vm4, %v1972_v34  ;;  %v2260_v2 = vsel %vm1051_vm4, %v1972_v34, 0.0  ;;  %v2311_v5 = vmul.f32 %v1972_v34, %v1972_v34 }
  0x7d   : > { %795 = vrot.lane.b32.xlu1 %v3245_v17, %s2782_s13  ;;  %v1799_v42 = vsel %vm2870_vm5, %v1794_v51, %v1798_v60  ;;  %v2261_v11 = vadd.f32 %v2260_v2, %v2259_v31  ;;  %v3337_v31 = vsel %vm732_vm2, %v757_v47, %v758_v48  ;;  %v622_v47 = vor.u32 %v621_v39, %v617_v21 }
  0x7e   : > { %793 = vrot.lane.b32.xlu0 %v3178_v0, %s2782_s13  ;;  %v1804_v0 = vshll.u32 %v3291_v52, 16  ;;  %v1973_v62 = vunpack.c.l.bf16 %v1799_v42  ;;  %v2362_v13 = vsel %vm1051_vm4, %v2311_v5, 0.0  ;;  %v626_v51 = vrot.slane %v624_v26, 1 }
  0x7f   : > { %v2363_v23 = vadd.f32 %v2362_v13, %v2361_v43  ;;  %v3345_v43 = vld [vmem:[%s2842_s29 + $0x9c] sm:$0xf]  ;;  %v1838_v42 = vshrl.u32 %v3353_v54, 16 }
  0x80   : > { %v1806_v12 = vrot.slane %v1804_v0, 5  ;;  %2037 = vst.msk [vmem:[%s2884_s12 + $0xa8] sm:$0xff] %vm1051_vm4, %v1973_v62  ;;  %v2262_v15 = vsel %vm1051_vm4, %v1973_v62, 0.0  ;;  %v2312_v19 = vmul.f32 %v1973_v62, %v1973_v62  ;;  %v1825_v45 = vshrl.u32 %v3345_v43, 16 }
  0x81   : > { %832 = vrot.lane.b32.xlu1 %v3222_v41, %s2780_s30  ;;  %v2263_v22 = vadd.f32 %v2262_v15, %v2261_v11  ;;  %v1828_v60 = vshll.u32 %v3345_v43, 16  ;;  %v1834_v0 = vshll.u32 %v3353_v54, 16  ;;  %v1840_v11 = vrot.slane %v1838_v42, 4 }
  0x82   : > { %830 = vrot.lane.b32.xlu0 %v3122_v14, %s2780_s30  ;;  %v1807_v25 = vor.u32 %v1806_v12, %v1803_v57  ;;  %v2364_v28 = vsel %vm1051_vm4, %v2312_v19, 0.0  ;;  %v1827_v34 = vrot.slane %v1825_v45, 4  ;;  %v3373_v12 = vcombine.low %v3198_v63, %v3201_v4 }
  0x83   : > { %v2365_v37 = vadd.f32 %v2364_v28, %v2363_v23  ;;  %v1830_v2 = vrot.slane %v1828_v60, 5  ;;  %v1836_v5 = vrot.slane %v1834_v0, 5  ;;  %v3382_v19 = vsel %vm507_vm3, %v622_v47, %v626_v51  ;;  %v3390_v23 = vld [vmem:[%s2842_s29 + $0xa4] sm:$0x1] }
  0x84   : > { %v3339_v35 = vpop.permute.xlu1 %820  ;;  %v1808_v50 = vrot.slane %v1807_v25, 4  ;;  %v3386_v63 = vcombine.low %v3229_v53, %v3229_v53  ;;  %v1844_v24 = vshll.u32 %v3390_v23, 16  ;;  %v629_v51 = vshrl.u32 %v3373_v12, 16 }
  0x85   : > { %879 = vrot.lane.b32.xlu1 %v3300_v18, %s2784_s15  ;;  %v3341_v36 = vpop.permute.xlu0 %818  ;;  %v1841_v25 = vor.u32 %v1840_v11, %v1836_v5 }
  0x86   : > { %877 = vrot.lane.b32.xlu0 %v3195_v20, %s2784_s15  ;;  %v1813_v44 = vsel %vm2870_vm5, %v1808_v50, %v1812_v46  ;;  %v1822_v20 = vrot.slane %v1820_v16, 5  ;;  %v367_v50 = vld [vmem:[%s2842_s29 + $0xa8] sm:$0xf]  ;;  %v368_v16 = vld [vmem:[%s2842_s29 + $0xac] sm:$0xf]  ;;  %v1846_v47 = vrot.slane %v1844_v24, 5 }
  0x87   : > { %v1974_v48 = vunpack.c.l.bf16 %v1813_v44  ;;  %v1842_v53 = vrot.slane %v1841_v25, 4  ;;  %v760_v44 = vrot.slane %v3288_v49, 1  ;;  %v1849_v0 = vshrl.u32 %v367_v50, 16 }
  0x88   : > { %v1823_v55 = vsel %vm2870_vm5, %v1818_v40, %v1822_v20  ;;  %v761_v20 = vrot.slane %v3304_v29, 1  ;;  %v1852_v42 = vshll.u32 %v367_v50, 16 }
  0x89   : > { %914 = vrot.lane.b32.xlu1 %v3337_v31, %s2781_s9  ;;  %2038 = vst.msk [vmem:[%s2884_s12 + $0xb0] sm:$0xff] %vm1051_vm4, %v1974_v48  ;;  %v1975_v57 = vunpack.c.l.bf16 %v1823_v55  ;;  %v2264_v58 = vsel %vm1051_vm4, %v1974_v48, 0.0  ;;  %v2313_v10 = vmul.f32 %v1974_v48, %v1974_v48  ;;  %v636_v48 = vshll.u32 %v3386_v63, 16 }
  0x8a   : > { %912 = vrot.lane.b32.xlu0 %v3245_v17, %s2781_s9  ;;  %v3365_v59 = vpop.permute.xlu0 %900  ;;  %v2265_v17 = vadd.f32 %v2264_v58, %v2263_v22  ;;  %v1831_v22 = vor.u32 %v1830_v2, %v1827_v34  ;;  %v3408_v55 = vcombine.low %v367_v50, %v368_v16  ;;  %v1847_v34 = vsel %vm2870_vm5, %v1842_v53, %v1846_v47  ;;  %v3434_v47 = vld [vmem:[%s2842_s29 + $0xb0] sm:$0x1] }
  0x8b   : > { %2039 = vst.msk [vmem:[%s2884_s12 + $0xb8] sm:$0xff] %vm1051_vm4, %v1975_v57  ;;  %v2266_v46 = vsel %vm1051_vm4, %v1975_v57, 0.0  ;;  %v2314_v30 = vmul.f32 %v1975_v57, %v1975_v57  ;;  %v2366_v15 = vsel %vm1051_vm4, %v2313_v10, 0.0  ;;  %v1858_v57 = vshll.u32 %v368_v16, 16 }
  0x8c   : > { %v3367_v62 = vpop.permute.xlu1 %781  ;;  %v2267_v13 = vadd.f32 %v2266_v46, %v2265_v17  ;;  %v2367_v21 = vadd.f32 %v2366_v15, %v2365_v37  ;;  %v1832_v28 = vrot.slane %v1831_v22, 4  ;;  %v631_v37 = vshll.u32 %v3373_v12, 16 }
  0x8d   : > { %951 = vrot.lane.b32.xlu1 %v3288_v49, %s2785_s16  ;;  %v2368_v4 = vsel %vm1051_vm4, %v2314_v30, 0.0  ;;  %v1977_v10 = vunpack.c.l.bf16 %v1847_v34  ;;  %v1851_v46 = vrot.slane %v1849_v0, 4  ;;  %v1854_v30 = vrot.slane %v1852_v42, 5 }
  0x8e   : > { %949 = vrot.lane.b32.xlu0 %v3222_v41, %s2785_s16  ;;  %v2369_v26 = vadd.f32 %v2368_v4, %v2367_v21  ;;  %v1837_v45 = vsel %vm2870_vm5, %v1832_v28, %v1836_v5  ;;  %v633_v58 = vrot.slane %v631_v37, 1  ;;  %v3422_v5 = vsel %vm732_vm2, %v760_v44, %v761_v20 }
  0x8f   : > { %v701_v40 = vpop.permute.xlu0 %700  ;;  %v1976_v60 = vunpack.c.l.bf16 %v1837_v45  ;;  %2041 = vst.msk [vmem:[%s2884_s12 + $0xc8] sm:$0xff] %vm1051_vm4, %v1977_v10  ;;  %v2316_v15 = vmul.f32 %v1977_v10, %v1977_v10  ;;  %v1860_v22 = vrot.slane %v1858_v57, 5  ;;  %v1855_v24 = vor.u32 %v1854_v30, %v1851_v46 }
  0x90   : > { %v3392_v39 = vpop.permute.xlu1 %783  ;;  %v1862_v50 = vshrl.u32 %v368_v16, 16  ;;  %v638_v37 = vrot.slane %v636_v48, 1  ;;  %v1868_v48 = vshll.u32 %v3434_v47, 16  ;;  %v3447_v0 = vcombine.low %v3280_v38, %v3280_v38  ;;  %v371_v38 = vld [vmem:[%s2842_s29 + $0xb8] sm:$0xf] }
  0x91   : > { %998 = vrot.lane.b32.xlu1 %v3382_v19, %s2786_s17  ;;  %2040 = vst.msk [vmem:[%s2884_s12 + $0xc0] sm:$0xff] %vm1051_vm4, %v1976_v60  ;;  %v2268_v17 = vsel %vm1051_vm4, %v1976_v60, 0.0  ;;  %v2315_v2 = vmul.f32 %v1976_v60, %v1976_v60  ;;  %v2372_v53 = vsel %vm1051_vm4, %v2316_v15, 0.0  ;;  %v1856_v20 = vrot.slane %v1855_v24, 4 }
  0x92   : > { %996 = vrot.lane.b32.xlu0 %v3300_v18, %s2786_s17  ;;  %v2269_v11 = vadd.f32 %v2268_v17, %v2267_v13  ;;  %v634_v13 = vor.u32 %v633_v58, %v629_v51  ;;  %v1864_v45 = vrot.slane %v1862_v50, 4  ;;  %v3442_v51 = vcombine.low %v3251_v61, %v3259_v8 }
  0x93   : > { %v2370_v21 = vsel %vm1051_vm4, %v2315_v2, 0.0  ;;  %v763_v61 = vrot.slane %v3373_v12, 1  ;;  %v764_v8 = vrot.slane %v3386_v63, 1  ;;  %v1870_v46 = vrot.slane %v1868_v48, 5 }
  0x94   : > { %v3414_v29 = vpop.permute.xlu1 %902  ;;  %v2371_v28 = vadd.f32 %v2370_v21, %v2369_v26  ;;  %v2771_v26 = vld [vmem:[%s2842_s29] sm:$0xff]   ;;  %v1865_v42 = vor.u32 %v1864_v45, %v1860_v22  ;;  %v3454_v57 = vsel %vm507_vm3, %v634_v13, %v638_v37  ;;  %v641_v63 = vshrl.u32 %v3442_v51, 16 }
  0x95   : > { %716 = vrot.lane.b32.xlu1 %v3300_v18, %s2783_s14  ;;  %v2270_v18 = vsel %vm1051_vm4, %v1977_v10, 0.0  ;;  %v1053_v16 = vsel %vm1051_vm4, %v2771_v26, %v701_v40  ;;  %v1861_v40 = vsel %vm2870_vm5, %v1856_v20, %v1860_v22  ;;  %v370_v10 = vld [vmem:[%s2842_s29 + $0xb4] sm:$0xf]  ;;  %v1882_v26 = vshll.u32 %v371_v38, 16 }
  0x96   : > { %1031 = vrot.lane.b32.xlu0 %v3337_v31, %s2787_s18  ;;  %v2271_v25 = vadd.f32 %v2270_v18, %v2269_v11  ;;  %v2373_v44 = vadd.f32 %v2372_v53, %v2371_v28  ;;  %v1978_v58 = vunpack.c.l.bf16 %v1861_v40  ;;  %v1086_v17 = vsel %vm1084_vm7, %v1053_v16, %v3367_v62 }
  0x97   : > { %v1866_v11 = vrot.slane %v1865_v42, 4  ;;  %v643_v18 = vshll.u32 %v3442_v51, 16  ;;  %v1119_v24 = vsel %vm1117_vm8, %v1086_v17, %v3341_v36  ;;  %v1873_v53 = vshrl.u32 %v370_v10, 16 }
  0x98   : > { %v703_v4 = vpop.permute.xlu0 %702  ;;  %2042 = vst.msk [vmem:[%s2884_s12 + $0xd0] sm:$0xff] %vm1051_vm4, %v1978_v58  ;;  %v2272_v62 = vsel %vm1051_vm4, %v1978_v58, 0.0  ;;  %v2317_v15 = vmul.f32 %v1978_v58, %v1978_v58  ;;  %v1876_v20 = vshll.u32 %v370_v10, 16  ;;  %v1886_v16 = vshrl.u32 %v371_v38, 16 }
  0x99   : > { %718 = vrot.lane.b32.xlu1 %v3382_v19, %s2783_s14  ;;  %v1055_v2 = vsel %vm1051_vm4, %v2855_v9, %v703_v4  ;;  %v648_v9 = vshll.u32 %v3447_v0, 16  ;;  %v2273_v22 = vadd.f32 %v2272_v62, %v2271_v25  ;;  %v3476_v4 = vcombine.low %v370_v10, %v371_v38  ;;  %v3504_v62 = vld [vmem:[%s2842_s29 + $0xbc] sm:$0x1] }
  0x9a   : > { %1033 = vrot.lane.b32.xlu0 %v3422_v5, %s2787_s18  ;;  %v1088_v28 = vsel %vm1084_vm7, %v1055_v2, %v3392_v39  ;;  %v2374_v13 = vsel %vm1051_vm4, %v2317_v15, 0.0  ;;  %v1875_v42 = vrot.slane %v1873_v53, 4  ;;  %v1878_v58 = vrot.slane %v1876_v20, 5 }
  0x9b   : > { %v3438_v60 = vpop.permute.xlu1 %867  ;;  %v2375_v25 = vadd.f32 %v2374_v13, %v2373_v44  ;;  %v1121_v48 = vsel %vm1117_vm8, %v1088_v28, %v3339_v35  ;;  %v645_v44 = vrot.slane %v643_v18, 1  ;;  %v1884_v17 = vrot.slane %v1882_v26, 5  ;;  %v373_v28 = vld [vmem:[%s2842_s29 + $0xc0] sm:$0xf] }
  0x9c   : > { %v866_v34 = vpop.permute.xlu0 %865  ;;  %v1888_v2 = vrot.slane %v1886_v16, 4  ;;  %v3501_v35 = vsel %vm732_vm2, %v763_v61, %v764_v8  ;;  %v1154_v18 = vsel %vm1150_vm9, %v1121_v48, %v3438_v60  ;;  %v650_v8 = vrot.slane %v648_v9, 1 }
  0x9d   : > { %799 = vrot.lane.b32.xlu1 %v3422_v5, %s2782_s13  ;;  %v1152_v37 = vsel %vm1150_vm9, %v1119_v24, %v866_v34  ;;  %v374_v24 = vld [vmem:[%s2842_s29 + $0xc4] sm:$0xf]  ;;  %v646_v60 = vor.u32 %v645_v44, %v641_v63  ;;  %v766_v53 = vrot.slane %v3442_v51, 1 }
  0x9e   : > { %797 = vrot.lane.b32.xlu0 %v3337_v31, %s2782_s13  ;;  %v1871_v31 = vsel %vm2870_vm5, %v1866_v11, %v1870_v46  ;;  %v1185_v38 = vsel %vm1183_vm10, %v1152_v37, %v3365_v59  ;;  %v1879_v46 = vor.u32 %v1878_v58, %v1875_v42  ;;  %v1892_v59 = vshll.u32 %v3504_v62, 16 }
  0x9f   : > { %v3466_v30 = vpop.permute.xlu1 %939  ;;  %v1979_v50 = vunpack.c.l.bf16 %v1871_v31  ;;  %v3526_v20 = vcombine.low %v373_v28, %v374_v24  ;;  %v1906_v42 = vshll.u32 %v374_v24, 16 }
  0xa0   : > { %v938_v21 = vpop.permute.xlu0 %937 }
  0xa1   : > { %836 = vrot.lane.b32.xlu1 %v3373_v12, %s2780_s30  ;;  %2043 = vst.msk [vmem:[%s2884_s12 + $0xd8] sm:$0xff] %vm1051_vm4, %v1979_v50  ;;  %v2274_v39 = vsel %vm1051_vm4, %v1979_v50, 0.0  ;;  %v2318_v36 = vmul.f32 %v1979_v50, %v1979_v50  ;;  %v1218_v15 = vsel %vm1216_vm11, %v1185_v38, %v938_v21  ;;  %v1880_v50 = vrot.slane %v1879_v46, 4  ;;  %v375_v46 = vld [vmem:[%s2842_s29 + $0xc8] sm:$0x1] }
  0xa2   : > { %834 = vrot.lane.b32.xlu0 %v3288_v49, %s2780_s30  ;;  %v2275_v34 = vadd.f32 %v2274_v39, %v2273_v22  ;;  %v1889_v22 = vor.u32 %v1888_v2, %v1884_v17  ;;  %v1894_v21 = vrot.slane %v1892_v59, 5  ;;  %v1908_v59 = vrot.slane %v1906_v42, 5 }
  0xa3   : > { %v987_v45 = vpop.permute.xlu1 %986  ;;  %v2376_v10 = vsel %vm1051_vm4, %v2318_v36, 0.0  ;;  %v1885_v9 = vsel %vm2870_vm5, %v1880_v50, %v1884_v17 }
  0xa4   : > { %v985_v40 = vpop.permute.xlu0 %984  ;;  %v2377_v11 = vadd.f32 %v2376_v10, %v2375_v25  ;;  %v1890_v37 = vrot.slane %v1889_v22, 4  ;;  %v1187_v25 = vsel %vm1183_vm10, %v1154_v18, %v3414_v29  ;;  %v1980_v36 = vunpack.c.l.bf16 %v1885_v9 }
  0xa5   : > { %883 = vrot.lane.b32.xlu1 %v3454_v57, %s2784_s15  ;;  %v1220_v63 = vsel %vm1216_vm11, %v1187_v25, %v3466_v30  ;;  %v3539_v30 = vsel %vm507_vm3, %v646_v60, %v650_v8  ;;  %v1916_v25 = vshll.u32 %v375_v46, 16 }
  0xa6   : > { %881 = vrot.lane.b32.xlu0 %v3382_v19, %s2784_s15  ;;  %v1251_v19 = vsel %vm1249_vm12, %v1218_v15, %v985_v40  ;;  %v1895_v29 = vsel %vm2870_vm5, %v1890_v37, %v1894_v21  ;;  %v1253_v26 = vsel %vm1249_vm12, %v1220_v63, %v987_v45  ;;  %v1900_v40 = vshll.u32 %v373_v28, 16  ;;  %2044 = vst.msk [vmem:[%s2884_s12 + $0xe0] sm:$0xff] %vm1051_vm4, %v1980_v36 }
  0xa7   : > { %v3509_v31 = vpop.permute.xlu1 %704  ;;  %v1981_v48 = vunpack.c.l.bf16 %v1895_v29  ;;  %v2276_v44 = vsel %vm1051_vm4, %v1980_v36, 0.0  ;;  %v2319_v10 = vmul.f32 %v1980_v36, %v1980_v36  ;;  %v2624_v21 = vcombine.low %v375_v46, %v375_v46 }
  0xa8   : > { %v1020_v61 = vpop.permute.xlu0 %1019  ;;  %v2277_v45 = vadd.f32 %v2276_v44, %v2275_v34  ;;  %v1902_v22 = vrot.slane %v1900_v40, 5 }
  0xa9   : > { %918 = vrot.lane.b32.xlu1 %v3501_v35, %s2781_s9  ;;  %v1284_v13 = vsel %vm1282_vm13, %v1251_v19, %v1020_v61  ;;  %2045 = vst.msk [vmem:[%s2884_s12 + $0xe8] sm:$0xff] %vm1051_vm4, %v1981_v48  ;;  %v2278_v17 = vsel %vm1051_vm4, %v1981_v48, 0.0  ;;  %v2320_v2 = vmul.f32 %v1981_v48, %v1981_v48  ;;  %v2378_v15 = vsel %vm1051_vm4, %v2319_v10, 0.0 }
  0xaa   : > { %916 = vrot.lane.b32.xlu0 %v3422_v5, %s2781_s9  ;;  %2675 = vmatprep.mubr.msk.bf16.mxu0 %vm1335_vm14, %v1284_v13  ;;  %v1897_v5 = vshrl.u32 %v373_v28, 16  ;;  %v1910_v28 = vshrl.u32 %v374_v24, 16  ;;  %v767_v61 = vrot.slane %v3447_v0, 1  ;;  %v2279_v8 = vadd.f32 %v2278_v17, %v2277_v45 }
  0xab   : > { %v3530_v39 = vpop.permute.xlu1 %706  ;;  %v2379_v50 = vadd.f32 %v2378_v15, %v2377_v11  ;;  %v2380_v34 = vsel %vm1051_vm4, %v2320_v2, 0.0  ;;  %v3562_v13 = vcombine.low %v3291_v52, %v3307_v56  ;;  %v854_v0 = vshrl.u32 %v3526_v20, 16 }
  0xac   : > { %v1022_v16 = vpop.permute.xlu0 %1021  ;;  %v1899_v38 = vrot.slane %v1897_v5, 4  ;;  %v1912_v37 = vrot.slane %v1910_v28, 4  ;;  %v856_v11 = vshll.u32 %v3526_v20, 16  ;;  %v861_v29 = vshll.u32 %v2624_v21, 16 }
  0xad   : > { %v1286_v58 = vsel %vm1282_vm13, %v1253_v26, %v1022_v16  ;;  %955 = vrot.lane.b32.xlu1 %v3442_v51, %s2785_s16  ;;  %v2381_v24 = vadd.f32 %v2380_v34, %v2379_v50  ;;  %v897_v52 = vrot.slane %v3526_v20, 1  ;;  %v2619_v5 = vcombine.low %v3332_v33, %v3332_v33 }
  0xae   : > { %953 = vrot.lane.b32.xlu0 %v3373_v12, %s2785_s16  ;;  %2676 = vmatmul.mubr.msk.bf16.vlgmr.msra.gmra.mxu0 %vm1335_vm14, %v1286_v58  ;;  %v1903_v60 = vor.u32 %v1902_v22, %v1899_v38  ;;  %v1913_v36 = vor.u32 %v1912_v37, %v1908_v59  ;;  %v858_v26 = vrot.slane %v856_v11, 1  ;;  %v1918_v16 = vrot.slane %v1916_v25, 5 }
  0xaf   : > { %v3551_v18 = vpop.permute.xlu1 %787  ;;  %v898_v48 = vrot.slane %v2624_v21, 1  ;;  %v655_v40 = vshll.u32 %v3562_v13, 16  ;;  %v863_v44 = vrot.slane %v861_v29, 1  ;;  %v660_v50 = vshll.u32 %v2619_v5, 16 }
  0xb0   : > { %v3554_v19 = vpop.permute.xlu0 %785  ;;  %v1904_v63 = vrot.slane %v1903_v60, 4  ;;  %v1914_v58 = vrot.slane %v1913_v36, 4  ;;  %v859_v45 = vor.u32 %v858_v26, %v854_v0  ;;  %v3616_v29 = vcombine.low %v3345_v43, %v3353_v54 }
  0xb1   : > { %1002 = vrot.lane.b32.xlu1 %v3539_v30, %s2786_s17  ;;  %v3581_v33 = vsel %vm732_vm2, %v897_v52, %v898_v48  ;;  %v657_v28 = vrot.slane %v655_v40, 1  ;;  %v662_v36 = vrot.slane %v660_v50, 1  ;;  %v769_v26 = vrot.slane %v3562_v13, 1 }
  0xb2   : > { %1000 = vrot.lane.b32.xlu0 %v3454_v57, %s2786_s17  ;;  %v1909_v42 = vsel %vm2870_vm5, %v1904_v63, %v1908_v59  ;;  %v1919_v2 = vsel %vm2870_vm5, %v1914_v58, %v1918_v16  ;;  %v3593_v15 = vsel %vm507_vm3, %v859_v45, %v863_v44  ;;  %v653_v59 = vshrl.u32 %v3562_v13, 16 }
  0xb3   : > { %v3568_v9 = vpop.permute.xlu1 %824  ;;  %v1982_v10 = vunpack.c.l.bf16 %v1909_v42  ;;  %v1983_v22 = vunpack.c.l.bf16 %v1919_v2  ;;  %v770_v16 = vrot.slane %v2619_v5, 1  ;;  %v1057_v48 = vsel %vm1051_vm4, %v2850_v3, %v3509_v31 }
  0xb4   : > { %v823_v56 = vpop.permute.xlu0 %822  ;;  %v2620_v43 = vcombine.low %v3390_v23, %v3390_v23  ;;  %v667_v54 = vshll.u32 %v3616_v29, 16  ;;  %v1090_v40 = vsel %vm1084_vm7, %v1057_v48, %v3554_v19  ;;  %v665_v31 = vshrl.u32 %v3616_v29, 16 }
  0xb5   : > { %720 = vrot.lane.b32.xlu1 %v3454_v57, %s2783_s14  ;;  %v3586_v57 = vsel %vm732_vm2, %v766_v53, %v767_v61  ;;  %2046 = vst.msk [vmem:[%s2884_s12 + $0xf0] sm:$0xff] %vm1051_vm4, %v1982_v10  ;;  %v2321_v46 = vmul.f32 %v1982_v10, %v1982_v10  ;;  %v2280_v53 = vsel %vm1051_vm4, %v1982_v10, 0.0  ;;  %2047 = vst.msk [vmem:[%s2884_s12 + $0xf8] sm:$0xff] %vm1051_vm4, %v1983_v22  ;;  %v2282_v61 = vsel %vm1051_vm4, %v1983_v22, 0.0  ;;  %s323_s12 = scalar_lea.vmem %s4021_s7, %s4025_s25 }
  0xb6   : > { %1035 = vrot.lane.b32.xlu0 %v3501_v35, %s2787_s18  ;;  %v2281_v32 = vadd.f32 %v2280_v53, %v2279_v8  ;;  %v2322_v34 = vmul.f32 %v1983_v22, %v1983_v22  ;;  %v658_v8 = vor.u32 %v657_v28, %v653_v59  ;;  %v1123_v5 = vsel %vm1117_vm8, %v1090_v40, %v823_v56 }
  0xb7   : > { %v872_v17 = vpop.permute.xlu1 %871  ;;  %v2382_v60 = vsel %vm1051_vm4, %v2321_v46, 0.0  ;;  %v771_v3 = vsel %vm732_vm2, %v769_v26, %v770_v16  ;;  %v1059_v23 = vsel %vm1051_vm4, %v2923_v27, %v3530_v39  ;;  %v669_v19 = vrot.slane %v667_v54, 1 }
  0xb8   : > { %v870_v38 = vpop.permute.xlu0 %869  ;;  %v2383_v21 = vadd.f32 %v2382_v60, %v2381_v24  ;;  %v3605_v11 = vadd.f32 %v2282_v61, %v2281_v32  ;;  %v2384_v25 = vsel %vm1051_vm4, %v2322_v34, 0.0  ;;  %v672_v56 = vshll.u32 %v2620_v43, 16 }
  0xb9   : > { %722 = vrot.lane.b32.xlu1 %v3539_v30, %s2783_s14  ;;  %v1156_v44 = vsel %vm1150_vm9, %v1123_v5, %v870_v38  ;;  %v1092_v45 = vsel %vm1084_vm7, %v1059_v23, %v3551_v18  ;;  %v670_v18 = vor.u32 %v669_v19, %v665_v31  ;;  %v677_v26 = vshrl.u32 %v3408_v55, 16 }
  0xba   : > { %1037 = vrot.lane.b32.xlu0 %v3586_v57, %s2787_s18  ;;  %v3610_v63 = vadd.f32 %v2384_v25, %v2383_v21  ;;  %v1125_v46 = vsel %vm1117_vm8, %v1092_v45, %v3568_v9  ;;  %v674_v28 = vrot.slane %v672_v56, 1  ;;  %v773_v21 = vrot.slane %v2620_v43, 1 }
  0xbb   : > { %v907_v37 = vpop.permute.xlu1 %906  ;;  %v1158_v27 = vsel %vm1150_vm9, %v1125_v46, %v872_v17  ;;  %v2621_v25 = vcombine.low %v3434_v47, %v3434_v47  ;;  %v775_v5 = vrot.slane %v3408_v55, 1  ;;  %v691_v23 = vshll.u32 %v3476_v4, 16 }
  0xbc   : > { %v905_v0 = vpop.permute.xlu0 %904 }
  0xbd   : > { %803 = vrot.lane.b32.xlu1 %v3586_v57, %s2782_s13  ;;  %v1189_v10 = vsel %vm1183_vm10, %v1156_v44, %v905_v0  ;;  %v684_v48 = vshll.u32 %v2621_v25, 16 }
  0xbe   : > { %801 = vrot.lane.b32.xlu0 %v3501_v35, %s2782_s13  ;;  %v663_v35 = vsel %vm507_vm3, %v658_v8, %v662_v36  ;;  %v679_v8 = vshll.u32 %v3408_v55, 16 }
  0xbf   : > { %v944_v24 = vpop.permute.xlu1 %943  ;;  %v686_v54 = vrot.slane %v684_v48, 1 }
  0xc0   : > { %v942_v52 = vpop.permute.xlu0 %941  ;;  %v681_v16 = vrot.slane %v679_v8, 1 }
  0xc1   : > { %840 = vrot.lane.b32.xlu1 %v3562_v13, %s2780_s30  ;;  %v1222_v2 = vsel %vm1216_vm11, %v1189_v10, %v942_v52 }
  0xc2   : > { %838 = vrot.lane.b32.xlu0 %v3442_v51, %s2780_s30  ;;  %v682_v47 = vor.u32 %v681_v16, %v677_v26 }
  0xc3   : > { %v991_v42 = vpop.permute.xlu1 %990 }
  0xc4   : > { %v989_v58 = vpop.permute.xlu0 %988  ;;  %v687_v31 = vsel %vm507_vm3, %v682_v47, %v686_v54  ;;  %v2769_v47 = vld [vmem:[%s2842_s29 + $0xcc] sm:$0xff]  }
  0xc5   : > { %887 = vrot.lane.b32.xlu1 %v663_v35, %s2784_s15  ;;  %v1255_v22 = vsel %vm1249_vm12, %v1222_v2, %v989_v58  ;;  %v776_v58 = vrot.slane %v2621_v25, 1 }
  0xc6   : > { %885 = vrot.lane.b32.xlu0 %v3539_v30, %s2784_s15  ;;  %v1191_v30 = vsel %vm1183_vm10, %v1158_v27, %v907_v37  ;;  %v772_v37 = vrot.slane %v3616_v29, 1 }
  0xc7   : > { %v709_v38 = vpop.permute.xlu1 %708  ;;  %v1224_v9 = vsel %vm1216_vm11, %v1191_v30, %v944_v24 }
  0xc8   : > { %v1024_v59 = vpop.permute.xlu0 %1023  ;;  %v1257_v53 = vsel %vm1249_vm12, %v1224_v9, %v991_v42  ;;  %v774_v24 = vsel %vm732_vm2, %v772_v37, %v773_v21  ;;  %v1061_v44 = vsel %vm1051_vm4, %v2942_v1, %v709_v38  ;;  %v777_v1 = vsel %vm732_vm2, %v775_v5, %v776_v58  ;;  %v2770_v5 = vld [vmem:[%s2842_s29 + $0xd4] ss:$0 sps:$4 sm:$0x11]   ;;  %s3835_s29 = scalar_lea.vmem %s4016_s2, %s2648_s8 }
  0xc9   : > { %v1288_v39 = vsel %vm1282_vm13, %v1255_v22, %v1024_v59  ;;  %922 = vrot.lane.b32.xlu1 %v771_v3, %s2781_s9  ;;  %v689_v38 = vshrl.u32 %v3476_v4, 16  ;;  %v693_v22 = vrot.slane %v691_v23, 1  ;;  %v975_v58 = vshll.u32 %v2769_v47, 16 }
  0xca   : > { %920 = vrot.lane.b32.xlu0 %v3586_v57, %s2781_s9  ;;  %2679 = vmatprep.mubr.msk.bf16.mxu0 %vm1335_vm14, %v1288_v39  ;;  %v675_v57 = vsel %vm507_vm3, %v670_v18, %v674_v28 }
  0xcb   : > { %v711_v50 = vpop.permute.xlu1 %710 }
  0xcc   : > { %v1026_v32 = vpop.permute.xlu0 %1025  ;;  %v1063_v46 = vsel %vm1051_vm4, %v2998_v7, %v711_v50 }
  0xcd   : > { %v1290_v17 = vsel %vm1282_vm13, %v1257_v53, %v1026_v32  ;;  %959 = vrot.lane.b32.xlu1 %v3616_v29, %s2785_s16  ;;  %v694_v32 = vor.u32 %v693_v22, %v689_v38 }
  0xce   : > { %957 = vrot.lane.b32.xlu0 %v3562_v13, %s2785_s16  ;;  %2680 = vmatmul.mubr.msk.bf16.gmra.mxu0 %vm1335_vm14, %v1290_v17 }
  0xcf   : > { %v792_v61 = vpop.permute.xlu1 %791 }
  0xd0   : > { %v790_v34 = vpop.permute.xlu0 %789  ;;  %v1096_v27 = vsel %vm1084_vm7, %v1063_v46, %v792_v61 }
  0xd1   : > { %1006 = vrot.lane.b32.xlu1 %v675_v57, %s2786_s17  ;;  %v1094_v10 = vsel %vm1084_vm7, %v1061_v44, %v790_v34 }
  0xd2   : > { %1004 = vrot.lane.b32.xlu0 %v663_v35, %s2786_s17 }
  0xd3   : > { %v829_v60 = vpop.permute.xlu1 %828 }
  0xd4   : > { %v827_v0 = vpop.permute.xlu0 %826  ;;  %v1129_v18 = vsel %vm1117_vm8, %v1096_v27, %v829_v60 }
  0xd5   : > { %724 = vrot.lane.b32.xlu1 %v663_v35, %s2783_s14  ;;  %v1127_v56 = vsel %vm1117_vm8, %v1094_v10, %v827_v0 }
  0xd6   : > { %1039 = vrot.lane.b32.xlu0 %v771_v3, %s2787_s18 }
  0xd7   : > { %v876_v36 = vpop.permute.xlu1 %875 }
  0xd8   : > { %v874_v52 = vpop.permute.xlu0 %873  ;;  %v1162_v53 = vsel %vm1150_vm9, %v1129_v18, %v876_v36  ;;  %v778_v36 = vrot.slane %v3476_v4, 1 }
  0xd9   : > { %726 = vrot.lane.b32.xlu1 %v675_v57, %s2783_s14  ;;  %v1160_v2 = vsel %vm1150_vm9, %v1127_v56, %v874_v52 }
  0xda   : > { %1041 = vrot.lane.b32.xlu0 %v774_v24, %s2787_s18 }
  0xdb   : > { %v911_v35 = vpop.permute.xlu1 %910 }
  0xdc   : > { %v909_v43 = vpop.permute.xlu0 %908  ;;  %v1195_v50 = vsel %vm1183_vm10, %v1162_v53, %v911_v35 }
  0xdd   : > { %807 = vrot.lane.b32.xlu1 %v774_v24, %s2782_s13 }
  0xde   : > { %805 = vrot.lane.b32.xlu0 %v771_v3, %s2782_s13  ;;  %v2622_v3 = vcombine.low %v3504_v62, %v3504_v62  ;;  %v1193_v62 = vsel %vm1183_vm10, %v1160_v2, %v909_v43  ;;  %v980_v2 = vshll.u32 %v2770_v5, 16 }
  0xdf   : > { %v948_v40 = vpop.permute.xlu1 %947 }
  0xe0   : > { %v946_v42 = vpop.permute.xlu0 %945  ;;  %v696_v59 = vshll.u32 %v2622_v3, 16  ;;  %v982_v18 = vrot.slane %v980_v2, 1 }
  0xe1   : > { %844 = vrot.lane.b32.xlu1 %v3408_v55, %s2780_s30  ;;  %v1226_v39 = vsel %vm1216_vm11, %v1193_v62, %v946_v42 }
  0xe2   : > { %842 = vrot.lane.b32.xlu0 %v3616_v29, %s2780_s30  ;;  %v698_v17 = vrot.slane %v696_v59, 1 }
  0xe3   : > { %v995_v19 = vpop.permute.xlu1 %994 }
  0xe4   : > { %v993_v45 = vpop.permute.xlu0 %992  ;;  %v699_v21 = vsel %vm507_vm3, %v694_v32, %v698_v17  ;;  %v1016_v17 = vrot.slane %v2769_v47, 1 }
  0xe5   : > { %891 = vrot.lane.b32.xlu1 %v687_v31, %s2784_s15  ;;  %v1259_v28 = vsel %vm1249_vm12, %v1226_v39, %v993_v45  ;;  %v977_v45 = vrot.slane %v975_v58, 1 }
  0xe6   : > { %889 = vrot.lane.b32.xlu0 %v675_v57, %s2784_s15  ;;  %v1228_v57 = vsel %vm1216_vm11, %v1195_v50, %v948_v40 }
  0xe7   : > { %v713_v30 = vpop.permute.xlu1 %712  ;;  %v1261_v34 = vsel %vm1249_vm12, %v1228_v57, %v995_v19  ;;  %v973_v19 = vshrl.u32 %v2769_v47, 16  ;;  %v1017_v57 = vrot.slane %v2770_v5, 1 }
  0xe8   : > { %v1028_v9 = vpop.permute.xlu0 %1027  ;;  %v1065_v42 = vsel %vm1051_vm4, %v3055_v6, %v713_v30 }
  0xe9   : > { %v1292_v7 = vsel %vm1282_vm13, %v1259_v28, %v1028_v9  ;;  %926 = vrot.lane.b32.xlu1 %v777_v1, %s2781_s9  ;;  %v978_v30 = vor.u32 %v977_v45, %v973_v19 }
  0xea   : > { %924 = vrot.lane.b32.xlu0 %v774_v24, %s2781_s9  ;;  %2683 = vmatprep.mubr.msk.bf16.mxu0 %vm1335_vm14, %v1292_v7  ;;  %v779_v24 = vrot.slane %v2622_v3, 1 }
  0xeb   : > { %v715_v61 = vpop.permute.xlu1 %714  ;;  %v983_v32 = vsel %vm507_vm3, %v978_v30, %v982_v18 }
  0xec   : > { %v1030_v60 = vpop.permute.xlu0 %1029  ;;  %v780_v16 = vsel %vm732_vm2, %v778_v36, %v779_v24  ;;  %v1067_v6 = vsel %vm1051_vm4, %v3122_v14, %v715_v61 }
  0xed   : > { %v1294_v37 = vsel %vm1282_vm13, %v1261_v34, %v1030_v60  ;;  %963 = vrot.lane.b32.xlu1 %v3476_v4, %s2785_s16  ;;  %v1018_v60 = vsel %vm732_vm2, %v1016_v17, %v1017_v57 }
  0xee   : > { %961 = vrot.lane.b32.xlu0 %v3408_v55, %s2785_s16  ;;  %2684 = vmatmul.mubr.msk.bf16.gmra.mxu0 %vm1335_vm14, %v1294_v37 }
  0xef   : > { %v796_v0 = vpop.permute.xlu1 %795 }
  0xf0   : > { %v794_v25 = vpop.permute.xlu0 %793 }
  0xf1   : > { %1010 = vrot.lane.b32.xlu1 %v699_v21, %s2786_s17  ;;  %v1098_v44 = vsel %vm1084_vm7, %v1065_v42, %v794_v25 }
  0xf2   : > { %1008 = vrot.lane.b32.xlu0 %v687_v31, %s2786_s17 }
  0xf3   : > { %v833_v8 = vpop.permute.xlu1 %832 }
  0xf4   : > { %v831_v52 = vpop.permute.xlu0 %830 }
  0xf5   : > { %728 = vrot.lane.b32.xlu1 %v687_v31, %s2783_s14  ;;  %v1131_v3 = vsel %vm1117_vm8, %v1098_v44, %v831_v52 }
  0xf6   : > { %1043 = vrot.lane.b32.xlu0 %v777_v1, %s2787_s18 }
  0xf7   : > { %v880_v26 = vpop.permute.xlu1 %879 }
  0xf8   : > { %v878_v48 = vpop.permute.xlu0 %877 }
  0xf9   : > { %730 = vrot.lane.b32.xlu1 %v699_v21, %s2783_s14  ;;  %v1164_v10 = vsel %vm1150_vm9, %v1131_v3, %v878_v48 }
  0xfa   : > { %1045 = vrot.lane.b32.xlu0 %v780_v16, %s2787_s18 }
  0xfb   : > { %v915_v35 = vpop.permute.xlu1 %914 }
  0xfc   : > { %v913_v43 = vpop.permute.xlu0 %912 }
  0xfd   : > { %811 = vrot.lane.b32.xlu1 %v780_v16, %s2782_s13  ;;  %v1197_v56 = vsel %vm1183_vm10, %v1164_v10, %v913_v43 }
  0xfe   : > { %809 = vrot.lane.b32.xlu0 %v777_v1, %s2782_s13  ;;  %v1100_v1 = vsel %vm1084_vm7, %v1067_v6, %v796_v0 }
  0xff   : > { %v952_v54 = vpop.permute.xlu1 %951  ;;  %v1133_v62 = vsel %vm1117_vm8, %v1100_v1, %v833_v8 }
 0x100   : > { %v950_v40 = vpop.permute.xlu0 %949  ;;  %v1166_v27 = vsel %vm1150_vm9, %v1133_v62, %v880_v26 }
 0x101   : > { %848 = vrot.lane.b32.xlu1 %v3526_v20, %s2780_s30  ;;  %v1230_v38 = vsel %vm1216_vm11, %v1197_v56, %v950_v40  ;;  %v1199_v39 = vsel %vm1183_vm10, %v1166_v27, %v915_v35 }
 0x102   : > { %846 = vrot.lane.b32.xlu0 %v3476_v4, %s2780_s30  ;;  %v1232_v28 = vsel %vm1216_vm11, %v1199_v39, %v952_v54 }
 0x103   : > { %v999_v31 = vpop.permute.xlu1 %998 }
 0x104   : > { %v997_v23 = vpop.permute.xlu0 %996  ;;  %v1265_v53 = vsel %vm1249_vm12, %v1232_v28, %v999_v31 }
 0x105   : > { %895 = vrot.lane.b32.xlu1 %v3593_v15, %s2784_s15  ;;  %v1263_v22 = vsel %vm1249_vm12, %v1230_v38, %v997_v23 }
 0x106   : > { %893 = vrot.lane.b32.xlu0 %v699_v21, %s2784_s15  ;;  %s314_s15 = scalar_lea.vmem %s4018_s4, %s4025_s25 }
 0x107   : > { %v717_v46 = vpop.permute.xlu1 %716 }
 0x108   : > { %v1032_v59 = vpop.permute.xlu0 %1031  ;;  %v1069_v52 = vsel %vm1051_vm4, %v3222_v41, %v717_v46 }
 0x109   : > { %v1296_v14 = vsel %vm1282_vm13, %v1263_v22, %v1032_v59  ;;  %930 = vrot.lane.b32.xlu1 %v3581_v33, %s2781_s9 }
 0x10a   : > { %928 = vrot.lane.b32.xlu0 %v780_v16, %s2781_s9  ;;  %2687 = vmatprep.mubr.msk.bf16.mxu0 %vm1335_vm14, %v1296_v14  ;;  %s320_s9 = scalar_lea.vmem %s4020_s6, %s4025_s25 }
 0x10b   : > { %v719_v9 = vpop.permute.xlu1 %718 }
 0x10c   : > { %v1034_v7 = vpop.permute.xlu0 %1033 }
 0x10d   : > { %v1298_v50 = vsel %vm1282_vm13, %v1265_v53, %v1034_v7  ;;  %967 = vrot.lane.b32.xlu1 %v2769_v47, %s2785_s16 }
 0x10e   : > { %965 = vrot.lane.b32.xlu0 %v3526_v20, %s2785_s16  ;;  %2688 = vmatmul.mubr.msk.bf16.gmra.mxu0 %vm1335_vm14, %v1298_v50 }
 0x10f   : > { %v800_v61 = vpop.permute.xlu1 %799 }
 0x110   : > { %v798_v34 = vpop.permute.xlu0 %797 }
 0x111   : > { %1014 = vrot.lane.b32.xlu1 %v983_v32, %s2786_s17 }
 0x112   : > { %1012 = vrot.lane.b32.xlu0 %v3593_v15, %s2786_s17  ;;  %v1102_v15 = vsel %vm1084_vm7, %v1069_v52, %v798_v34 }
 0x113   : > { %v837_v37 = vpop.permute.xlu1 %836 }
 0x114   : > { %v835_v21 = vpop.permute.xlu0 %834 }
 0x115   : > { %1049 = vrot.lane.b32.xlu1 %v1018_v60, %s2787_s18  ;;  %v1135_v16 = vsel %vm1117_vm8, %v1102_v15, %v835_v21 }
 0x116   : > { %1047 = vrot.lane.b32.xlu0 %v3581_v33, %s2787_s18  ;;  %v1071_v33 = vsel %vm1051_vm4, %v3288_v49, %v719_v9  ;;  %s317_s18 = scalar_lea.vmem %s4019_s5, %s4025_s25 }
 0x117   : > { %v884_v20 = vpop.permute.xlu1 %883  ;;  %v1104_v47 = vsel %vm1084_vm7, %v1071_v33, %v800_v61 }
 0x118   : > { %v882_v0 = vpop.permute.xlu0 %881  ;;  %v1137_v41 = vsel %vm1117_vm8, %v1104_v47, %v837_v37 }
 0x119   : > { %v1168_v35 = vsel %vm1150_vm9, %v1135_v16, %v882_v0  ;;  %v1170_v58 = vsel %vm1150_vm9, %v1137_v41, %v884_v20 }
 0x11b   : > { %v919_v25 = vpop.permute.xlu1 %918 }
 0x11c   : > { %v917_v8 = vpop.permute.xlu0 %916  ;;  %v1203_v31 = vsel %vm1183_vm10, %v1170_v58, %v919_v25 }
 0x11d   : > { %v1201_v43 = vsel %vm1183_vm10, %v1168_v35, %v917_v8 }
 0x11f   : > { %v956_v36 = vpop.permute.xlu1 %955 }
 0x120   : > { %v954_v24 = vpop.permute.xlu0 %953  ;;  %v1236_v49 = vsel %vm1216_vm11, %v1203_v31, %v956_v36 }
 0x121   : > { %v1234_v54 = vsel %vm1216_vm11, %v1201_v43, %v954_v24 }
 0x123   : > { %v1003_v26 = vpop.permute.xlu1 %1002 }
 0x124   : > { %v1001_v48 = vpop.permute.xlu0 %1000  ;;  %v1269_v23 = vsel %vm1249_vm12, %v1236_v49, %v1003_v26 }
 0x125   : > { %v1267_v42 = vsel %vm1249_vm12, %v1234_v54, %v1001_v48 }
 0x127   : > { %v721_v40 = vpop.permute.xlu1 %720 }
 0x128   : > { %v1036_v5 = vpop.permute.xlu0 %1035  ;;  %v1073_v27 = vsel %vm1051_vm4, %v3373_v12, %v721_v40 }
 0x129   : > { %v1300_v44 = vsel %vm1282_vm13, %v1267_v42, %v1036_v5 }
 0x12a   : > { %2691 = vmatprep.mubr.msk.bf16.mxu1 %vm1335_vm14, %v1300_v44 }
 0x12b   : > { %v723_v3 = vpop.permute.xlu1 %722 }
 0x12c   : > { %v1038_v10 = vpop.permute.xlu0 %1037  ;;  %v1075_v9 = vsel %vm1051_vm4, %v3442_v51, %v723_v3 }
 0x12d   : > { %v1302_v19 = vsel %vm1282_vm13, %v1269_v23, %v1038_v10 }
 0x12e   : > { %2692 = vmatmul.mubr.msk.bf16.vlgmr.msra.gmra.mxu1 %vm1335_vm14, %v1302_v19 }
 0x12f   : > { %v804_v6 = vpop.permute.xlu1 %803 }
 0x130   : > { %v802_v56 = vpop.permute.xlu0 %801  ;;  %v1108_v7 = vsel %vm1084_vm7, %v1075_v9, %v804_v6 }
 0x131   : > { %v1106_v14 = vsel %vm1084_vm7, %v1073_v27, %v802_v56 }
 0x133   : > { %v841_v45 = vpop.permute.xlu1 %840 }
 0x134   : > { %v839_v2 = vpop.permute.xlu0 %838  ;;  %v1141_v12 = vsel %vm1117_vm8, %v1108_v7, %v841_v45 }
 0x135   : > { %v1139_v30 = vsel %vm1117_vm8, %v1106_v14, %v839_v2 }
 0x137   : > { %v888_v1 = vpop.permute.xlu1 %887 }
 0x138   : > { %v886_v38 = vpop.permute.xlu0 %885  ;;  %v1174_v61 = vsel %vm1150_vm9, %v1141_v12, %v888_v1 }
 0x139   : > { %v1172_v28 = vsel %vm1150_vm9, %v1139_v30, %v886_v38 }
 0x13b   : > { %v923_v46 = vpop.permute.xlu1 %922 }
 0x13c   : > { %v921_v62 = vpop.permute.xlu0 %920  ;;  %v1207_v60 = vsel %vm1183_vm10, %v1174_v61, %v923_v46 }
 0x13d   : > { %v1205_v53 = vsel %vm1183_vm10, %v1172_v28, %v921_v62 }
 0x13f   : > { %v960_v22 = vpop.permute.xlu1 %959 }
 0x140   : > { %v958_v59 = vpop.permute.xlu0 %957  ;;  %v1240_v51 = vsel %vm1216_vm11, %v1207_v60, %v960_v22 }
 0x141   : > { %v1238_v50 = vsel %vm1216_vm11, %v1205_v53, %v958_v59 }
 0x143   : > { %v1007_v39 = vpop.permute.xlu1 %1006 }
 0x144   : > { %v1005_v18 = vpop.permute.xlu0 %1004  ;;  %v1273_v21 = vsel %vm1249_vm12, %v1240_v51, %v1007_v39 }
 0x145   : > { %v1271_v17 = vsel %vm1249_vm12, %v1238_v50, %v1005_v18 }
 0x147   : > { %v725_v32 = vpop.permute.xlu1 %724 }
 0x148   : > { %v1040_v57 = vpop.permute.xlu0 %1039  ;;  %v1077_v33 = vsel %vm1051_vm4, %v3562_v13, %v725_v32 }
 0x149   : > { %v1304_v34 = vsel %vm1282_vm13, %v1271_v17, %v1040_v57 }
 0x14a   : > { %2695 = vmatprep.mubr.msk.bf16.mxu1 %vm1335_vm14, %v1304_v34 }
 0x14b   : > { %v727_v37 = vpop.permute.xlu1 %726 }
 0x14c   : > { %v1042_v20 = vpop.permute.xlu0 %1041  ;;  %v1079_v42 = vsel %vm1051_vm4, %v3616_v29, %v727_v37 }
 0x14d   : > { %v1306_v0 = vsel %vm1282_vm13, %v1273_v21, %v1042_v20 }
 0x14e   : > { %2696 = vmatmul.mubr.msk.bf16.gmra.mxu1 %vm1335_vm14, %v1306_v0 }
 0x14f   : > { %v808_v25 = vpop.permute.xlu1 %807 }
 0x150   : > { %v806_v8 = vpop.permute.xlu0 %805  ;;  %v1112_v58 = vsel %vm1084_vm7, %v1079_v42, %v808_v25 }
 0x151   : > { %v1110_v43 = vsel %vm1084_vm7, %v1077_v33, %v806_v8 }
 0x153   : > { %v845_v36 = vpop.permute.xlu1 %844 }
 0x154   : > { %v843_v24 = vpop.permute.xlu0 %842  ;;  %v1145_v13 = vsel %vm1117_vm8, %v1112_v58, %v845_v36 }
 0x155   : > { %v1143_v54 = vsel %vm1117_vm8, %v1110_v43, %v843_v24 }
 0x157   : > { %v892_v52 = vpop.permute.xlu1 %891 }
 0x158   : > { %v890_v15 = vpop.permute.xlu0 %889  ;;  %v1178_v23 = vsel %vm1150_vm9, %v1145_v13, %v892_v52 }
 0x159   : > { %v1176_v41 = vsel %vm1150_vm9, %v1143_v54, %v890_v15 }
 0x15b   : > { %v927_v26 = vpop.permute.xlu1 %926 }
 0x15c   : > { %v925_v16 = vpop.permute.xlu0 %924  ;;  %v1211_v19 = vsel %vm1183_vm10, %v1178_v23, %v927_v26 }
 0x15d   : > { %v1209_v5 = vsel %vm1183_vm10, %v1176_v41, %v925_v16 }
 0x15f   : > { %v964_v48 = vpop.permute.xlu1 %963 }
 0x160   : > { %v962_v35 = vpop.permute.xlu0 %961  ;;  %v1244_v29 = vsel %vm1216_vm11, %v1211_v19, %v964_v48 }
 0x161   : > { %v1242_v44 = vsel %vm1216_vm11, %v1209_v5, %v962_v35 }
 0x163   : > { %v1011_v47 = vpop.permute.xlu1 %1010 }
 0x164   : > { %v1009_v40 = vpop.permute.xlu0 %1008  ;;  %v1277_v56 = vsel %vm1249_vm12, %v1244_v29, %v1011_v47 }
 0x165   : > { %v1275_v49 = vsel %vm1249_vm12, %v1242_v44, %v1009_v40 }
 0x167   : > { %v729_v31 = vpop.permute.xlu1 %728 }
 0x168   : > { %v1044_v3 = vpop.permute.xlu0 %1043  ;;  %v1081_v15 = vsel %vm1051_vm4, %v3408_v55, %v729_v31 }
 0x169   : > { %v1308_v10 = vsel %vm1282_vm13, %v1275_v49, %v1044_v3 }
 0x16a   : > { %2699 = vmatprep.mubr.msk.bf16.mxu1 %vm1335_vm14, %v1308_v10 }
 0x16b   : > { %v731_v6 = vpop.permute.xlu1 %730 }
 0x16c   : > { %v1046_v45 = vpop.permute.xlu0 %1045  ;;  %v1083_v52 = vsel %vm1051_vm4, %v3476_v4, %v731_v6 }
 0x16d   : > { %v1310_v2 = vsel %vm1282_vm13, %v1277_v56, %v1046_v45 }
 0x16e   : > { %v2677_v1 = vpop.f32.mrf.mxu0  ;;  %2700 = vmatmul.mubr.msk.bf16.gmra.mxu1 %vm1335_vm14, %v1310_v2 }
 0x16f   : > { %1986 = vst.msk [vmem:[%s3835_s29 + $0x10] sm:$0xff] %vm1051_vm4, %v2677_v1  ;;  %v812_v38 = vpop.permute.xlu1 %811  ;;  %v2121_v30 = vmul.f32 %v2677_v1, %v2677_v1  ;;  %v2051_v7 = vsel %vm1051_vm4, %v2677_v1, 0.0 }
 0x170   : > { %v1406_v46 = vpop.f32.mrf.mxu0  ;;  %v810_v62 = vpop.permute.xlu0 %809  ;;  %v1116_v26 = vsel %vm1084_vm7, %v1083_v52, %v812_v38 }
 0x171   : > { %1984 = vst.msk [vmem:[%s3835_s29] sm:$0xff] %vm1051_vm4, %v1406_v46  ;;  %v2119_v59 = vmul.f32 %v1406_v46, %v1406_v46  ;;  %v2048_v18 = vsel %vm1051_vm4, %v1406_v46, 0.0  ;;  %v2154_v60 = vsel %vm1051_vm4, %v2121_v30, 0.0  ;;  %v1114_v16 = vsel %vm1084_vm7, %v1081_v15, %v810_v62 }
 0x172   : > { %v2678_v22 = vpop.f32.mrf.mxu0 }
 0x173   : > { %1987 = vst.msk [vmem:[%s3835_s29 + $0x18] sm:$0xff] %vm1051_vm4, %v2678_v22  ;;  %v849_v27 = vpop.permute.xlu1 %848  ;;  %v2151_v50 = vsel %vm1051_vm4, %v2119_v59, 0.0  ;;  %v2122_v32 = vmul.f32 %v2678_v22, %v2678_v22  ;;  %v2053_v51 = vsel %vm1051_vm4, %v2678_v22, 0.0 }
 0x174   : > { %v1409_v14 = vpop.f32.mrf.mxu0  ;;  %v847_v39 = vpop.permute.xlu0 %846  ;;  %v1149_v48 = vsel %vm1117_vm8, %v1116_v26, %v849_v27 }
 0x175   : > { %1985 = vst.msk [vmem:[%s3835_s29 + $0x8] sm:$0xff] %vm1051_vm4, %v1409_v14  ;;  %v2049_v28 = vsel %vm1051_vm4, %v1409_v14, 0.0  ;;  %v2120_v9 = vmul.f32 %v1409_v14, %v1409_v14  ;;  %v2156_v20 = vsel %vm1051_vm4, %v2122_v32, 0.0  ;;  %v1147_v33 = vsel %vm1117_vm8, %v1114_v16, %v847_v39 }
 0x176   : > { %v2050_v53 = vadd.f32 %v2049_v28, %v2048_v18 }
 0x177   : > { %v2152_v12 = vsel %vm1051_vm4, %v2120_v9, 0.0  ;;  %v896_v17 = vpop.permute.xlu1 %895 }
 0x178   : > { %v2052_v57 = vadd.f32 %v2051_v7, %v2050_v53  ;;  %v2153_v61 = vadd.f32 %v2152_v12, %v2151_v50  ;;  %v894_v34 = vpop.permute.xlu0 %893  ;;  %v1182_v43 = vsel %vm1150_vm9, %v1149_v48, %v896_v17 }
 0x179   : > { %v1180_v54 = vsel %vm1150_vm9, %v1147_v33, %v894_v34  ;;  %v2284_v33 = vrot.slane %v3605_v11, 4 }
 0x17a   : > { %v2155_v37 = vadd.f32 %v2154_v60, %v2153_v61  ;;  %v2054_v21 = vadd.f32 %v2053_v51, %v2052_v57 }
 0x17b   : > { %v931_v0 = vpop.permute.xlu1 %930 }
 0x17c   : > { %v929_v25 = vpop.permute.xlu0 %928  ;;  %v2157_v8 = vadd.f32 %v2156_v20, %v2155_v37  ;;  %v1215_v4 = vsel %vm1183_vm10, %v1182_v43, %v931_v0 }
 0x17d   : > { %v1213_v55 = vsel %vm1183_vm10, %v1180_v54, %v929_v25 }
 0x17f   : > { %v968_v36 = vpop.permute.xlu1 %967 }
 0x180   : > { %v966_v24 = vpop.permute.xlu0 %965  ;;  %v1248_v40 = vsel %vm1216_vm11, %v1215_v4, %v968_v36  ;;  %v2386_v4 = vrot.slane %v3610_v63, 4 }
 0x181   : > { %v1246_v41 = vsel %vm1216_vm11, %v1213_v55, %v966_v24 }
 0x183   : > { %v1015_v35 = vpop.permute.xlu1 %1014 }
 0x184   : > { %v1013_v47 = vpop.permute.xlu0 %1012  ;;  %v1281_v42 = vsel %vm1249_vm12, %v1248_v40, %v1015_v35 }
 0x185   : > { %v1279_v58 = vsel %vm1249_vm12, %v1246_v41, %v1013_v47  ;;  %v2285_v47 = vadd.f32 %v2284_v33, %v3605_v11 }
 0x187   : > { %v1050_v5 = vpop.permute.xlu1 %1049 }
 0x188   : > { %v1314_v44 = vsel %vm1282_vm13, %v1281_v42, %v1050_v5  ;;  %v1048_v31 = vpop.permute.xlu0 %1047 }
 0x189   : > { %v1312_v13 = vsel %vm1282_vm13, %v1279_v58, %v1048_v31  ;;  %v2286_v58 = vrot.slane %v2285_v47, 2 }
 0x18a   : > { %2703 = vmatprep.mubr.msk.bf16.mxu1 %vm1335_vm14, %v1312_v13  ;;  %v2387_v13 = vadd.f32 %v2386_v4, %v3610_v63 }
 0x18b   : > { %2704 = vmatmul.mubr.msk.bf16.gmra.mxu1 %vm1335_vm14, %v1314_v44 }
 0x18e   : > { %v2681_v49 = vpop.f32.mrf.mxu0 }
 0x18f   : > { %1990 = vst.msk [vmem:[%s3835_s29 + $0x30] sm:$0xff] %vm1051_vm4, %v2681_v49  ;;  %v2125_v2 = vmul.f32 %v2681_v49, %v2681_v49  ;;  %v2059_v62 = vsel %vm1051_vm4, %v2681_v49, 0.0 }
 0x190   : > { %v1422_v3 = vpop.f32.mrf.mxu0 }
 0x191   : > { %1988 = vst.msk [vmem:[%s3835_s29 + $0x20] sm:$0xff] %vm1051_vm4, %v1422_v3  ;;  %v2055_v23 = vsel %vm1051_vm4, %v1422_v3, 0.0  ;;  %v2123_v10 = vmul.f32 %v1422_v3, %v1422_v3  ;;  %v2162_v39 = vsel %vm1051_vm4, %v2125_v2, 0.0  ;;  %v2388_v2 = vrot.slane %v2387_v13, 2 }
 0x192   : > { %v2056_v19 = vadd.f32 %v2055_v23, %v2054_v21  ;;  %v2682_v29 = vpop.f32.mrf.mxu0 }
 0x193   : > { %v2158_v6 = vsel %vm1051_vm4, %v2123_v10, 0.0  ;;  %1991 = vst.msk [vmem:[%s3835_s29 + $0x38] sm:$0xff] %vm1051_vm4, %v2682_v29  ;;  %v2126_v22 = vmul.f32 %v2682_v29, %v2682_v29  ;;  %v2061_v30 = vsel %vm1051_vm4, %v2682_v29, 0.0 }
 0x194   : > { %v2159_v56 = vadd.f32 %v2158_v6, %v2157_v8  ;;  %v1425_v45 = vpop.f32.mrf.mxu0  ;;  %v2287_v6 = vadd.f32 %v2286_v58, %v2285_v47 }
 0x195   : > { %1989 = vst.msk [vmem:[%s3835_s29 + $0x28] sm:$0xff] %vm1051_vm4, %v1425_v45  ;;  %v2057_v1 = vsel %vm1051_vm4, %v1425_v45, 0.0  ;;  %v2124_v38 = vmul.f32 %v1425_v45, %v1425_v45  ;;  %v2164_v9 = vsel %vm1051_vm4, %v2126_v22, 0.0 }
 0x196   : > { %v2058_v46 = vadd.f32 %v2057_v1, %v2056_v19  ;;  %v2288_v22 = vrot.slane %v2287_v6, 1 }
 0x197   : > { %v2160_v59 = vsel %vm1051_vm4, %v2124_v38, 0.0 }
 0x198   : > { %v2060_v27 = vadd.f32 %v2059_v62, %v2058_v46  ;;  %v2161_v14 = vadd.f32 %v2160_v59, %v2159_v56 }
 0x19a   : > { %v2163_v18 = vadd.f32 %v2162_v39, %v2161_v14  ;;  %v2062_v28 = vadd.f32 %v2061_v30, %v2060_v27  ;;  %v2389_v27 = vadd.f32 %v2388_v2, %v2387_v13  ;;  %v2289_v14 = vadd.f32 %v2288_v22, %v2287_v6 }
 0x19c   : > { %v2165_v53 = vadd.f32 %v2164_v9, %v2163_v18  ;;  %v2390_v39 = vrot.slane %v2389_v27, 1  ;;  %2290 = vst.msk [vmem:[%s320_s9] sm:$0x1] %vm2117_vm15, %v2289_v14 }
 0x19e   : > { %v2391_v30 = vadd.f32 %v2390_v39, %v2389_v27 }
 0x1a0   : > { %2392 = vst.msk [vmem:[%s323_s12] sm:$0x1] %vm2117_vm15, %v2391_v30 }
 0x1ae   : > { %v2685_v7 = vpop.f32.mrf.mxu0 }
 0x1af   : > { %1994 = vst.msk [vmem:[%s3835_s29 + $0x50] sm:$0xff] %vm1051_vm4, %v2685_v7  ;;  %v2129_v51 = vmul.f32 %v2685_v7, %v2685_v7  ;;  %v2067_v0 = vsel %vm1051_vm4, %v2685_v7, 0.0 }
 0x1b0   : > { %v1438_v50 = vpop.f32.mrf.mxu0 }
 0x1b1   : > { %1992 = vst.msk [vmem:[%s3835_s29 + $0x40] sm:$0xff] %vm1051_vm4, %v1438_v50  ;;  %v2063_v32 = vsel %vm1051_vm4, %v1438_v50, 0.0  ;;  %v2127_v12 = vmul.f32 %v1438_v50, %v1438_v50  ;;  %v2170_v52 = vsel %vm1051_vm4, %v2129_v51, 0.0 }
 0x1b2   : > { %v2064_v17 = vadd.f32 %v2063_v32, %v2062_v28  ;;  %v2686_v57 = vpop.f32.mrf.mxu0 }
 0x1b3   : > { %v2166_v61 = vsel %vm1051_vm4, %v2127_v12, 0.0  ;;  %1995 = vst.msk [vmem:[%s3835_s29 + $0x58] sm:$0xff] %vm1051_vm4, %v2686_v57  ;;  %v2130_v25 = vmul.f32 %v2686_v57, %v2686_v57  ;;  %v2069_v15 = vsel %vm1051_vm4, %v2686_v57, 0.0 }
 0x1b4   : > { %v2167_v34 = vadd.f32 %v2166_v61, %v2165_v53  ;;  %v1441_v60 = vpop.f32.mrf.mxu0 }
 0x1b5   : > { %1993 = vst.msk [vmem:[%s3835_s29 + $0x48] sm:$0xff] %vm1051_vm4, %v1441_v60  ;;  %v2065_v37 = vsel %vm1051_vm4, %v1441_v60, 0.0  ;;  %v2128_v21 = vmul.f32 %v1441_v60, %v1441_v60  ;;  %v2172_v48 = vsel %vm1051_vm4, %v2130_v25, 0.0 }
 0x1b6   : > { %v2066_v20 = vadd.f32 %v2065_v37, %v2064_v17 }
 0x1b7   : > { %v2168_v8 = vsel %vm1051_vm4, %v2128_v21, 0.0 }
 0x1b8   : > { %v2068_v36 = vadd.f32 %v2067_v0, %v2066_v20  ;;  %v2169_v24 = vadd.f32 %v2168_v8, %v2167_v34 }
 0x1ba   : > { %v2171_v26 = vadd.f32 %v2170_v52, %v2169_v24  ;;  %v2070_v16 = vadd.f32 %v2069_v15, %v2068_v36 }
 0x1bc   : > { %v2173_v35 = vadd.f32 %v2172_v48, %v2171_v26 }
 0x1ce   : > { %v2689_v43 = vpop.f32.mrf.mxu0 }
 0x1cf   : > { %1998 = vst.msk [vmem:[%s3835_s29 + $0x70] sm:$0xff] %vm1051_vm4, %v2689_v43  ;;  %v2133_v11 = vmul.f32 %v2689_v43, %v2689_v43  ;;  %v2075_v10 = vsel %vm1051_vm4, %v2689_v43, 0.0 }
 0x1d0   : > { %v1454_v54 = vpop.f32.mrf.mxu0 }
 0x1d1   : > { %1996 = vst.msk [vmem:[%s3835_s29 + $0x60] sm:$0xff] %vm1051_vm4, %v1454_v54  ;;  %v2071_v55 = vsel %vm1051_vm4, %v1454_v54, 0.0  ;;  %v2131_v40 = vmul.f32 %v1454_v54, %v1454_v54  ;;  %v2178_v63 = vsel %vm1051_vm4, %v2133_v11, 0.0 }
 0x1d2   : > { %v2072_v41 = vadd.f32 %v2071_v55, %v2070_v16  ;;  %v2690_v42 = vpop.f32.mrf.mxu0 }
 0x1d3   : > { %v2174_v5 = vsel %vm1051_vm4, %v2131_v40, 0.0  ;;  %1999 = vst.msk [vmem:[%s3835_s29 + $0x78] sm:$0xff] %vm1051_vm4, %v2690_v42  ;;  %v2134_v19 = vmul.f32 %v2690_v42, %v2690_v42  ;;  %v2077_v1 = vsel %vm1051_vm4, %v2690_v42, 0.0 }
 0x1d4   : > { %v2175_v44 = vadd.f32 %v2174_v5, %v2173_v35  ;;  %v1457_v31 = vpop.f32.mrf.mxu0 }
 0x1d5   : > { %1997 = vst.msk [vmem:[%s3835_s29 + $0x68] sm:$0xff] %vm1051_vm4, %v1457_v31  ;;  %v2073_v49 = vsel %vm1051_vm4, %v1457_v31, 0.0  ;;  %v2132_v3 = vmul.f32 %v1457_v31, %v1457_v31  ;;  %v2180_v62 = vsel %vm1051_vm4, %v2134_v19, 0.0 }
 0x1d6   : > { %v2074_v23 = vadd.f32 %v2073_v49, %v2072_v41 }
 0x1d7   : > { %v2176_v29 = vsel %vm1051_vm4, %v2132_v3, 0.0 }
 0x1d8   : > { %v2076_v56 = vadd.f32 %v2075_v10, %v2074_v23  ;;  %v2177_v45 = vadd.f32 %v2176_v29, %v2175_v44 }
 0x1da   : > { %v2179_v38 = vadd.f32 %v2178_v63, %v2177_v45  ;;  %v2078_v46 = vadd.f32 %v2077_v1, %v2076_v56 }
 0x1dc   : > { %v2181_v59 = vadd.f32 %v2180_v62, %v2179_v38 }
 0x1ee   : > { %v2693_v18 = vpop.f32.mrf.mxu1 }
 0x1ef   : > { %2002 = vst.msk [vmem:[%s3835_s29 + $0x90] sm:$0xff] %vm1051_vm4, %v2693_v18  ;;  %v2137_v57 = vmul.f32 %v2693_v18, %v2693_v18  ;;  %v2083_v51 = vsel %vm1051_vm4, %v2693_v18, 0.0 }
 0x1f0   : > { %v1470_v28 = vpop.f32.mrf.mxu1 }
 0x1f1   : > { %2000 = vst.msk [vmem:[%s3835_s29 + $0x80] sm:$0xff] %vm1051_vm4, %v1470_v28  ;;  %v2079_v9 = vsel %vm1051_vm4, %v1470_v28, 0.0  ;;  %v2135_v53 = vmul.f32 %v1470_v28, %v1470_v28  ;;  %v2186_v25 = vsel %vm1051_vm4, %v2137_v57, 0.0 }
 0x1f2   : > { %v2080_v7 = vadd.f32 %v2079_v9, %v2078_v46  ;;  %v2694_v50 = vpop.f32.mrf.mxu1 }
 0x1f3   : > { %v2182_v32 = vsel %vm1051_vm4, %v2135_v53, 0.0  ;;  %2003 = vst.msk [vmem:[%s3835_s29 + $0x98] sm:$0xff] %vm1051_vm4, %v2694_v50  ;;  %v2138_v37 = vmul.f32 %v2694_v50, %v2694_v50  ;;  %v2085_v8 = vsel %vm1051_vm4, %v2694_v50, 0.0 }
 0x1f4   : > { %v2183_v12 = vadd.f32 %v2182_v32, %v2181_v59  ;;  %v1473_v17 = vpop.f32.mrf.mxu1 }
 0x1f5   : > { %2001 = vst.msk [vmem:[%s3835_s29 + $0x88] sm:$0xff] %vm1051_vm4, %v1473_v17  ;;  %v2081_v61 = vsel %vm1051_vm4, %v1473_v17, 0.0  ;;  %v2136_v34 = vmul.f32 %v1473_v17, %v1473_v17  ;;  %v2188_v52 = vsel %vm1051_vm4, %v2138_v37, 0.0 }
 0x1f6   : > { %v2082_v60 = vadd.f32 %v2081_v61, %v2080_v7 }
 0x1f7   : > { %v2184_v21 = vsel %vm1051_vm4, %v2136_v34, 0.0 }
 0x1f8   : > { %v2084_v20 = vadd.f32 %v2083_v51, %v2082_v60  ;;  %v2185_v0 = vadd.f32 %v2184_v21, %v2183_v12 }
 0x1fa   : > { %v2187_v36 = vadd.f32 %v2186_v25, %v2185_v0  ;;  %v2086_v24 = vadd.f32 %v2085_v8, %v2084_v20 }
 0x1fc   : > { %v2189_v15 = vadd.f32 %v2188_v52, %v2187_v36 }
 0x20e   : > { %v2697_v26 = vpop.f32.mrf.mxu1 }
 0x20f   : > { %2006 = vst.msk [vmem:[%s3835_s29 + $0xb0] sm:$0xff] %vm1051_vm4, %v2697_v26  ;;  %v2141_v13 = vmul.f32 %v2697_v26, %v2697_v26  ;;  %v2091_v49 = vsel %vm1051_vm4, %v2697_v26, 0.0 }
 0x210   : > { %v1486_v16 = vpop.f32.mrf.mxu1 }
 0x211   : > { %2004 = vst.msk [vmem:[%s3835_s29 + $0xa0] sm:$0xff] %vm1051_vm4, %v1486_v16  ;;  %v2139_v54 = vmul.f32 %v1486_v16, %v1486_v16  ;;  %v2087_v55 = vsel %vm1051_vm4, %v1486_v16, 0.0  ;;  %v2194_v23 = vsel %vm1051_vm4, %v2141_v13, 0.0 }
 0x212   : > { %v2698_v48 = vpop.f32.mrf.mxu1  ;;  %v2088_v5 = vadd.f32 %v2087_v55, %v2086_v24 }
 0x213   : > { %2007 = vst.msk [vmem:[%s3835_s29 + $0xb8] sm:$0xff] %vm1051_vm4, %v2698_v48  ;;  %v2190_v41 = vsel %vm1051_vm4, %v2139_v54, 0.0  ;;  %v2142_v10 = vmul.f32 %v2698_v48, %v2698_v48  ;;  %v2093_v6 = vsel %vm1051_vm4, %v2698_v48, 0.0 }
 0x214   : > { %v1489_v35 = vpop.f32.mrf.mxu1  ;;  %v2191_v44 = vadd.f32 %v2190_v41, %v2189_v15 }
 0x215   : > { %2005 = vst.msk [vmem:[%s3835_s29 + $0xa8] sm:$0xff] %vm1051_vm4, %v1489_v35  ;;  %v2140_v40 = vmul.f32 %v1489_v35, %v1489_v35  ;;  %v2089_v42 = vsel %vm1051_vm4, %v1489_v35, 0.0  ;;  %v2196_v63 = vsel %vm1051_vm4, %v2142_v10, 0.0 }
 0x216   : > { %v2090_v31 = vadd.f32 %v2089_v42, %v2088_v5 }
 0x217   : > { %v2192_v58 = vsel %vm1051_vm4, %v2140_v40, 0.0 }
 0x218   : > { %v2193_v11 = vadd.f32 %v2192_v58, %v2191_v44  ;;  %v2092_v3 = vadd.f32 %v2091_v49, %v2090_v31 }
 0x21a   : > { %v2195_v29 = vadd.f32 %v2194_v23, %v2193_v11  ;;  %v2094_v2 = vadd.f32 %v2093_v6, %v2092_v3 }
 0x21c   : > { %v2197_v62 = vadd.f32 %v2196_v63, %v2195_v29 }
 0x22e   : > { %v2701_v33 = vpop.f32.mrf.mxu1 }
 0x22f   : > { %2010 = vst.msk [vmem:[%s3835_s29 + $0xd0] sm:$0xff] %vm1051_vm4, %v2701_v33  ;;  %v2145_v14 = vmul.f32 %v2701_v33, %v2701_v33  ;;  %v2099_v30 = vsel %vm1051_vm4, %v2701_v33, 0.0 }
 0x230   : > { %v1502_v43 = vpop.f32.mrf.mxu1 }
 0x231   : > { %2008 = vst.msk [vmem:[%s3835_s29 + $0xc0] sm:$0xff] %vm1051_vm4, %v1502_v43  ;;  %v2143_v19 = vmul.f32 %v1502_v43, %v1502_v43  ;;  %v2095_v56 = vsel %vm1051_vm4, %v1502_v43, 0.0  ;;  %v2202_v9 = vsel %vm1051_vm4, %v2145_v14, 0.0 }
 0x232   : > { %v2702_v47 = vpop.f32.mrf.mxu1  ;;  %v2096_v46 = vadd.f32 %v2095_v56, %v2094_v2 }
 0x233   : > { %2011 = vst.msk [vmem:[%s3835_s29 + $0xd8] sm:$0xff] %vm1051_vm4, %v2702_v47  ;;  %v2198_v1 = vsel %vm1051_vm4, %v2143_v19, 0.0  ;;  %v2146_v53 = vmul.f32 %v2702_v47, %v2702_v47  ;;  %v2101_v32 = vsel %vm1051_vm4, %v2702_v47, 0.0 }
 0x234   : > { %v1505_v4 = vpop.f32.mrf.mxu1  ;;  %v2199_v59 = vadd.f32 %v2198_v1, %v2197_v62 }
 0x235   : > { %2009 = vst.msk [vmem:[%s3835_s29 + $0xc8] sm:$0xff] %vm1051_vm4, %v1505_v4  ;;  %v2144_v45 = vmul.f32 %v1505_v4, %v1505_v4  ;;  %v2097_v38 = vsel %vm1051_vm4, %v1505_v4, 0.0  ;;  %v2204_v34 = vsel %vm1051_vm4, %v2146_v53, 0.0 }
 0x236   : > { %v2098_v27 = vadd.f32 %v2097_v38, %v2096_v46 }
 0x237   : > { %v2200_v22 = vsel %vm1051_vm4, %v2144_v45, 0.0 }
 0x238   : > { %v2201_v39 = vadd.f32 %v2200_v22, %v2199_v59  ;;  %v2100_v18 = vadd.f32 %v2099_v30, %v2098_v27 }
 0x23a   : > { %v2203_v7 = vadd.f32 %v2202_v9, %v2201_v39  ;;  %v2102_v57 = vadd.f32 %v2101_v32, %v2100_v18 }
 0x23c   : > { %v2205_v37 = vadd.f32 %v2204_v34, %v2203_v7 }
 0x24b   : > { %v2705_v28 = vpop.f32.mrf.mxu1 }
 0x24c   : > { %2014 = vst.msk [vmem:[%s3835_s29 + $0xf0] sm:$0xff] %vm1051_vm4, %v2705_v28  ;;  %v2149_v20 = vmul.f32 %v2705_v28, %v2705_v28  ;;  %v2107_v24 = vsel %vm1051_vm4, %v2705_v28, 0.0 }
 0x24d   : > { %v1518_v50 = vpop.f32.mrf.mxu1 }
 0x24e   : > { %2012 = vst.msk [vmem:[%s3835_s29 + $0xe0] sm:$0xff] %vm1051_vm4, %v1518_v50  ;;  %v2103_v12 = vsel %vm1051_vm4, %v1518_v50, 0.0  ;;  %v2147_v17 = vmul.f32 %v1518_v50, %v1518_v50  ;;  %v2210_v48 = vsel %vm1051_vm4, %v2149_v20, 0.0 }
 0x24f   : > { %v2706_v61 = vpop.f32.mrf.mxu1  ;;  %v2104_v51 = vadd.f32 %v2103_v12, %v2102_v57 }
 0x250   : > { %v2206_v60 = vsel %vm1051_vm4, %v2147_v17, 0.0  ;;  %2015 = vst.msk [vmem:[%s3835_s29 + $0xf8] sm:$0xff] %vm1051_vm4, %v2706_v61  ;;  %v2150_v52 = vmul.f32 %v2706_v61, %v2706_v61  ;;  %v2109_v35 = vsel %vm1051_vm4, %v2706_v61, 0.0 }
 0x251   : > { %v1521_v21 = vpop.f32.mrf.mxu1  ;;  %v2207_v8 = vadd.f32 %v2206_v60, %v2205_v37 }
 0x252   : > { %2013 = vst.msk [vmem:[%s3835_s29 + $0xe8] sm:$0xff] %vm1051_vm4, %v1521_v21  ;;  %v2105_v0 = vsel %vm1051_vm4, %v1521_v21, 0.0  ;;  %v2148_v25 = vmul.f32 %v1521_v21, %v1521_v21  ;;  %v2212_v47 = vsel %vm1051_vm4, %v2150_v52, 0.0 }
 0x253   : > { %v2106_v36 = vadd.f32 %v2105_v0, %v2104_v51 }
 0x254   : > { %v2208_v15 = vsel %vm1051_vm4, %v2148_v25, 0.0 }
 0x255   : > { %v2108_v26 = vadd.f32 %v2107_v24, %v2106_v36  ;;  %v2209_v16 = vadd.f32 %v2208_v15, %v2207_v8 }
 0x257   : > { %v2110_v33 = vadd.f32 %v2109_v35, %v2108_v26  ;;  %v2211_v43 = vadd.f32 %v2210_v48, %v2209_v16 }
 0x259   : > { %v2111_v54 = vrot.slane %v2110_v33, 4  ;;  %v2213_v4 = vadd.f32 %v2212_v47, %v2211_v43 }
 0x25b   : > { %v2112_v55 = vadd.f32 %v2111_v54, %v2110_v33  ;;  %v2214_v40 = vrot.slane %v2213_v4, 4 }
 0x25d   : > { %v2113_v41 = vrot.slane %v2112_v55, 2  ;;  %v2215_v42 = vadd.f32 %v2214_v40, %v2213_v4 }
 0x25f   : > { %v2114_v5 = vadd.f32 %v2113_v41, %v2112_v55  ;;  %v2216_v58 = vrot.slane %v2215_v42, 2 }
 0x261   : > { %v2115_v44 = vrot.slane %v2114_v5, 1  ;;  %v2217_v31 = vadd.f32 %v2216_v58, %v2215_v42 }
 0x263   : > { %v2116_v13 = vadd.f32 %v2115_v44, %v2114_v5  ;;  %v2218_v11 = vrot.slane %v2217_v31, 1 }
 0x265   : > { %2118 = vst.msk [vmem:[%s314_s15] sm:$0x1] %vm2117_vm15, %v2116_v13  ;;  %v2219_v49 = vadd.f32 %v2218_v11, %v2217_v31 }
 0x267   : > { %2220 = vst.msk [vmem:[%s317_s18] sm:$0x1] %vm2117_vm15, %v2219_v49 }
 0x268 PF: > { %s18_s24 = sadd.s32 1, %s2778_s24  }
 0x269   : > { %p15_p4 = scmp.ge.s32.totalorder %s18_s24, 4  }
 0x26b   :  { %17 = sbr.rel (!%p15_p4) target bundleno = 1 (0x1), region = 118 }

</bundles_post_ra>
